<compile_context>
chip_gen: v6e
topology: v6e:2x2x1
jax: 0.10.0
libtpu: 0.0.40
codegen_flags: <defaults>
</compile_context>

<pallas_src>
import math

import jax
import jax.numpy as jnp
from jax.experimental import pallas as pl
from jax.experimental.pallas import tpu as pltpu


# ----------------------------------------------------------------------------
# Kernel
# ----------------------------------------------------------------------------
def _layernorm(x, gamma, beta, eps=1e-5):
    # LayerNorm over the last (feature) dim, biased variance (PyTorch default).
    # Single-pass statistics: both reductions are issued on the same input.
    mean = jnp.mean(x, axis=-1, keepdims=True)
    mean_sq = jnp.mean(x * x, axis=-1, keepdims=True)
    var = jnp.maximum(mean_sq - mean * mean, 0.0)
    return (x - mean) * jax.lax.rsqrt(var + eps) * gamma + beta


def dynamic_model_kernel(
    h_ref, a_ref,                      # (bm, inplanes), (bm, dim_rep_actions)
    w_in_h_ref, w_in_a_ref,            # (inplanes, H) bf16, (dim_rep_actions, H) bf16
    b_in_ref,                          # (1, H) f32
    g_in_ref, be_in_ref,               # (1, H) f32   input_block LayerNorm
    ln1_g_ref, ln1_b_ref,              # (n_block, 1, H) f32
    w1_ref, b1_ref,                    # (n_block, H, H) bf16, (n_block, 1, H) f32
    ln2_g_ref, ln2_b_ref,              # (n_block, 1, H) f32
    w2_ref, b2_ref,                    # (n_block, H, H) bf16, (n_block, 1, H) f32
    o_ref,                             # (bm, H) f32
):
    mm_dtype = w1_ref.dtype            # bf16 MXU inputs, f32 accumulation

    # --- input_block: Linear(concat) -> LayerNorm -> ReLU -------------------
    # concat([h, a]) @ W  ==  h @ W[:inplanes] + a @ W[inplanes:]
    xh = h_ref[...].astype(mm_dtype)
    xa = a_ref[...].astype(mm_dtype)
    acc = jnp.dot(xh, w_in_h_ref[...], preferred_element_type=jnp.float32)
    acc = acc + jnp.dot(xa, w_in_a_ref[...], preferred_element_type=jnp.float32)
    acc = acc + b_in_ref[...]
    x = jnp.maximum(_layernorm(acc, g_in_ref[...], be_in_ref[...]), 0.0)

    # --- OneDResBlocks (static unrolled loop; n_block is compile-time) ------
    n_block = w1_ref.shape[0]
    for i in range(n_block):
        out = jnp.maximum(_layernorm(x, ln1_g_ref[i], ln1_b_ref[i]), 0.0)
        out = jnp.dot(out.astype(mm_dtype), w1_ref[i],
                      preferred_element_type=jnp.float32) + b1_ref[i]
        out = jnp.maximum(_layernorm(out, ln2_g_ref[i], ln2_b_ref[i]), 0.0)
        out = jnp.dot(out.astype(mm_dtype), w2_ref[i],
                      preferred_element_type=jnp.float32) + b2_ref[i]
        x = x + out

    o_ref[...] = x.astype(o_ref.dtype)


# ----------------------------------------------------------------------------
# Wrapper
# ----------------------------------------------------------------------------
def _full_spec(shape):
    # whole-array block, independent of the batch grid index
    nd = len(shape)
    return pl.BlockSpec(shape, lambda i, _nd=nd: (0,) * _nd)


def _vmem_limit_bytes(bm, d_h, d_a, H, n_block):
    # Resident weights + double-buffered activation tiles, with 2x headroom.
    w_bytes = (d_h * H + d_a * H + 2 * n_block * H * H) * 2        # bf16 matmul weights
    p_bytes = (3 * H + 6 * n_block * H) * 4                        # f32 LN params + biases
    a_bytes = bm * (d_h + d_a + 2 * H) * 4                         # in/out activation tiles
    est = 2 * (w_bytes + p_bytes + a_bytes)                        # Pallas double-buffers
    return int(min(max(2 * est, 16 * 2 ** 20), 64 * 2 ** 20))


def dynamic_model_forward(h, actions, params, *, bm=256):
    """h: (B, inplanes), actions: (B, dim_rep_actions) -> (B, outplanes)."""
    B, d_h = h.shape
    d_a = actions.shape[1]
    H = params["w_in_h"].shape[1]
    n_block = params["w1"].shape[0]

    # --- choose batch tile -------------------------------------------------
    # Prefer large tiles (fewer grid steps, better MXU sublane fill), but keep
    # >= 2 grid iterations when the batch allows it so v7x's 2 TCs both work.
    bm_req = bm
    if B >= 16 and pl.cdiv(B, bm_req) < 2:
        bm_req = max(8, ((B + 1) // 2 + 7) // 8 * 8)
    bm_eff = max(8, min(bm_req, ((B + 7) // 8) * 8))
    grid_m = pl.cdiv(B, bm_eff)
    B_pad = grid_m * bm_eff

    if B_pad != B:
        pad = B_pad - B
        h = jnp.pad(h, ((0, pad), (0, 0)))
        actions = jnp.pad(actions, ((0, pad), (0, 0)))

    weights = (
        params["w_in_h"], params["w_in_a"], params["b_in"],
        params["g_in"], params["be_in"],
        params["ln1_g"], params["ln1_b"], params["w1"], params["b1"],
        params["ln2_g"], params["ln2_b"], params["w2"], params["b2"],
    )

    in_specs = [
        pl.BlockSpec((bm_eff, d_h), lambda i: (i, 0)),
        pl.BlockSpec((bm_eff, d_a), lambda i: (i, 0)),
    ]
    in_specs += [_full_spec(w.shape) for w in weights]

    out = pl.pallas_call(
        dynamic_model_kernel,
        out_shape=jax.ShapeDtypeStruct((B_pad, H), jnp.float32),
        grid_spec=pltpu.PrefetchScalarGridSpec(
            num_scalar_prefetch=0,
            grid=(grid_m,),
            in_specs=in_specs,
            out_specs=pl.BlockSpec((bm_eff, H), lambda i: (i, 0)),
        ),
        compiler_params=pltpu.CompilerParams(
            dimension_semantics=("parallel",),
            vmem_limit_bytes=_vmem_limit_bytes(bm_eff, d_h, d_a, H, n_block),
        ),
    )(h, actions, *weights)

    return out[:B]


# ----------------------------------------------------------------------------
# Deterministic parameter construction (matches PyTorch shapes)
# ----------------------------------------------------------------------------
def init_params(key, dim_rep_actions, inplanes, outplanes, size_nn):
    D_in = inplanes + dim_rep_actions
    H = outplanes
    n_block = 2 * size_nn

    keys = jax.random.split(key, 8)

    def lin_w(k, fan_in, fan_out):
        # deterministic, roughly PyTorch-scaled init; stored as (in, out) = W.T
        bound = 1.0 / math.sqrt(fan_in)
        return jax.random.uniform(k, (fan_in, fan_out), jnp.float32, -bound, bound)

    def lin_b(k, fan_in, fan_out):
        bound = 1.0 / math.sqrt(fan_in)
        return jax.random.uniform(k, (1, fan_out), jnp.float32, -bound, bound)

    bf16 = jnp.bfloat16
    w_in = lin_w(keys[0], D_in, H)

    params = {
        # input_block: Linear(D_in -> H) split into the h- and action-slices,
        # LayerNorm(H).  Matmul weights shipped as bf16, everything else f32.
        "w_in_h": w_in[:inplanes].astype(bf16),
        "w_in_a": w_in[inplanes:].astype(bf16),
        "b_in": lin_b(keys[1], D_in, H),
        "g_in": jnp.ones((1, H), jnp.float32),
        "be_in": jnp.zeros((1, H), jnp.float32),
        # OneDResBlocks, stacked along leading n_block axis
        "ln1_g": jnp.ones((n_block, 1, H), jnp.float32),
        "ln1_b": jnp.zeros((n_block, 1, H), jnp.float32),
        "w1": jnp.stack([lin_w(k, H, H) for k in jax.random.split(keys[2], n_block)]).astype(bf16),
        "b1": jnp.stack([lin_b(k, H, H) for k in jax.random.split(keys[3], n_block)]),
        "ln2_g": jnp.ones((n_block, 1, H), jnp.float32),
        "ln2_b": jnp.zeros((n_block, 1, H), jnp.float32),
        "w2": jnp.stack([lin_w(k, H, H) for k in jax.random.split(keys[4], n_block)]).astype(bf16),
        "b2": jnp.stack([lin_b(k, H, H) for k in jax.random.split(keys[5], n_block)]),
    }
    return params


# ----------------------------------------------------------------------------
# Pure-JAX reference (same bf16 weights / f32 accumulation scheme)
# ----------------------------------------------------------------------------
def dynamic_model_reference(h, actions, params):
    def ln(x, g, b, eps=1e-5):
        m = jnp.mean(x, axis=-1, keepdims=True)
        v = jnp.mean((x - m) ** 2, axis=-1, keepdims=True)
        return (x - m) * jax.lax.rsqrt(v + eps) * g + b

    bf16 = jnp.bfloat16
    acc = jnp.dot(h.astype(bf16), params["w_in_h"], preferred_element_type=jnp.float32)
    acc = acc + jnp.dot(actions.astype(bf16), params["w_in_a"],
                        preferred_element_type=jnp.float32)
    acc = acc + params["b_in"]
    x = jnp.maximum(ln(acc, params["g_in"], params["be_in"]), 0.0)
    n_block = params["w1"].shape[0]
    for i in range(n_block):
        out = jnp.maximum(ln(x, params["ln1_g"][i], params["ln1_b"][i]), 0.0)
        out = jnp.dot(out.astype(bf16), params["w1"][i],
                      preferred_element_type=jnp.float32) + params["b1"][i]
        out = jnp.maximum(ln(out, params["ln2_g"][i], params["ln2_b"][i]), 0.0)
        out = jnp.dot(out.astype(bf16), params["w2"][i],
                      preferred_element_type=jnp.float32) + params["b2"][i]
        x = x + out
    return x


# ----------------------------------------------------------------------------
if __name__ == "__main__":
    # Shapes consistent with the module's forward (oned_input=True):
    #   h: (B, inplanes), actions: (B, dim_rep_actions)
    B = 256
    dim_rep_actions = 8
    inplanes = 32
    outplanes = 32          # outplanes defaults to inplanes
    size_nn = 1             # -> n_block = 2 OneDResBlocks

    key = jax.random.PRNGKey(0)
    k_h, k_a, k_p = jax.random.split(key, 3)

    h = jax.random.normal(k_h, (B, inplanes), jnp.float32)
    actions = jax.random.normal(k_a, (B, dim_rep_actions), jnp.float32)
    params = init_params(k_p, dim_rep_actions, inplanes, outplanes, size_nn)

    out = dynamic_model_forward(h, actions, params, bm=256)
    out = jax.block_until_ready(out)

    assert out.shape == (B, outplanes), out.shape
    assert jnp.all(jnp.isfinite(out))

    ref = dynamic_model_reference(h, actions, params)
    assert jnp.allclose(out, ref, atol=1e-2, rtol=1e-2), float(jnp.max(jnp.abs(out - ref)))

    print("KERNEL_OK")
</pallas_src>

<mosaic_0001>
module attributes {stable_mosaic.version = 11 : i64} {
  func.func @dynamic_model_kernel(%arg0: i32, %arg1: memref<128x32xf32, #tpu.memory_space<vmem>>, %arg2: memref<128x8xf32, #tpu.memory_space<vmem>>, %arg3: memref<32x32xbf16, #tpu.memory_space<vmem>>, %arg4: memref<8x32xbf16, #tpu.memory_space<vmem>>, %arg5: memref<1x32xf32, #tpu.memory_space<vmem>>, %arg6: memref<1x32xf32, #tpu.memory_space<vmem>>, %arg7: memref<1x32xf32, #tpu.memory_space<vmem>>, %arg8: memref<2x1x32xf32, #tpu.memory_space<vmem>>, %arg9: memref<2x1x32xf32, #tpu.memory_space<vmem>>, %arg10: memref<2x32x32xbf16, #tpu.memory_space<vmem>>, %arg11: memref<2x1x32xf32, #tpu.memory_space<vmem>>, %arg12: memref<2x1x32xf32, #tpu.memory_space<vmem>>, %arg13: memref<2x1x32xf32, #tpu.memory_space<vmem>>, %arg14: memref<2x32x32xbf16, #tpu.memory_space<vmem>>, %arg15: memref<2x1x32xf32, #tpu.memory_space<vmem>>, %arg16: memref<128x32xf32, #tpu.memory_space<vmem>>) attributes {dimension_semantics = [#tpu.dimension_semantics<parallel>], iteration_bounds = array<i64: 2>, scalar_prefetch = 0 : i64, scratch_operands = 0 : i64, tpu.core_type = #tpu.core_type<tc>, window_params = [{transform_indices = @transform_0, window_bounds = array<i64: 128, 32>}, {transform_indices = @transform_1, window_bounds = array<i64: 128, 8>}, {pipeline_mode = #tpu.pipeline_mode<synchronous>, transform_indices = @transform_2, window_bounds = array<i64: 32, 32>}, {pipeline_mode = #tpu.pipeline_mode<synchronous>, transform_indices = @transform_3, window_bounds = array<i64: 8, 32>}, {pipeline_mode = #tpu.pipeline_mode<synchronous>, transform_indices = @transform_4, window_bounds = array<i64: 1, 32>}, {pipeline_mode = #tpu.pipeline_mode<synchronous>, transform_indices = @transform_5, window_bounds = array<i64: 1, 32>}, {pipeline_mode = #tpu.pipeline_mode<synchronous>, transform_indices = @transform_6, window_bounds = array<i64: 1, 32>}, {pipeline_mode = #tpu.pipeline_mode<synchronous>, transform_indices = @transform_7, window_bounds = array<i64: 2, 1, 32>}, {pipeline_mode = #tpu.pipeline_mode<synchronous>, transform_indices = @transform_8, window_bounds = array<i64: 2, 1, 32>}, {pipeline_mode = #tpu.pipeline_mode<synchronous>, transform_indices = @transform_9, window_bounds = array<i64: 2, 32, 32>}, {pipeline_mode = #tpu.pipeline_mode<synchronous>, transform_indices = @transform_10, window_bounds = array<i64: 2, 1, 32>}, {pipeline_mode = #tpu.pipeline_mode<synchronous>, transform_indices = @transform_11, window_bounds = array<i64: 2, 1, 32>}, {pipeline_mode = #tpu.pipeline_mode<synchronous>, transform_indices = @transform_12, window_bounds = array<i64: 2, 1, 32>}, {pipeline_mode = #tpu.pipeline_mode<synchronous>, transform_indices = @transform_13, window_bounds = array<i64: 2, 32, 32>}, {pipeline_mode = #tpu.pipeline_mode<synchronous>, transform_indices = @transform_14, window_bounds = array<i64: 2, 1, 32>}, {transform_indices = @transform_15, window_bounds = array<i64: 128, 32>}]} {
    %c0 = arith.constant 0 : index
    %c0_0 = arith.constant 0 : index
    %0 = vector.load %arg1[%c0, %c0_0] : memref<128x32xf32, #tpu.memory_space<vmem>>, vector<128x32xf32>
    %1 = arith.truncf %0 : vector<128x32xf32> to vector<128x32xbf16>
    %c0_1 = arith.constant 0 : index
    %c0_2 = arith.constant 0 : index
    %2 = vector.load %arg2[%c0_1, %c0_2] : memref<128x8xf32, #tpu.memory_space<vmem>>, vector<128x8xf32>
    %3 = arith.truncf %2 : vector<128x8xf32> to vector<128x8xbf16>
    %c0_3 = arith.constant 0 : index
    %c0_4 = arith.constant 0 : index
    %4 = vector.load %arg3[%c0_3, %c0_4] : memref<32x32xbf16, #tpu.memory_space<vmem>>, vector<32x32xbf16>
    %cst = arith.constant dense<0.000000e+00> : vector<128x32xf32>
    %5 = tpu.matmul %1, %4, %cst {dimension_numbers = #tpu.dot_dimension_numbers<[1], [0], [0], [1], [0, 0, 1, 1], [], []>} : vector<128x32xbf16>, vector<32x32xbf16>, vector<128x32xf32> -> vector<128x32xf32>
    %c0_5 = arith.constant 0 : index
    %c0_6 = arith.constant 0 : index
    %6 = vector.load %arg4[%c0_5, %c0_6] : memref<8x32xbf16, #tpu.memory_space<vmem>>, vector<8x32xbf16>
    %cst_7 = arith.constant dense<0.000000e+00> : vector<128x32xf32>
    %7 = tpu.matmul %3, %6, %cst_7 {dimension_numbers = #tpu.dot_dimension_numbers<[1], [0], [0], [1], [0, 0, 1, 1], [], []>} : vector<128x8xbf16>, vector<8x32xbf16>, vector<128x32xf32> -> vector<128x32xf32>
    %8 = arith.addf %5, %7 : vector<128x32xf32>
    %c0_8 = arith.constant 0 : index
    %c0_9 = arith.constant 0 : index
    %9 = vector.load %arg5[%c0_8, %c0_9] : memref<1x32xf32, #tpu.memory_space<vmem>>, vector<1x32xf32>
    %10 = vector.broadcast %9 : vector<1x32xf32> to vector<128x32xf32>
    %11 = arith.addf %8, %10 : vector<128x32xf32>
    %c0_10 = arith.constant 0 : index
    %c0_11 = arith.constant 0 : index
    %12 = vector.load %arg6[%c0_10, %c0_11] : memref<1x32xf32, #tpu.memory_space<vmem>>, vector<1x32xf32>
    %c0_12 = arith.constant 0 : index
    %c0_13 = arith.constant 0 : index
    %13 = vector.load %arg7[%c0_12, %c0_13] : memref<1x32xf32, #tpu.memory_space<vmem>>, vector<1x32xf32>
    %cst_14 = arith.constant dense<0.000000e+00> : vector<128xf32>
    %14 = vector.multi_reduction <add>, %11, %cst_14 [1] : vector<128x32xf32> to vector<128xf32>
    %15 = vector.shape_cast %14 : vector<128xf32> to vector<128x1xf32>
    %cst_15 = arith.constant 3.200000e+01 : f32
    %16 = vector.broadcast %cst_15 : f32 to vector<128x1xf32>
    %17 = arith.divf %15, %16 : vector<128x1xf32>
    %18 = arith.mulf %11, %11 : vector<128x32xf32>
    %cst_16 = arith.constant dense<0.000000e+00> : vector<128xf32>
    %19 = vector.multi_reduction <add>, %18, %cst_16 [1] : vector<128x32xf32> to vector<128xf32>
    %20 = vector.shape_cast %19 : vector<128xf32> to vector<128x1xf32>
    %cst_17 = arith.constant 3.200000e+01 : f32
    %21 = vector.broadcast %cst_17 : f32 to vector<128x1xf32>
    %22 = arith.divf %20, %21 : vector<128x1xf32>
    %23 = arith.mulf %17, %17 : vector<128x1xf32>
    %24 = arith.subf %22, %23 : vector<128x1xf32>
    %cst_18 = arith.constant 0.000000e+00 : f32
    %25 = vector.broadcast %cst_18 : f32 to vector<128x1xf32>
    %26 = arith.maximumf %24, %25 : vector<128x1xf32>
    %27 = vector.broadcast %17 : vector<128x1xf32> to vector<128x32xf32>
    %28 = arith.subf %11, %27 : vector<128x32xf32>
    %cst_19 = arith.constant 9.99999974E-6 : f32
    %29 = vector.broadcast %cst_19 : f32 to vector<128x1xf32>
    %30 = arith.addf %26, %29 : vector<128x1xf32>
    %31 = math.rsqrt %30 : vector<128x1xf32>
    %32 = vector.broadcast %31 : vector<128x1xf32> to vector<128x32xf32>
    %33 = arith.mulf %28, %32 : vector<128x32xf32>
    %34 = vector.broadcast %12 : vector<1x32xf32> to vector<128x32xf32>
    %35 = arith.mulf %33, %34 : vector<128x32xf32>
    %36 = vector.broadcast %13 : vector<1x32xf32> to vector<128x32xf32>
    %37 = arith.addf %35, %36 : vector<128x32xf32>
    %cst_20 = arith.constant 0.000000e+00 : f32
    %38 = vector.broadcast %cst_20 : f32 to vector<128x32xf32>
    %39 = arith.maximumf %37, %38 : vector<128x32xf32>
    %c0_21 = arith.constant 0 : index
    %c0_22 = arith.constant 0 : index
    %c0_23 = arith.constant 0 : index
    %40 = vector.load %arg8[%c0_21, %c0_22, %c0_23] : memref<2x1x32xf32, #tpu.memory_space<vmem>>, vector<1x1x32xf32>
    %41 = vector.shape_cast %40 : vector<1x1x32xf32> to vector<1x32xf32>
    %c0_24 = arith.constant 0 : index
    %c0_25 = arith.constant 0 : index
    %c0_26 = arith.constant 0 : index
    %42 = vector.load %arg9[%c0_24, %c0_25, %c0_26] : memref<2x1x32xf32, #tpu.memory_space<vmem>>, vector<1x1x32xf32>
    %43 = vector.shape_cast %42 : vector<1x1x32xf32> to vector<1x32xf32>
    %cst_27 = arith.constant dense<0.000000e+00> : vector<128xf32>
    %44 = vector.multi_reduction <add>, %39, %cst_27 [1] : vector<128x32xf32> to vector<128xf32>
    %45 = vector.shape_cast %44 : vector<128xf32> to vector<128x1xf32>
    %cst_28 = arith.constant 3.200000e+01 : f32
    %46 = vector.broadcast %cst_28 : f32 to vector<128x1xf32>
    %47 = arith.divf %45, %46 : vector<128x1xf32>
    %48 = arith.mulf %39, %39 : vector<128x32xf32>
    %cst_29 = arith.constant dense<0.000000e+00> : vector<128xf32>
    %49 = vector.multi_reduction <add>, %48, %cst_29 [1] : vector<128x32xf32> to vector<128xf32>
    %50 = vector.shape_cast %49 : vector<128xf32> to vector<128x1xf32>
    %cst_30 = arith.constant 3.200000e+01 : f32
    %51 = vector.broadcast %cst_30 : f32 to vector<128x1xf32>
    %52 = arith.divf %50, %51 : vector<128x1xf32>
    %53 = arith.mulf %47, %47 : vector<128x1xf32>
    %54 = arith.subf %52, %53 : vector<128x1xf32>
    %cst_31 = arith.constant 0.000000e+00 : f32
    %55 = vector.broadcast %cst_31 : f32 to vector<128x1xf32>
    %56 = arith.maximumf %54, %55 : vector<128x1xf32>
    %57 = vector.broadcast %47 : vector<128x1xf32> to vector<128x32xf32>
    %58 = arith.subf %39, %57 : vector<128x32xf32>
    %cst_32 = arith.constant 9.99999974E-6 : f32
    %59 = vector.broadcast %cst_32 : f32 to vector<128x1xf32>
    %60 = arith.addf %56, %59 : vector<128x1xf32>
    %61 = math.rsqrt %60 : vector<128x1xf32>
    %62 = vector.broadcast %61 : vector<128x1xf32> to vector<128x32xf32>
    %63 = arith.mulf %58, %62 : vector<128x32xf32>
    %64 = vector.broadcast %41 : vector<1x32xf32> to vector<128x32xf32>
    %65 = arith.mulf %63, %64 : vector<128x32xf32>
    %66 = vector.broadcast %43 : vector<1x32xf32> to vector<128x32xf32>
    %67 = arith.addf %65, %66 : vector<128x32xf32>
    %cst_33 = arith.constant 0.000000e+00 : f32
    %68 = vector.broadcast %cst_33 : f32 to vector<128x32xf32>
    %69 = arith.maximumf %67, %68 : vector<128x32xf32>
    %70 = arith.truncf %69 : vector<128x32xf32> to vector<128x32xbf16>
    %c0_34 = arith.constant 0 : index
    %c0_35 = arith.constant 0 : index
    %c0_36 = arith.constant 0 : index
    %71 = vector.load %arg10[%c0_34, %c0_35, %c0_36] : memref<2x32x32xbf16, #tpu.memory_space<vmem>>, vector<1x32x32xbf16>
    %72 = vector.shape_cast %71 : vector<1x32x32xbf16> to vector<32x32xbf16>
    %cst_37 = arith.constant dense<0.000000e+00> : vector<128x32xf32>
    %73 = tpu.matmul %70, %72, %cst_37 {dimension_numbers = #tpu.dot_dimension_numbers<[1], [0], [0], [1], [0, 0, 1, 1], [], []>} : vector<128x32xbf16>, vector<32x32xbf16>, vector<128x32xf32> -> vector<128x32xf32>
    %c0_38 = arith.constant 0 : index
    %c0_39 = arith.constant 0 : index
    %c0_40 = arith.constant 0 : index
    %74 = vector.load %arg11[%c0_38, %c0_39, %c0_40] : memref<2x1x32xf32, #tpu.memory_space<vmem>>, vector<1x1x32xf32>
    %75 = vector.shape_cast %74 : vector<1x1x32xf32> to vector<1x32xf32>
    %76 = vector.broadcast %75 : vector<1x32xf32> to vector<128x32xf32>
    %77 = arith.addf %73, %76 : vector<128x32xf32>
    %c0_41 = arith.constant 0 : index
    %c0_42 = arith.constant 0 : index
    %c0_43 = arith.constant 0 : index
    %78 = vector.load %arg12[%c0_41, %c0_42, %c0_43] : memref<2x1x32xf32, #tpu.memory_space<vmem>>, vector<1x1x32xf32>
    %79 = vector.shape_cast %78 : vector<1x1x32xf32> to vector<1x32xf32>
    %c0_44 = arith.constant 0 : index
    %c0_45 = arith.constant 0 : index
    %c0_46 = arith.constant 0 : index
    %80 = vector.load %arg13[%c0_44, %c0_45, %c0_46] : memref<2x1x32xf32, #tpu.memory_space<vmem>>, vector<1x1x32xf32>
    %81 = vector.shape_cast %80 : vector<1x1x32xf32> to vector<1x32xf32>
    %cst_47 = arith.constant dense<0.000000e+00> : vector<128xf32>
    %82 = vector.multi_reduction <add>, %77, %cst_47 [1] : vector<128x32xf32> to vector<128xf32>
    %83 = vector.shape_cast %82 : vector<128xf32> to vector<128x1xf32>
    %cst_48 = arith.constant 3.200000e+01 : f32
    %84 = vector.broadcast %cst_48 : f32 to vector<128x1xf32>
    %85 = arith.divf %83, %84 : vector<128x1xf32>
    %86 = arith.mulf %77, %77 : vector<128x32xf32>
    %cst_49 = arith.constant dense<0.000000e+00> : vector<128xf32>
    %87 = vector.multi_reduction <add>, %86, %cst_49 [1] : vector<128x32xf32> to vector<128xf32>
    %88 = vector.shape_cast %87 : vector<128xf32> to vector<128x1xf32>
    %cst_50 = arith.constant 3.200000e+01 : f32
    %89 = vector.broadcast %cst_50 : f32 to vector<128x1xf32>
    %90 = arith.divf %88, %89 : vector<128x1xf32>
    %91 = arith.mulf %85, %85 : vector<128x1xf32>
    %92 = arith.subf %90, %91 : vector<128x1xf32>
    %cst_51 = arith.constant 0.000000e+00 : f32
    %93 = vector.broadcast %cst_51 : f32 to vector<128x1xf32>
    %94 = arith.maximumf %92, %93 : vector<128x1xf32>
    %95 = vector.broadcast %85 : vector<128x1xf32> to vector<128x32xf32>
    %96 = arith.subf %77, %95 : vector<128x32xf32>
    %cst_52 = arith.constant 9.99999974E-6 : f32
    %97 = vector.broadcast %cst_52 : f32 to vector<128x1xf32>
    %98 = arith.addf %94, %97 : vector<128x1xf32>
    %99 = math.rsqrt %98 : vector<128x1xf32>
    %100 = vector.broadcast %99 : vector<128x1xf32> to vector<128x32xf32>
    %101 = arith.mulf %96, %100 : vector<128x32xf32>
    %102 = vector.broadcast %79 : vector<1x32xf32> to vector<128x32xf32>
    %103 = arith.mulf %101, %102 : vector<128x32xf32>
    %104 = vector.broadcast %81 : vector<1x32xf32> to vector<128x32xf32>
    %105 = arith.addf %103, %104 : vector<128x32xf32>
    %cst_53 = arith.constant 0.000000e+00 : f32
    %106 = vector.broadcast %cst_53 : f32 to vector<128x32xf32>
    %107 = arith.maximumf %105, %106 : vector<128x32xf32>
    %108 = arith.truncf %107 : vector<128x32xf32> to vector<128x32xbf16>
    %c0_54 = arith.constant 0 : index
    %c0_55 = arith.constant 0 : index
    %c0_56 = arith.constant 0 : index
    %109 = vector.load %arg14[%c0_54, %c0_55, %c0_56] : memref<2x32x32xbf16, #tpu.memory_space<vmem>>, vector<1x32x32xbf16>
    %110 = vector.shape_cast %109 : vector<1x32x32xbf16> to vector<32x32xbf16>
    %cst_57 = arith.constant dense<0.000000e+00> : vector<128x32xf32>
    %111 = tpu.matmul %108, %110, %cst_57 {dimension_numbers = #tpu.dot_dimension_numbers<[1], [0], [0], [1], [0, 0, 1, 1], [], []>} : vector<128x32xbf16>, vector<32x32xbf16>, vector<128x32xf32> -> vector<128x32xf32>
    %c0_58 = arith.constant 0 : index
    %c0_59 = arith.constant 0 : index
    %c0_60 = arith.constant 0 : index
    %112 = vector.load %arg15[%c0_58, %c0_59, %c0_60] : memref<2x1x32xf32, #tpu.memory_space<vmem>>, vector<1x1x32xf32>
    %113 = vector.shape_cast %112 : vector<1x1x32xf32> to vector<1x32xf32>
    %114 = vector.broadcast %113 : vector<1x32xf32> to vector<128x32xf32>
    %115 = arith.addf %111, %114 : vector<128x32xf32>
    %116 = arith.addf %39, %115 : vector<128x32xf32>
    %c1 = arith.constant 1 : index
    %c0_61 = arith.constant 0 : index
    %c0_62 = arith.constant 0 : index
    %117 = vector.load %arg8[%c1, %c0_61, %c0_62] : memref<2x1x32xf32, #tpu.memory_space<vmem>>, vector<1x1x32xf32>
    %118 = vector.shape_cast %117 : vector<1x1x32xf32> to vector<1x32xf32>
    %c1_63 = arith.constant 1 : index
    %c0_64 = arith.constant 0 : index
    %c0_65 = arith.constant 0 : index
    %119 = vector.load %arg9[%c1_63, %c0_64, %c0_65] : memref<2x1x32xf32, #tpu.memory_space<vmem>>, vector<1x1x32xf32>
    %120 = vector.shape_cast %119 : vector<1x1x32xf32> to vector<1x32xf32>
    %cst_66 = arith.constant dense<0.000000e+00> : vector<128xf32>
    %121 = vector.multi_reduction <add>, %116, %cst_66 [1] : vector<128x32xf32> to vector<128xf32>
    %122 = vector.shape_cast %121 : vector<128xf32> to vector<128x1xf32>
    %cst_67 = arith.constant 3.200000e+01 : f32
    %123 = vector.broadcast %cst_67 : f32 to vector<128x1xf32>
    %124 = arith.divf %122, %123 : vector<128x1xf32>
    %125 = arith.mulf %116, %116 : vector<128x32xf32>
    %cst_68 = arith.constant dense<0.000000e+00> : vector<128xf32>
    %126 = vector.multi_reduction <add>, %125, %cst_68 [1] : vector<128x32xf32> to vector<128xf32>
    %127 = vector.shape_cast %126 : vector<128xf32> to vector<128x1xf32>
    %cst_69 = arith.constant 3.200000e+01 : f32
    %128 = vector.broadcast %cst_69 : f32 to vector<128x1xf32>
    %129 = arith.divf %127, %128 : vector<128x1xf32>
    %130 = arith.mulf %124, %124 : vector<128x1xf32>
    %131 = arith.subf %129, %130 : vector<128x1xf32>
    %cst_70 = arith.constant 0.000000e+00 : f32
    %132 = vector.broadcast %cst_70 : f32 to vector<128x1xf32>
    %133 = arith.maximumf %131, %132 : vector<128x1xf32>
    %134 = vector.broadcast %124 : vector<128x1xf32> to vector<128x32xf32>
    %135 = arith.subf %116, %134 : vector<128x32xf32>
    %cst_71 = arith.constant 9.99999974E-6 : f32
    %136 = vector.broadcast %cst_71 : f32 to vector<128x1xf32>
    %137 = arith.addf %133, %136 : vector<128x1xf32>
    %138 = math.rsqrt %137 : vector<128x1xf32>
    %139 = vector.broadcast %138 : vector<128x1xf32> to vector<128x32xf32>
    %140 = arith.mulf %135, %139 : vector<128x32xf32>
    %141 = vector.broadcast %118 : vector<1x32xf32> to vector<128x32xf32>
    %142 = arith.mulf %140, %141 : vector<128x32xf32>
    %143 = vector.broadcast %120 : vector<1x32xf32> to vector<128x32xf32>
    %144 = arith.addf %142, %143 : vector<128x32xf32>
    %cst_72 = arith.constant 0.000000e+00 : f32
    %145 = vector.broadcast %cst_72 : f32 to vector<128x32xf32>
    %146 = arith.maximumf %144, %145 : vector<128x32xf32>
    %147 = arith.truncf %146 : vector<128x32xf32> to vector<128x32xbf16>
    %c1_73 = arith.constant 1 : index
    %c0_74 = arith.constant 0 : index
    %c0_75 = arith.constant 0 : index
    %148 = vector.load %arg10[%c1_73, %c0_74, %c0_75] : memref<2x32x32xbf16, #tpu.memory_space<vmem>>, vector<1x32x32xbf16>
    %149 = vector.shape_cast %148 : vector<1x32x32xbf16> to vector<32x32xbf16>
    %cst_76 = arith.constant dense<0.000000e+00> : vector<128x32xf32>
    %150 = tpu.matmul %147, %149, %cst_76 {dimension_numbers = #tpu.dot_dimension_numbers<[1], [0], [0], [1], [0, 0, 1, 1], [], []>} : vector<128x32xbf16>, vector<32x32xbf16>, vector<128x32xf32> -> vector<128x32xf32>
    %c1_77 = arith.constant 1 : index
    %c0_78 = arith.constant 0 : index
    %c0_79 = arith.constant 0 : index
    %151 = vector.load %arg11[%c1_77, %c0_78, %c0_79] : memref<2x1x32xf32, #tpu.memory_space<vmem>>, vector<1x1x32xf32>
    %152 = vector.shape_cast %151 : vector<1x1x32xf32> to vector<1x32xf32>
    %153 = vector.broadcast %152 : vector<1x32xf32> to vector<128x32xf32>
    %154 = arith.addf %150, %153 : vector<128x32xf32>
    %c1_80 = arith.constant 1 : index
    %c0_81 = arith.constant 0 : index
    %c0_82 = arith.constant 0 : index
    %155 = vector.load %arg12[%c1_80, %c0_81, %c0_82] : memref<2x1x32xf32, #tpu.memory_space<vmem>>, vector<1x1x32xf32>
    %156 = vector.shape_cast %155 : vector<1x1x32xf32> to vector<1x32xf32>
    %c1_83 = arith.constant 1 : index
    %c0_84 = arith.constant 0 : index
    %c0_85 = arith.constant 0 : index
    %157 = vector.load %arg13[%c1_83, %c0_84, %c0_85] : memref<2x1x32xf32, #tpu.memory_space<vmem>>, vector<1x1x32xf32>
    %158 = vector.shape_cast %157 : vector<1x1x32xf32> to vector<1x32xf32>
    %cst_86 = arith.constant dense<0.000000e+00> : vector<128xf32>
    %159 = vector.multi_reduction <add>, %154, %cst_86 [1] : vector<128x32xf32> to vector<128xf32>
    %160 = vector.shape_cast %159 : vector<128xf32> to vector<128x1xf32>
    %cst_87 = arith.constant 3.200000e+01 : f32
    %161 = vector.broadcast %cst_87 : f32 to vector<128x1xf32>
    %162 = arith.divf %160, %161 : vector<128x1xf32>
    %163 = arith.mulf %154, %154 : vector<128x32xf32>
    %cst_88 = arith.constant dense<0.000000e+00> : vector<128xf32>
    %164 = vector.multi_reduction <add>, %163, %cst_88 [1] : vector<128x32xf32> to vector<128xf32>
    %165 = vector.shape_cast %164 : vector<128xf32> to vector<128x1xf32>
    %cst_89 = arith.constant 3.200000e+01 : f32
    %166 = vector.broadcast %cst_89 : f32 to vector<128x1xf32>
    %167 = arith.divf %165, %166 : vector<128x1xf32>
    %168 = arith.mulf %162, %162 : vector<128x1xf32>
    %169 = arith.subf %167, %168 : vector<128x1xf32>
    %cst_90 = arith.constant 0.000000e+00 : f32
    %170 = vector.broadcast %cst_90 : f32 to vector<128x1xf32>
    %171 = arith.maximumf %169, %170 : vector<128x1xf32>
    %172 = vector.broadcast %162 : vector<128x1xf32> to vector<128x32xf32>
    %173 = arith.subf %154, %172 : vector<128x32xf32>
    %cst_91 = arith.constant 9.99999974E-6 : f32
    %174 = vector.broadcast %cst_91 : f32 to vector<128x1xf32>
    %175 = arith.addf %171, %174 : vector<128x1xf32>
    %176 = math.rsqrt %175 : vector<128x1xf32>
    %177 = vector.broadcast %176 : vector<128x1xf32> to vector<128x32xf32>
    %178 = arith.mulf %173, %177 : vector<128x32xf32>
    %179 = vector.broadcast %156 : vector<1x32xf32> to vector<128x32xf32>
    %180 = arith.mulf %178, %179 : vector<128x32xf32>
    %181 = vector.broadcast %158 : vector<1x32xf32> to vector<128x32xf32>
    %182 = arith.addf %180, %181 : vector<128x32xf32>
    %cst_92 = arith.constant 0.000000e+00 : f32
    %183 = vector.broadcast %cst_92 : f32 to vector<128x32xf32>
    %184 = arith.maximumf %182, %183 : vector<128x32xf32>
    %185 = arith.truncf %184 : vector<128x32xf32> to vector<128x32xbf16>
    %c1_93 = arith.constant 1 : index
    %c0_94 = arith.constant 0 : index
    %c0_95 = arith.constant 0 : index
    %186 = vector.load %arg14[%c1_93, %c0_94, %c0_95] : memref<2x32x32xbf16, #tpu.memory_space<vmem>>, vector<1x32x32xbf16>
    %187 = vector.shape_cast %186 : vector<1x32x32xbf16> to vector<32x32xbf16>
    %cst_96 = arith.constant dense<0.000000e+00> : vector<128x32xf32>
    %188 = tpu.matmul %185, %187, %cst_96 {dimension_numbers = #tpu.dot_dimension_numbers<[1], [0], [0], [1], [0, 0, 1, 1], [], []>} : vector<128x32xbf16>, vector<32x32xbf16>, vector<128x32xf32> -> vector<128x32xf32>
    %c1_97 = arith.constant 1 : index
    %c0_98 = arith.constant 0 : index
    %c0_99 = arith.constant 0 : index
    %189 = vector.load %arg15[%c1_97, %c0_98, %c0_99] : memref<2x1x32xf32, #tpu.memory_space<vmem>>, vector<1x1x32xf32>
    %190 = vector.shape_cast %189 : vector<1x1x32xf32> to vector<1x32xf32>
    %191 = vector.broadcast %190 : vector<1x32xf32> to vector<128x32xf32>
    %192 = arith.addf %188, %191 : vector<128x32xf32>
    %193 = arith.addf %116, %192 : vector<128x32xf32>
    %c0_100 = arith.constant 0 : index
    %c0_101 = arith.constant 0 : index
    %194 = vector.load %arg16[%c0_100, %c0_101] : memref<128x32xf32, #tpu.memory_space<vmem>>, vector<128x32xf32>
    tpu.vector_store %arg16[%c0_100, %c0_101], %193 {strides = array<i32>} : memref<128x32xf32, #tpu.memory_space<vmem>>, vector<128x32xf32>,
    return
  }
  func.func @transform_0(%arg0: i32) -> (i32, i32) {
    %c0_i32 = arith.constant 0 : i32
    %c0_i32_0 = arith.constant 0 : i32
    return %arg0, %c0_i32 : i32, i32
  }
  func.func @transform_1(%arg0: i32) -> (i32, i32) {
    %c0_i32 = arith.constant 0 : i32
    %c0_i32_0 = arith.constant 0 : i32
    return %arg0, %c0_i32 : i32, i32
  }
  func.func @transform_2(%arg0: i32) -> (i32, i32) {
    %c0_i32 = arith.constant 0 : i32
    %c0_i32_0 = arith.constant 0 : i32
    %c0_i32_1 = arith.constant 0 : i32
    return %c0_i32, %c0_i32_0 : i32, i32
  }
  func.func @transform_3(%arg0: i32) -> (i32, i32) {
    %c0_i32 = arith.constant 0 : i32
    %c0_i32_0 = arith.constant 0 : i32
    %c0_i32_1 = arith.constant 0 : i32
    return %c0_i32, %c0_i32_0 : i32, i32
  }
  func.func @transform_4(%arg0: i32) -> (i32, i32) {
    %c0_i32 = arith.constant 0 : i32
    %c0_i32_0 = arith.constant 0 : i32
    %c0_i32_1 = arith.constant 0 : i32
    return %c0_i32, %c0_i32_0 : i32, i32
  }
  func.func @transform_5(%arg0: i32) -> (i32, i32) {
    %c0_i32 = arith.constant 0 : i32
    %c0_i32_0 = arith.constant 0 : i32
    %c0_i32_1 = arith.constant 0 : i32
    return %c0_i32, %c0_i32_0 : i32, i32
  }
  func.func @transform_6(%arg0: i32) -> (i32, i32) {
    %c0_i32 = arith.constant 0 : i32
    %c0_i32_0 = arith.constant 0 : i32
    %c0_i32_1 = arith.constant 0 : i32
    return %c0_i32, %c0_i32_0 : i32, i32
  }
  func.func @transform_7(%arg0: i32) -> (i32, i32, i32) {
    %c0_i32 = arith.constant 0 : i32
    %c0_i32_0 = arith.constant 0 : i32
    %c0_i32_1 = arith.constant 0 : i32
    %c0_i32_2 = arith.constant 0 : i32
    return %c0_i32, %c0_i32_0, %c0_i32_1 : i32, i32, i32
  }
  func.func @transform_8(%arg0: i32) -> (i32, i32, i32) {
    %c0_i32 = arith.constant 0 : i32
    %c0_i32_0 = arith.constant 0 : i32
    %c0_i32_1 = arith.constant 0 : i32
    %c0_i32_2 = arith.constant 0 : i32
    return %c0_i32, %c0_i32_0, %c0_i32_1 : i32, i32, i32
  }
  func.func @transform_9(%arg0: i32) -> (i32, i32, i32) {
    %c0_i32 = arith.constant 0 : i32
    %c0_i32_0 = arith.constant 0 : i32
    %c0_i32_1 = arith.constant 0 : i32
    %c0_i32_2 = arith.constant 0 : i32
    return %c0_i32, %c0_i32_0, %c0_i32_1 : i32, i32, i32
  }
  func.func @transform_10(%arg0: i32) -> (i32, i32, i32) {
    %c0_i32 = arith.constant 0 : i32
    %c0_i32_0 = arith.constant 0 : i32
    %c0_i32_1 = arith.constant 0 : i32
    %c0_i32_2 = arith.constant 0 : i32
    return %c0_i32, %c0_i32_0, %c0_i32_1 : i32, i32, i32
  }
  func.func @transform_11(%arg0: i32) -> (i32, i32, i32) {
    %c0_i32 = arith.constant 0 : i32
    %c0_i32_0 = arith.constant 0 : i32
    %c0_i32_1 = arith.constant 0 : i32
    %c0_i32_2 = arith.constant 0 : i32
    return %c0_i32, %c0_i32_0, %c0_i32_1 : i32, i32, i32
  }
  func.func @transform_12(%arg0: i32) -> (i32, i32, i32) {
    %c0_i32 = arith.constant 0 : i32
    %c0_i32_0 = arith.constant 0 : i32
    %c0_i32_1 = arith.constant 0 : i32
    %c0_i32_2 = arith.constant 0 : i32
    return %c0_i32, %c0_i32_0, %c0_i32_1 : i32, i32, i32
  }
  func.func @transform_13(%arg0: i32) -> (i32, i32, i32) {
    %c0_i32 = arith.constant 0 : i32
    %c0_i32_0 = arith.constant 0 : i32
    %c0_i32_1 = arith.constant 0 : i32
    %c0_i32_2 = arith.constant 0 : i32
    return %c0_i32, %c0_i32_0, %c0_i32_1 : i32, i32, i32
  }
  func.func @transform_14(%arg0: i32) -> (i32, i32, i32) {
    %c0_i32 = arith.constant 0 : i32
    %c0_i32_0 = arith.constant 0 : i32
    %c0_i32_1 = arith.constant 0 : i32
    %c0_i32_2 = arith.constant 0 : i32
    return %c0_i32, %c0_i32_0, %c0_i32_1 : i32, i32, i32
  }
  func.func @transform_15(%arg0: i32) -> (i32, i32) {
    %c0_i32 = arith.constant 0 : i32
    %c0_i32_0 = arith.constant 0 : i32
    return %arg0, %c0_i32 : i32, i32
  }
}

</mosaic_0001>

<bundles_post_ra>
// kernel: tpu_custom_call.1
= control target key start
LH: loop header
LB: loop body
LE: loop exit
PB: predicated region body
PF: predicated region fallthrough
CT: control target
= control target key end

     0   :  { %s3724_s18 = smov 0   ;;  %s5249_s0 = inlined_call_operand.vmem [shape: f32[256,32], index: 0, kind: input, shape index: {}]   ;;  %s5250_s1 = inlined_call_operand.vmem [shape: f32[256,8], index: 1, kind: input, shape index: {}]   ;;  %s5251_s2 = inlined_call_operand.vmem [shape: bf16[32,32], index: 2, kind: input, shape index: {}]   ;;  %s5252_s3 = inlined_call_operand.vmem [shape: bf16[8,32], index: 3, kind: input, shape index: {}]   ;;  %s5253_s4 = inlined_call_operand.vmem [shape: f32[1,32], index: 4, kind: input, shape index: {}]   ;;  %s5254_s5 = inlined_call_operand.vmem [shape: f32[1,32], index: 5, kind: input, shape index: {}]   ;;  %s5255_s6 = inlined_call_operand.vmem [shape: f32[1,32], index: 6, kind: input, shape index: {}]   ;;  %s5256_s7 = inlined_call_operand.vmem [shape: f32[2,1,32], index: 7, kind: input, shape index: {}]   ;;  %s5257_s8 = inlined_call_operand.vmem [shape: f32[2,1,32], index: 8, kind: input, shape index: {}]   ;;  %s5258_s9 = inlined_call_operand.vmem [shape: bf16[2,32,32], index: 9, kind: input, shape index: {}]   ;;  %s5259_s10 = inlined_call_operand.vmem [shape: f32[2,1,32], index: 10, kind: input, shape index: {}]   ;;  %s5260_s11 = inlined_call_operand.vmem [shape: f32[2,1,32], index: 11, kind: input, shape index: {}]   ;;  %s5261_s12 = inlined_call_operand.vmem [shape: f32[2,1,32], index: 12, kind: input, shape index: {}]   ;;  %s5262_s13 = inlined_call_operand.vmem [shape: bf16[2,32,32], index: 13, kind: input, shape index: {}]   ;;  %s5263_s14 = inlined_call_operand.vmem [shape: f32[2,1,32], index: 14, kind: input, shape index: {}]   ;;  %s5264_s15 = inlined_call_operand.vmem [shape: f32[256,32], index: 15, kind: output, shape index: {}]  }
   0x1 LB: > { %s3180_s19 = sadd.s32 4294967295, %s3642_s18   ;;  %p3184_p0 = scmp.ge.s32.totalorder %s3642_s18, 1  ;;  %s3642_s18 = sphi %s3724_s18, %s25_s18  }
   0x2   : > { %p449_p1 = scmp.lt.s32.totalorder %s3642_s18, 3 }
   0x4   : > { %p450_p2 = pnand %p3184_p0, %p449_p1 }
   0x5   : > { %s3185_s26 = sshll.u32 (!%p450_p2), %s3180_s19, 4 }
   0x6   : > { %453 = sbr.rel (%p450_p2) target bundleno = 1985 (0x7c1), region = 80  ;;  %p503_p3 = scmp.lt.s32.totalorder (!%p450_p2), %s3185_s26, 31 }
   0xb   : > { %v3466_v0 = vld [vmem:[%s5251_s2 + $0x8] sm:$0xff]   ;;  %vm599_vm0 = vcmask 1043456   ;;  %v573_v1 = vld [vmem:[%s5252_s3] sm:$0xf]  ;;  %s5266_s26 = smov (!%p503_p3, %s3185_s26), 31  ;;  %vm574_vm1 = vcmask 64512  }
   0xc   : > { %3357 = vmatprep.subr.bf16.mxu1 %v3466_v0  ;;  %3457 = vmatprep.subr.msk.bf16.mxu0 %vm599_vm0, %v573_v1  ;;  %v3467_v2 = vld [vmem:[%s5251_s2] sm:$0xff]   ;;  %v601_v3 = vsel %vm599_vm0, %v573_v1, 0  ;;  %s3741_s27 = sshll.u32 %s5266_s26, 3  ;;  %vm712_vm2 = vcmask 261120  }
   0xd   : > { %3358 = vmatpush3.bf16.msra.mxu1 %v3466_v0  ;;  %3340 = vmatpush3.bf16.msra.mxu0 %v601_v3  ;;  %s3747_s30 = scalar_lea.vmem %s5250_s1, %s3741_s27  ;;  %s3753_s19 = scalar_lea.vmem %s5249_s0, %s3741_s27  ;;  %v3806_v54 = vld [vmem:[%s5253_s4] ss:$0 sm:$0xff] }
   0xe   : > { %3359 = vmatprep.subr.bf16.mxu1 %v3467_v2  ;;  %v545_v4 = vld [vmem:[%s3747_s30] sm:$0xff]  ;;  %v546_v5 = vld [vmem:[%s3747_s30 + $0x8] sm:$0xff]  ;;  %v547_v9 = vld [vmem:[%s3747_s30 + $0x10] sm:$0xff] }
   0xf   : > { %v521_v6 = vld [vmem:[%s3753_s19] sm:$0xff]  ;;  %v561_v7 = vpack.c.bf16 %v546_v5, %v545_v4  ;;  %v522_v8 = vld [vmem:[%s3753_s19 + $0x8] sm:$0xff]  ;;  %v548_v10 = vld [vmem:[%s3747_s30 + $0x18] sm:$0xff] }
  0x10   : > { %v537_v11 = vpack.c.bf16 %v522_v8, %v521_v6  ;;  %v562_v12 = vpack.c.bf16 %v548_v10, %v547_v9  ;;  %v523_v13 = vld [vmem:[%s3753_s19 + $0x10] sm:$0xff]  ;;  %v524_v14 = vld [vmem:[%s3753_s19 + $0x18] sm:$0xff]  ;;  %v549_v15 = vld [vmem:[%s3747_s30 + $0x20] sm:$0xff] }
  0x11   : > { %3360 = vmatpush3.bf16.msra.mxu1 %v3467_v2  ;;  %3341 = vmatprep.mubr.msk.bf16.mxu0 %vm574_vm1, %v561_v7  ;;  %v538_v16 = vpack.c.bf16 %v524_v14, %v523_v13  ;;  %v550_v17 = vld [vmem:[%s3747_s30 + $0x28] sm:$0xff]  ;;  %v525_v18 = vld [vmem:[%s3753_s19 + $0x20] sm:$0xff]  ;;  %v551_v22 = vld [vmem:[%s3747_s30 + $0x30] sm:$0xff] }
  0x12   : > { %v526_v19 = vld [vmem:[%s3753_s19 + $0x28] sm:$0xff]  ;;  %3361 = vmatprep.mubr.msk.bf16.mxu1 %vm712_vm2, %v537_v11  ;;  %3342 = vmatmul.mubr.msk.bf16.vlgmr.msra.gmra.mxu0 %vm574_vm1, %v562_v12  ;;  %v563_v20 = vpack.c.bf16 %v550_v17, %v549_v15  ;;  %v552_v23 = vld [vmem:[%s3747_s30 + $0x38] sm:$0xff]  ;;  %v527_v24 = vld [vmem:[%s3753_s19 + $0x30] sm:$0xff] }
  0x13   : > { %v539_v21 = vpack.c.bf16 %v526_v19, %v525_v18  ;;  %v528_v25 = vld [vmem:[%s3753_s19 + $0x38] sm:$0xff]  ;;  %v553_v26 = vld [vmem:[%s3747_s30 + $0x40] sm:$0xff]  ;;  %v554_v27 = vld [vmem:[%s3747_s30 + $0x48] sm:$0xff]  ;;  %v564_v30 = vpack.c.bf16 %v552_v23, %v551_v22 }
  0x14   : > { %3362 = vmatmul.mubr.msk.bf16.vlgmr.msra.gmra.mxu1 %vm712_vm2, %v538_v16  ;;  %3345 = vmatprep.mubr.msk.bf16.mxu0 %vm574_vm1, %v563_v20  ;;  %v529_v28 = vld [vmem:[%s3753_s19 + $0x40] sm:$0xff]  ;;  %v530_v29 = vld [vmem:[%s3753_s19 + $0x48] sm:$0xff]  ;;  %v540_v31 = vpack.c.bf16 %v528_v25, %v527_v24  ;;  %v565_v32 = vpack.c.bf16 %v554_v27, %v553_v26  ;;  %v555_v34 = vld [vmem:[%s3747_s30 + $0x50] sm:$0xff] }
  0x15   : > { %3365 = vmatprep.mubr.msk.bf16.mxu1 %vm712_vm2, %v539_v21  ;;  %v541_v33 = vpack.c.bf16 %v530_v29, %v529_v28  ;;  %v556_v35 = vld [vmem:[%s3747_s30 + $0x58] sm:$0xff]  ;;  %v531_v36 = vld [vmem:[%s3753_s19 + $0x50] sm:$0xff]  ;;  %v557_v38 = vld [vmem:[%s3747_s30 + $0x60] sm:$0xff] }
  0x16   : > { %v532_v37 = vld [vmem:[%s3753_s19 + $0x58] sm:$0xff]  ;;  %v558_v39 = vld [vmem:[%s3747_s30 + $0x68] sm:$0xff]  ;;  %v533_v40 = vld [vmem:[%s3753_s19 + $0x60] sm:$0xff]  ;;  %v566_v42 = vpack.c.bf16 %v556_v35, %v555_v34 }
  0x17   : > { %v534_v41 = vld [vmem:[%s3753_s19 + $0x68] sm:$0xff]  ;;  %v542_v43 = vpack.c.bf16 %v532_v37, %v531_v36  ;;  %v567_v44 = vpack.c.bf16 %v558_v39, %v557_v38  ;;  %v559_v46 = vld [vmem:[%s3747_s30 + $0x70] sm:$0xff]  ;;  %v560_v47 = vld [vmem:[%s3747_s30 + $0x78] sm:$0xff]  ;;  %s5196_s30 = scalar_lea.vmem %s5264_s15, %s3741_s27 }
  0x18   : > { %v543_v45 = vpack.c.bf16 %v534_v41, %v533_v40  ;;  %v535_v48 = vld [vmem:[%s3753_s19 + $0x70] sm:$0xff]  ;;  %v536_v49 = vld [vmem:[%s3753_s19 + $0x78] sm:$0xff]  ;;  %v568_v50 = vpack.c.bf16 %v560_v47, %v559_v46 }
  0x19   : > { %v544_v51 = vpack.c.bf16 %v536_v49, %v535_v48 }
  0x1a   : > { %3346 = vmatmul.mubr.msk.bf16.gmra.mxu0 %vm574_vm1, %v564_v30 }
  0x1b   : > { %3349 = vmatprep.mubr.msk.bf16.mxu0 %vm574_vm1, %v565_v32 }
  0x1c   : > { %3366 = vmatmul.mubr.msk.bf16.gmra.mxu1 %vm712_vm2, %v540_v31 }
  0x1d   : > { %3369 = vmatprep.mubr.msk.bf16.mxu1 %vm712_vm2, %v541_v33 }
  0x22   : > { %3350 = vmatmul.mubr.msk.bf16.gmra.mxu0 %vm574_vm1, %v566_v42 }
  0x23   : > { %3353 = vmatprep.mubr.msk.bf16.mxu0 %vm574_vm1, %v567_v44 }
  0x24   : > { %3370 = vmatmul.mubr.msk.bf16.gmra.mxu1 %vm712_vm2, %v542_v43 }
  0x25   : > { %3373 = vmatprep.mubr.msk.bf16.mxu1 %vm712_vm2, %v543_v45 }
  0x2a   : > { %3354 = vmatmul.mubr.msk.bf16.gmra.mxu0 %vm574_vm1, %v568_v50 }
  0x2c   : > { %3374 = vmatmul.mubr.msk.bf16.gmra.mxu1 %vm712_vm2, %v544_v51 }
  0xd2   : > { %v3343_v52 = vpop.f32.mrf.mxu0 }
  0xd4   : > { %v3363_v53 = vpop.f32.mrf.mxu1  ;;  %v637_v56 = vpop.f32.mrf.mxu0 }
  0xd5   : > { %v780_v55 = vadd.f32 %v3363_v53, %v3343_v52 }
  0xd6   : > { %v771_v57 = vpop.f32.mrf.mxu1  ;;  %v3344_v60 = vpop.f32.mrf.mxu0 }
  0xd7   : > { %v3809_v58 = vadd.f32 %v3806_v54, %v780_v55  ;;  %v772_v59 = vadd.f32 %v771_v57, %v637_v56 }
  0xd8   : > { %v3364_v61 = vpop.f32.mrf.mxu1  ;;  %v640_v0 = vpop.f32.mrf.mxu0 }
  0xd9   : > { %v3812_v62 = vadd.f32 %v3806_v54, %v772_v59  ;;  %v783_v63 = vadd.f32 %v3364_v61, %v3344_v60  ;;  %v865_v1 = vsel %vm712_vm2, %v3809_v58, 0.0  ;;  %v926_v7 = vmul.f32 %v3809_v58, %v3809_v58 }
  0xda   : > { %866 = vadd.xlane.f32.xlu1 %v865_v1  ;;  %v774_v2 = vpop.f32.mrf.mxu1  ;;  %v3347_v6 = vpop.f32.mrf.mxu0 }
  0xdb   : > { %v3817_v3 = vadd.f32 %v3806_v54, %v783_v63  ;;  %v775_v4 = vadd.f32 %v774_v2, %v640_v0  ;;  %v859_v5 = vsel %vm712_vm2, %v3812_v62, 0.0  ;;  %v946_v14 = vsel %vm712_vm2, %v926_v7, 0.0 }
  0xdc   : > { %860 = vadd.xlane.f32.xlu0 %v859_v5  ;;  %v3367_v8 = vpop.f32.mrf.mxu1  ;;  %v653_v11 = vpop.f32.mrf.mxu0  ;;  %v924_v16 = vmul.f32 %v3812_v62, %v3812_v62 }
  0xdd   : > { %v3824_v9 = vadd.f32 %v3806_v54, %v775_v4  ;;  %v868_v10 = vsel %vm712_vm2, %v3817_v3, 0.0  ;;  %v927_v12 = vmul.f32 %v3817_v3, %v3817_v3  ;;  %v796_v23 = vadd.f32 %v3367_v8, %v3347_v6 }
  0xde   : > { %869 = vadd.xlane.f32.xlu1 %v868_v10  ;;  %v787_v13 = vpop.f32.mrf.mxu1  ;;  %v3348_v15 = vpop.f32.mrf.mxu0  ;;  %v940_v25 = vsel %vm712_vm2, %v924_v16, 0.0 }
  0xdf   : > { %v949_v19 = vsel %vm712_vm2, %v927_v12, 0.0  ;;  %v925_v20 = vmul.f32 %v3824_v9, %v3824_v9  ;;  %v3842_v30 = vadd.f32 %v3806_v54, %v796_v23  ;;  %v788_v31 = vadd.f32 %v787_v13, %v653_v11 }
  0xe0   : > { %947 = vadd.xlane.f32.xlu0 %v946_v14  ;;  %v3368_v17 = vpop.f32.mrf.mxu1  ;;  %v656_v21 = vpop.f32.mrf.mxu0  ;;  %v862_v32 = vsel %vm712_vm2, %v3824_v9, 0.0 }
  0xe1   : > { %v799_v18 = vadd.f32 %v3368_v17, %v3348_v15  ;;  %v943_v27 = vsel %vm712_vm2, %v925_v20, 0.0  ;;  %v3852_v37 = vadd.f32 %v3806_v54, %v788_v31  ;;  %v877_v38 = vsel %vm712_vm2, %v3842_v30, 0.0 }
  0xe2   : > { %950 = vadd.xlane.f32.xlu1 %v949_v19  ;;  %v790_v22 = vpop.f32.mrf.mxu1  ;;  %v3351_v28 = vpop.f32.mrf.mxu0  ;;  %v930_v45 = vmul.f32 %v3842_v30, %v3842_v30 }
  0xe3   : > { %v3837_v24 = vadd.f32 %v3806_v54, %v799_v18  ;;  %v791_v26 = vadd.f32 %v790_v22, %v656_v21  ;;  %v871_v43 = vsel %vm712_vm2, %v3852_v37, 0.0  ;;  %v928_v53 = vmul.f32 %v3852_v37, %v3852_v37 }
  0xe4   : > { %941 = vadd.xlane.f32.xlu0 %v940_v25  ;;  %v3371_v29 = vpop.f32.mrf.mxu1  ;;  %v669_v35 = vpop.f32.mrf.mxu0  ;;  %v958_v52 = vsel %vm712_vm2, %v930_v45, 0.0 }
  0xe5   : > { %v880_v33 = vsel %vm712_vm2, %v3837_v24, 0.0  ;;  %v3849_v34 = vadd.f32 %v3806_v54, %v791_v26  ;;  %v931_v40 = vmul.f32 %v3837_v24, %v3837_v24  ;;  %v812_v50 = vadd.f32 %v3371_v29, %v3351_v28 }
  0xe6   : > { %944 = vadd.xlane.f32.xlu1 %v943_v27  ;;  %v803_v36 = vpop.f32.mrf.mxu1  ;;  %v3352_v41 = vpop.f32.mrf.mxu0  ;;  %v952_v63 = vsel %vm712_vm2, %v928_v53, 0.0 }
  0xe7   : > { %v874_v39 = vsel %vm712_vm2, %v3849_v34, 0.0  ;;  %v961_v46 = vsel %vm712_vm2, %v931_v40, 0.0  ;;  %v929_v47 = vmul.f32 %v3849_v34, %v3849_v34  ;;  %v3875_v60 = vadd.f32 %v3806_v54, %v812_v50 }
  0xe8   : > { %863 = vadd.xlane.f32.xlu0 %v862_v32  ;;  %v3372_v42 = vpop.f32.mrf.mxu1  ;;  %v672_v48 = vpop.f32.mrf.mxu0  ;;  %v804_v61 = vadd.f32 %v803_v36, %v669_v35 }
  0xe9   : > { %v815_v44 = vadd.f32 %v3372_v42, %v3352_v41  ;;  %v955_v56 = vsel %vm712_vm2, %v929_v47, 0.0  ;;  %v889_v6 = vsel %vm712_vm2, %v3875_v60, 0.0  ;;  %v934_v14 = vmul.f32 %v3875_v60, %v3875_v60 }
  0xea   : > { %881 = vadd.xlane.f32.xlu1 %v880_v33  ;;  %v806_v49 = vpop.f32.mrf.mxu1  ;;  %v3355_v57 = vpop.f32.mrf.mxu0  ;;  %v3884_v5 = vadd.f32 %v3806_v54, %v804_v61 }
  0xeb   : > { %v3868_v51 = vadd.f32 %v3806_v54, %v815_v44  ;;  %v807_v55 = vadd.f32 %v806_v49, %v672_v48  ;;  %v970_v21 = vsel %vm712_vm2, %v934_v14, 0.0 }
  0xec   : > { %878 = vadd.xlane.f32.xlu0 %v877_v38  ;;  %v3375_v59 = vpop.f32.mrf.mxu1  ;;  %v685_v2 = vpop.f32.mrf.mxu0  ;;  %v883_v12 = vsel %vm712_vm2, %v3884_v5, 0.0  ;;  %v932_v22 = vmul.f32 %v3884_v5, %v3884_v5 }
  0xed   : > { %v892_v0 = vsel %vm712_vm2, %v3868_v51, 0.0  ;;  %v3881_v1 = vadd.f32 %v3806_v54, %v807_v55  ;;  %v935_v8 = vmul.f32 %v3868_v51, %v3868_v51  ;;  %v828_v19 = vadd.f32 %v3375_v59, %v3355_v57 }
  0xee   : > { %875 = vadd.xlane.f32.xlu1 %v874_v39  ;;  %v819_v4 = vpop.f32.mrf.mxu1  ;;  %v3356_v10 = vpop.f32.mrf.mxu0  ;;  %v964_v28 = vsel %vm712_vm2, %v932_v22, 0.0 }
  0xef   : > { %v886_v7 = vsel %vm712_vm2, %v3881_v1, 0.0  ;;  %v973_v15 = vsel %vm712_vm2, %v935_v8, 0.0  ;;  %v933_v16 = vmul.f32 %v3881_v1, %v3881_v1  ;;  %v3907_v26 = vadd.f32 %v3806_v54, %v828_v19 }
  0xf0   : > { %872 = vadd.xlane.f32.xlu0 %v871_v43  ;;  %v3376_v11 = vpop.f32.mrf.mxu1  ;;  %v688_v17 = vpop.f32.mrf.mxu0  ;;  %v820_v27 = vadd.f32 %v819_v4, %v685_v2 }
  0xf1   : > { %v831_v13 = vadd.f32 %v3376_v11, %v3356_v10  ;;  %v967_v25 = vsel %vm712_vm2, %v933_v16, 0.0  ;;  %v901_v33 = vsel %vm712_vm2, %v3907_v26, 0.0  ;;  %v938_v42 = vmul.f32 %v3907_v26, %v3907_v26 }
  0xf2   : > { %962 = vadd.xlane.f32.xlu1 %v961_v46  ;;  %v822_v18 = vpop.f32.mrf.mxu1  ;;  %v3916_v32 = vadd.f32 %v3806_v54, %v820_v27 }
  0xf3   : > { %v3900_v20 = vadd.f32 %v3806_v54, %v831_v13  ;;  %v823_v23 = vadd.f32 %v822_v18, %v688_v17  ;;  %v982_v44 = vsel %vm712_vm2, %v938_v42, 0.0 }
  0xf4   : > { %959 = vadd.xlane.f32.xlu0 %v958_v52  ;;  %v895_v38 = vsel %vm712_vm2, %v3916_v32, 0.0  ;;  %v936_v39 = vmul.f32 %v3916_v32, %v3916_v32 }
  0xf5   : > { %v904_v29 = vsel %vm712_vm2, %v3900_v20, 0.0  ;;  %v3913_v31 = vadd.f32 %v3806_v54, %v823_v23  ;;  %v939_v40 = vmul.f32 %v3900_v20, %v3900_v20 }
  0xf6   : > { %956 = vadd.xlane.f32.xlu1 %v955_v56  ;;  %v976_v41 = vsel %vm712_vm2, %v936_v39, 0.0 }
  0xf7   : > { %v898_v35 = vsel %vm712_vm2, %v3913_v31, 0.0  ;;  %v937_v36 = vmul.f32 %v3913_v31, %v3913_v31  ;;  %v985_v43 = vsel %vm712_vm2, %v939_v40, 0.0 }
  0xf8   : > { %953 = vadd.xlane.f32.xlu0 %v952_v63 }
  0xf9   : > { %v979_v54 = vsel %vm712_vm2, %v937_v36, 0.0 }
  0xfa   : > { %893 = vadd.xlane.f32.xlu1 %v892_v0 }
  0xfc   : > { %890 = vadd.xlane.f32.xlu0 %v889_v6 }
  0xfe   : > { %887 = vadd.xlane.f32.xlu1 %v886_v7 }
 0x100   : > { %884 = vadd.xlane.f32.xlu0 %v883_v12 }
 0x102   : > { %974 = vadd.xlane.f32.xlu1 %v973_v15 }
 0x104   : > { %971 = vadd.xlane.f32.xlu0 %v970_v21 }
 0x106   : > { %968 = vadd.xlane.f32.xlu1 %v967_v25 }
 0x108   : > { %965 = vadd.xlane.f32.xlu0 %v964_v28 }
 0x10a   : > { %905 = vadd.xlane.f32.xlu1 %v904_v29 }
 0x10c   : > { %902 = vadd.xlane.f32.xlu0 %v901_v33 }
 0x10e   : > { %899 = vadd.xlane.f32.xlu1 %v898_v35 }
 0x110   : > { %896 = vadd.xlane.f32.xlu0 %v895_v38 }
 0x112   : > { %980 = vadd.xlane.f32.xlu1 %v979_v54 }
 0x114   : > { %977 = vadd.xlane.f32.xlu0 %v976_v41 }
 0x116   : > { %986 = vadd.xlane.f32.xlu1 %v985_v43 }
 0x118   : > { %983 = vadd.xlane.f32.xlu0 %v982_v44 }
 0x163   : > { %v867_v45 = vpop.xlane.xlu1 %866 }
 0x164   : > { %v910_v47 = vmul.f32 0.03125, %v867_v45 }
 0x165   : > { %v861_v46 = vpop.xlane.xlu0 %860 }
 0x166   : > { %v1006_v52 = vmul.f32 %v910_v47, %v910_v47  ;;  %v3938_v53 = vmul.f32 0.03125, %v861_v46  ;;  %v1054_v41 = vsub.f32 %v3809_v58, %v910_v47 }
 0x167   : > { %v870_v48 = vpop.xlane.xlu1 %869 }
 0x168   : > { %v3936_v49 = vmul.f32 0.03125, %v870_v48  ;;  %v1004_v0 = vmul.f32 %v3938_v53, %v3938_v53 }
 0x169   : > { %v948_v50 = vpop.xlane.xlu0 %947 }
 0x16a   : > { %v990_v55 = vmul.f32 0.03125, %v948_v50  ;;  %v1007_v57 = vmul.f32 %v3936_v49, %v3936_v49  ;;  %v3966_v50 = vld [vmem:[%s5254_s5] ss:$0 sm:$0xff]  ;;  %v1055_v47 = vsub.f32 %v3817_v3, %v3936_v49 }
 0x16b   : > { %v951_v56 = vpop.xlane.xlu1 %950 }
 0x16c   : > { %v1022_v59 = vsub.f32 %v990_v55, %v1006_v52  ;;  %v991_v61 = vmul.f32 0.03125, %v951_v56 }
 0x16d   : > { %v942_v63 = vpop.xlane.xlu0 %941 }
 0x16e   : > { %v1038_v2 = vmax.f32 %v1022_v59, 0.0  ;;  %v1023_v4 = vsub.f32 %v991_v61, %v1007_v57  ;;  %v988_v6 = vmul.f32 0.03125, %v942_v63 }
 0x16f   : > { %v945_v7 = vpop.xlane.xlu1 %944 }
 0x170   : > { %v1070_v8 = vadd.f32 1e-05, %v1038_v2  ;;  %v1039_v10 = vmax.f32 %v1023_v4, 0.0  ;;  %v1020_v11 = vsub.f32 %v988_v6, %v1004_v0  ;;  %v989_v18 = vmul.f32 0.03125, %v945_v7  ;;  %v3975_v6 = vld [vmem:[%s5255_s6] ss:$0 sm:$0xff] }
 0x171   : > { %v864_v12 = vpop.xlane.xlu0 %863 }
 0x172   : > { %3476 = vrsqrt.f32 %v1070_v8  ;;  %v1071_v13 = vadd.f32 1e-05, %v1039_v10  ;;  %v1036_v14 = vmax.f32 %v1020_v11, 0.0  ;;  %v3944_v15 = vmul.f32 0.03125, %v864_v12 }
 0x173   : > { %v882_v16 = vpop.xlane.xlu1 %881  ;;  %v1052_v8 = vsub.f32 %v3812_v62, %v3938_v53 }
 0x174   : > { %3478 = vrsqrt.f32 %v1071_v13  ;;  %v1068_v17 = vadd.f32 1e-05, %v1036_v14  ;;  %v1005_v19 = vmul.f32 %v3944_v15, %v3944_v15  ;;  %v3948_v27 = vmul.f32 0.03125, %v882_v16 }
 0x175   : > { %v879_v21 = vpop.xlane.xlu0 %878  ;;  %v1053_v53 = vsub.f32 %v3824_v9, %v3944_v15 }
 0x176   : > { %3480 = vrsqrt.f32 %v1068_v17  ;;  %v1021_v22 = vsub.f32 %v989_v18, %v1005_v19  ;;  %v3950_v33 = vmul.f32 0.03125, %v879_v21  ;;  %v1011_v38 = vmul.f32 %v3948_v27, %v3948_v27 }
 0x177   : > { %v876_v23 = vpop.xlane.xlu1 %875 }
 0x178   : > { %v1037_v25 = vmax.f32 %v1021_v22, 0.0  ;;  %v3952_v35 = vmul.f32 0.03125, %v876_v23  ;;  %v1010_v42 = vmul.f32 %v3950_v33, %v3950_v33 }
 0x179   : > { %v873_v28 = vpop.xlane.xlu0 %872 }
 0x17a   : > { %v1069_v29 = vadd.f32 1e-05, %v1037_v25  ;;  %v3956_v54 = vmul.f32 0.03125, %v873_v28  ;;  %v1009_v46 = vmul.f32 %v3952_v35, %v3952_v35 }
 0x17b   : > { %v963_v36 = vpop.xlane.xlu1 %962 }
 0x17c   : > { %3482 = vrsqrt.f32 %v1069_v29  ;;  %v995_v39 = vmul.f32 0.03125, %v963_v36  ;;  %v1008_v59 = vmul.f32 %v3956_v54, %v3956_v54 }
 0x17d   : > { %v960_v40 = vpop.xlane.xlu0 %959 }
 0x17e   : > { %v1027_v43 = vsub.f32 %v995_v39, %v1011_v38  ;;  %v994_v44 = vmul.f32 0.03125, %v960_v40 }
 0x17f   : > { %v3477_v45 = vpop.eup %3476  ;;  %v957_v48 = vpop.xlane.xlu1 %956 }
 0x180   : > { %v1043_v52 = vmax.f32 %v1027_v43, 0.0  ;;  %v1026_v55 = vsub.f32 %v994_v44, %v1010_v42  ;;  %v993_v56 = vmul.f32 0.03125, %v957_v48  ;;  %v1102_v57 = vmul.f32 %v3477_v45, %v1054_v41 }
 0x181   : > { %v3479_v58 = vpop.eup %3478  ;;  %v954_v61 = vpop.xlane.xlu0 %953 }
 0x182   : > { %v1075_v63 = vadd.f32 1e-05, %v1043_v52  ;;  %v1042_v0 = vmax.f32 %v1026_v55, 0.0  ;;  %v1025_v2 = vsub.f32 %v993_v56, %v1009_v46  ;;  %v992_v4 = vmul.f32 0.03125, %v954_v61 }
 0x183   : > { %v3481_v7 = vpop.eup %3480  ;;  %v894_v10 = vpop.xlane.xlu1 %893  ;;  %v1124_v3 = vmul.f32 %v3966_v50, %v1102_v57  ;;  %v1103_v49 = vmul.f32 %v3479_v58, %v1055_v47 }
 0x184   : > { %3484 = vrsqrt.f32 %v1075_v63  ;;  %v1074_v11 = vadd.f32 1e-05, %v1042_v0  ;;  %v1041_v12 = vmax.f32 %v1025_v2, 0.0  ;;  %v1024_v13 = vsub.f32 %v992_v4, %v1008_v59 }
 0x185   : > { %v891_v14 = vpop.xlane.xlu0 %890  ;;  %v1146_v16 = vadd.f32 %v3975_v6, %v1124_v3  ;;  %v1125_v17 = vmul.f32 %v3966_v50, %v1103_v49  ;;  %v1100_v18 = vmul.f32 %v3481_v7, %v1052_v8  ;;  %v3987_v28 = vmul.f32 0.03125, %v894_v10 }
 0x186   : > { %3486 = vrsqrt.f32 %v1074_v11  ;;  %v1073_v19 = vadd.f32 1e-05, %v1041_v12  ;;  %v1040_v21 = vmax.f32 %v1024_v13, 0.0  ;;  %v3994_v42 = vmul.f32 0.03125, %v891_v14 }
 0x187   : > { %v888_v22 = vpop.xlane.xlu1 %887  ;;  %v3982_v23 = vmax.f32 %v1146_v16, 0.0  ;;  %v1147_v62 = vadd.f32 %v3975_v6, %v1125_v17  ;;  %v1122_v40 = vmul.f32 %v3966_v50, %v1100_v18  ;;  %v1015_v46 = vmul.f32 %v3987_v28, %v3987_v28 }
 0x188   : > { %v1072_v25 = vadd.f32 1e-05, %v1040_v21  ;;  %3488 = vrsqrt.f32 %v1073_v19  ;;  %v3996_v43 = vmul.f32 0.03125, %v888_v22  ;;  %v1014_v57 = vmul.f32 %v3994_v42, %v3994_v42 }
 0x189   : > { %v3483_v29 = vpop.eup %3482  ;;  %v1184_v36 = vsel %vm712_vm2, %v3982_v23, 0.0  ;;  %v885_v38 = vpop.xlane.xlu0 %884  ;;  %v3991_v39 = vmax.f32 %v1147_v62, 0.0  ;;  %v1144_v44 = vadd.f32 %v3975_v6, %v1122_v40  ;;  %v1244_v2 = vmul.f32 %v3982_v23, %v3982_v23 }
 0x18a   : > { %v1101_v41 = vmul.f32 %v3483_v29, %v1053_v53  ;;  %3490 = vrsqrt.f32 %v1072_v25  ;;  %1185 = vadd.xlane.f32.xlu0 %v1184_v36  ;;  %v4004_v52 = vmul.f32 0.03125, %v885_v38  ;;  %v1013_v61 = vmul.f32 %v3996_v43, %v3996_v43 }
 0x18b   : > { %v1187_v9 = vsel %vm712_vm2, %v3991_v39, 0.0  ;;  %v975_v15 = vpop.xlane.xlu1 %974  ;;  %v4006_v55 = vmax.f32 %v1144_v44, 0.0  ;;  %v1059_v49 = vsub.f32 %v3837_v24, %v3948_v27  ;;  %v1058_v11 = vsub.f32 %v3842_v30, %v3950_v33 }
 0x18c   : > { %v1123_v45 = vmul.f32 %v3966_v50, %v1101_v41  ;;  %1188 = vadd.xlane.f32.xlu1 %v1187_v9  ;;  %v999_v48 = vmul.f32 0.03125, %v975_v15  ;;  %v1012_v12 = vmul.f32 %v4004_v52, %v4004_v52  ;;  %v1245_v14 = vmul.f32 %v3991_v39, %v3991_v39 }
 0x18d   : > { %v972_v56 = vpop.xlane.xlu0 %971  ;;  %v1178_v63 = vsel %vm712_vm2, %v4006_v55, 0.0  ;;  %v1264_v22 = vsel %vm712_vm2, %v1244_v2, 0.0  ;;  %v1242_v30 = vmul.f32 %v4006_v55, %v4006_v55  ;;  %v1056_v29 = vsub.f32 %v3852_v37, %v3956_v54 }
 0x18e   : > { %v1031_v58 = vsub.f32 %v999_v48, %v1015_v46  ;;  %v998_v47 = vmul.f32 0.03125, %v972_v56  ;;  %v1145_v59 = vadd.f32 %v3975_v6, %v1123_v45  ;;  %1179 = vadd.xlane.f32.xlu0 %v1178_v63  ;;  %v1267_v44 = vsel %vm712_vm2, %v1245_v14, 0.0 }
 0x18f   : > { %v969_v0 = vpop.xlane.xlu1 %968  ;;  %v1258_v46 = vsel %vm712_vm2, %v1242_v30, 0.0 }
 0x190   : > { %v1047_v4 = vmax.f32 %v1031_v58, 0.0  ;;  %v1030_v7 = vsub.f32 %v998_v47, %v1014_v57  ;;  %v997_v8 = vmul.f32 0.03125, %v969_v0  ;;  %v4017_v10 = vmax.f32 %v1145_v59, 0.0 }
 0x191   : > { %v3485_v3 = vpop.eup %3484  ;;  %v966_v13 = vpop.xlane.xlu0 %965  ;;  %v1057_v57 = vsub.f32 %v3849_v34, %v3952_v35 }
 0x192   : > { %v1079_v16 = vadd.f32 1e-05, %v1047_v4  ;;  %v1046_v17 = vmax.f32 %v1030_v7, 0.0  ;;  %v1029_v18 = vsub.f32 %v997_v8, %v1013_v61  ;;  %v996_v19 = vmul.f32 0.03125, %v966_v13  ;;  %1265 = vadd.xlane.f32.xlu0 %v1264_v22 }
 0x193   : > { %v3487_v21 = vpop.eup %3486  ;;  %v906_v62 = vpop.xlane.xlu1 %905  ;;  %v1181_v24 = vsel %vm712_vm2, %v4017_v10, 0.0  ;;  %v1107_v27 = vmul.f32 %v3485_v3, %v1059_v49  ;;  %v1243_v56 = vmul.f32 %v4017_v10, %v4017_v10  ;;  %v1062_v13 = vsub.f32 %v3875_v60, %v3994_v42 }
 0x194   : > { %v1078_v33 = vadd.f32 1e-05, %v1046_v17  ;;  %v1045_v53 = vmax.f32 %v1029_v18, 0.0  ;;  %v1028_v25 = vsub.f32 %v996_v19, %v1012_v12  ;;  %1182 = vadd.xlane.f32.xlu1 %v1181_v24  ;;  %3492 = vrsqrt.f32 %v1079_v16 }
 0x195   : > { %v903_v36 = vpop.xlane.xlu0 %902  ;;  %v1106_v38 = vmul.f32 %v3487_v21, %v1058_v11  ;;  %v1129_v40 = vmul.f32 %v3966_v50, %v1107_v27  ;;  %v3489_v41 = vpop.eup %3488  ;;  %v4048_v4 = vmul.f32 0.03125, %v906_v62  ;;  %v1261_v8 = vsel %vm712_vm2, %v1243_v56, 0.0 }
 0x196   : > { %3494 = vrsqrt.f32 %v1078_v33  ;;  %v1077_v9 = vadd.f32 1e-05, %v1045_v53  ;;  %v1044_v15 = vmax.f32 %v1028_v25, 0.0  ;;  %1259 = vadd.xlane.f32.xlu0 %v1258_v46  ;;  %v1105_v2 = vmul.f32 %v3489_v41, %v1057_v57 }
 0x197   : > { %v3491_v45 = vpop.eup %3490  ;;  %v900_v48 = vpop.xlane.xlu1 %899  ;;  %v1128_v37 = vmul.f32 %v3966_v50, %v1106_v38  ;;  %v1151_v54 = vadd.f32 %v3975_v6, %v1129_v40  ;;  %v1063_v12 = vsub.f32 %v3868_v51, %v3987_v28  ;;  %v1019_v51 = vmul.f32 %v4048_v4, %v4048_v4 }
 0x198   : > { %3496 = vrsqrt.f32 %v1077_v9  ;;  %v1076_v58 = vadd.f32 1e-05, %v1044_v15  ;;  %1268 = vadd.xlane.f32.xlu1 %v1267_v44  ;;  %v4043_v47 = vmul.f32 0.03125, %v900_v48  ;;  %v1104_v63 = vmul.f32 %v3491_v45, %v1056_v29 }
 0x199   : > { %v897_v59 = vpop.xlane.xlu0 %896  ;;  %v1150_v61 = vadd.f32 %v3975_v6, %v1128_v37  ;;  %v4053_v35 = vmax.f32 %v1151_v54, 0.0  ;;  %v1127_v17 = vmul.f32 %v3966_v50, %v1105_v2  ;;  %v4070_v28 = vmul.f32 0.03125, %v903_v36 }
 0x19a   : > { %3498 = vrsqrt.f32 %v1076_v58  ;;  %v4046_v0 = vmul.f32 0.03125, %v897_v59  ;;  %v1017_v3 = vmul.f32 %v4043_v47, %v4043_v47  ;;  %v1126_v11 = vmul.f32 %v3966_v50, %v1104_v63 }
 0x19b   : > { %v981_v7 = vpop.xlane.xlu1 %980  ;;  %v4051_v34 = vmax.f32 %v1150_v61, 0.0  ;;  %v1199_v42 = vsel %vm712_vm2, %v4053_v35, 0.0  ;;  %v1149_v62 = vadd.f32 %v3975_v6, %v1127_v17  ;;  %v1061_v53 = vsub.f32 %v3881_v1, %v3996_v43 }
 0x19c   : > { %v1001_v49 = vmul.f32 0.03125, %v981_v7  ;;  %1262 = vadd.xlane.f32.xlu1 %v1261_v8  ;;  %v1016_v18 = vmul.f32 %v4046_v0, %v4046_v0  ;;  %v1148_v22 = vadd.f32 %v3975_v6, %v1126_v11  ;;  %v1060_v25 = vsub.f32 %v3884_v5, %v4004_v52 }
 0x19d   : > { %v1196_v14 = vsel %vm712_vm2, %v4051_v34, 0.0  ;;  %v978_v16 = vpop.xlane.xlu0 %977  ;;  %v4081_v36 = vmax.f32 %v1149_v62, 0.0  ;;  %v1248_v38 = vmul.f32 %v4051_v34, %v4051_v34  ;;  %v1018_v1 = vmul.f32 %v4070_v28, %v4070_v28 }
 0x19e   : > { %v1033_v19 = vsub.f32 %v1001_v49, %v1017_v3  ;;  %1197 = vadd.xlane.f32.xlu0 %v1196_v14  ;;  %v1000_v21 = vmul.f32 0.03125, %v978_v16  ;;  %v4075_v33 = vmax.f32 %v1148_v22, 0.0  ;;  %v1249_v52 = vmul.f32 %v4053_v35, %v4053_v35 }
 0x19f   : > { %v987_v60 = vpop.xlane.xlu1 %986  ;;  %v1193_v5 = vsel %vm712_vm2, %v4081_v36, 0.0  ;;  %v1276_v57 = vsel %vm712_vm2, %v1248_v38, 0.0  ;;  %v1247_v49 = vmul.f32 %v4081_v36, %v4081_v36 }
 0x1a0   : > { %v1049_v24 = vmax.f32 %v1033_v19, 0.0  ;;  %v1032_v30 = vsub.f32 %v1000_v21, %v1016_v18  ;;  %v1003_v27 = vmul.f32 0.03125, %v987_v60  ;;  %1200 = vadd.xlane.f32.xlu1 %v1199_v42  ;;  %v1190_v44 = vsel %vm712_vm2, %v4075_v33, 0.0 }
 0x1a1   : > { %v984_v29 = vpop.xlane.xlu0 %983  ;;  %v3493_v40 = vpop.eup %3492  ;;  %v1246_v58 = vmul.f32 %v4075_v33, %v4075_v33  ;;  %v1279_v3 = vsel %vm712_vm2, %v1249_v52, 0.0  ;;  %v1273_v22 = vsel %vm712_vm2, %v1247_v49, 0.0 }
 0x1a2   : > { %v1081_v41 = vadd.f32 1e-05, %v1049_v24  ;;  %v1048_v9 = vmax.f32 %v1032_v30, 0.0  ;;  %v1035_v15 = vsub.f32 %v1003_v27, %v1019_v51  ;;  %1191 = vadd.xlane.f32.xlu0 %v1190_v44  ;;  %v1002_v43 = vmul.f32 0.03125, %v984_v29 }
 0x1a3   : > { %v3495_v45 = vpop.eup %3494  ;;  %v1111_v59 = vmul.f32 %v3493_v40, %v1063_v12  ;;  %v1270_v18 = vsel %vm712_vm2, %v1246_v58, 0.0  ;;  %v1065_v29 = vsub.f32 %v3913_v31, %v4043_v47  ;;  %v3468_v58 = vld [vmem:[%s5258_s9 + $0x8] sm:$0xff]  }
 0x1a4   : > { %3500 = vrsqrt.f32 %v1081_v41  ;;  %v1080_v46 = vadd.f32 1e-05, %v1048_v9  ;;  %v1051_v48 = vmax.f32 %v1035_v15, 0.0  ;;  %1194 = vadd.xlane.f32.xlu1 %v1193_v5  ;;  %v1110_v56 = vmul.f32 %v3495_v45, %v1062_v13  ;;  %3377 = vmatprep.subr.bf16.mxu0 %v3468_v58 }
 0x1a5   : > { %v3497_v37 = vpop.eup %3496  ;;  %v1034_v54 = vsub.f32 %v1002_v43, %v1018_v1  ;;  %v1133_v11 = vmul.f32 %v3966_v50, %v1111_v59  ;;  %v1064_v41 = vsub.f32 %v3916_v32, %v4046_v0  ;;  %v1067_v45 = vsub.f32 %v3900_v20, %v4048_v4  ;;  %3378 = vmatpush3.bf16.msra.mxu0 %v3468_v58 }
 0x1a6   : > { %3502 = vrsqrt.f32 %v1080_v46  ;;  %v1083_v61 = vadd.f32 1e-05, %v1051_v48  ;;  %v1132_v63 = vmul.f32 %v3966_v50, %v1110_v56  ;;  %v1109_v2 = vmul.f32 %v3497_v37, %v1061_v53  ;;  %1277 = vadd.xlane.f32.xlu0 %v1276_v57 }
 0x1a7   : > { %v3499_v7 = vpop.eup %3498  ;;  %v1050_v8 = vmax.f32 %v1034_v54, 0.0  ;;  %v1155_v17 = vadd.f32 %v3975_v6, %v1133_v11  ;;  %v1066_v0 = vsub.f32 %v3907_v26, %v4070_v28 }
 0x1a8   : > { %3504 = vrsqrt.f32 %v1083_v61  ;;  %1280 = vadd.xlane.f32.xlu1 %v1279_v3  ;;  %v1154_v13 = vadd.f32 %v3975_v6, %v1132_v63  ;;  %v1108_v12 = vmul.f32 %v3499_v7, %v1060_v25  ;;  %v1131_v14 = vmul.f32 %v3966_v50, %v1109_v2 }
 0x1a9   : > { %v1082_v16 = vadd.f32 1e-05, %v1050_v8  ;;  %v4109_v51 = vmax.f32 %v1155_v17, 0.0 }
 0x1aa   : > { %v4105_v19 = vmax.f32 %v1154_v13, 0.0  ;;  %v1130_v21 = vmul.f32 %v3966_v50, %v1108_v12  ;;  %1271 = vadd.xlane.f32.xlu0 %v1270_v18  ;;  %v1153_v60 = vadd.f32 %v3975_v6, %v1131_v14 }
 0x1ab   : > { %3506 = vrsqrt.f32 %v1082_v16  ;;  %v1211_v30 = vsel %vm712_vm2, %v4109_v51, 0.0  ;;  %v1253_v15 = vmul.f32 %v4109_v51, %v4109_v51 }
 0x1ac   : > { %1274 = vadd.xlane.f32.xlu1 %v1273_v22  ;;  %v1208_v42 = vsel %vm712_vm2, %v4105_v19, 0.0  ;;  %v1152_v62 = vadd.f32 %v3975_v6, %v1130_v21  ;;  %v4119_v27 = vmax.f32 %v1153_v60, 0.0  ;;  %v1252_v38 = vmul.f32 %v4105_v19, %v4105_v19 }
 0x1ad   : > { %v1291_v5 = vsel %vm712_vm2, %v1253_v15, 0.0 }
 0x1ae   : > { %v4115_v24 = vmax.f32 %v1152_v62, 0.0  ;;  %1209 = vadd.xlane.f32.xlu0 %v1208_v42  ;;  %v1205_v9 = vsel %vm712_vm2, %v4119_v27, 0.0  ;;  %v1288_v1 = vsel %vm712_vm2, %v1252_v38, 0.0  ;;  %v1251_v52 = vmul.f32 %v4119_v27, %v4119_v27 }
 0x1b0   : > { %1212 = vadd.xlane.f32.xlu1 %v1211_v30  ;;  %v1202_v53 = vsel %vm712_vm2, %v4115_v24, 0.0  ;;  %v1250_v43 = vmul.f32 %v4115_v24, %v4115_v24  ;;  %v1285_v26 = vsel %vm712_vm2, %v1251_v52, 0.0 }
 0x1b1   : > { %v3501_v25 = vpop.eup %3500 }
 0x1b2   : > { %1203 = vadd.xlane.f32.xlu0 %v1202_v53  ;;  %v1113_v44 = vmul.f32 %v3501_v25, %v1065_v29  ;;  %v1282_v37 = vsel %vm712_vm2, %v1250_v43, 0.0 }
 0x1b3   : > { %v3503_v40 = vpop.eup %3502 }
 0x1b4   : > { %1206 = vadd.xlane.f32.xlu1 %v1205_v9  ;;  %v1112_v47 = vmul.f32 %v3503_v40, %v1064_v41  ;;  %v1135_v20 = vmul.f32 %v3966_v50, %v1113_v44 }
 0x1b5   : > { %v3505_v31 = vpop.eup %3504 }
 0x1b6   : > { %v1115_v32 = vmul.f32 %v3505_v31, %v1067_v45  ;;  %1289 = vadd.xlane.f32.xlu0 %v1288_v1  ;;  %v1134_v56 = vmul.f32 %v3966_v50, %v1112_v47  ;;  %v1157_v57 = vadd.f32 %v3975_v6, %v1135_v20 }
 0x1b8   : > { %v3507_v4 = vpop.eup %3506  ;;  %1292 = vadd.xlane.f32.xlu1 %v1291_v5  ;;  %v1137_v46 = vmul.f32 %v3966_v50, %v1115_v32  ;;  %v1156_v63 = vadd.f32 %v3975_v6, %v1134_v56  ;;  %v4165_v8 = vmax.f32 %v1157_v57, 0.0 }
 0x1b9   : > { %v1114_v48 = vmul.f32 %v3507_v4, %v1066_v0 }
 0x1ba   : > { %v1159_v54 = vadd.f32 %v3975_v6, %v1137_v46  ;;  %1283 = vadd.xlane.f32.xlu0 %v1282_v37  ;;  %v4169_v49 = vmax.f32 %v1156_v63, 0.0  ;;  %v1255_v11 = vmul.f32 %v4165_v8, %v4165_v8 }
 0x1bb   : > { %v1136_v28 = vmul.f32 %v3966_v50, %v1114_v48  ;;  %v3469_v50 = vld [vmem:[%s5258_s9] sm:$0xff]  }
 0x1bc   : > { %1286 = vadd.xlane.f32.xlu1 %v1285_v26  ;;  %v4154_v59 = vmax.f32 %v1159_v54, 0.0  ;;  %3379 = vmatprep.subr.bf16.mxu0 %v3469_v50  ;;  %v1214_v13 = vsel %vm712_vm2, %v4169_v49, 0.0  ;;  %v1254_v12 = vmul.f32 %v4169_v49, %v4169_v49  ;;  %v1297_v14 = vsel %vm712_vm2, %v1255_v11, 0.0 }
 0x1bd   : > { %v1158_v61 = vadd.f32 %v3975_v6, %v1136_v28  ;;  %3380 = vmatpush3.bf16.msra.mxu0 %v3469_v50  ;;  %v1217_v6 = vsel %vm712_vm2, %v4165_v8, 0.0 }
 0x1be   : > { %v1223_v2 = vsel %vm712_vm2, %v4154_v59, 0.0  ;;  %v1257_v16 = vmul.f32 %v4154_v59, %v4154_v59  ;;  %v1294_v17 = vsel %vm712_vm2, %v1254_v12, 0.0 }
 0x1bf   : > { %v4163_v7 = vmax.f32 %v1158_v61, 0.0 }
 0x1c0   : > { %1224 = vadd.xlane.f32.xlu1 %v1223_v2  ;;  %v1303_v21 = vsel %vm712_vm2, %v1257_v16, 0.0 }
 0x1c1   : > { %v1220_v3 = vsel %vm712_vm2, %v4163_v7, 0.0  ;;  %v1256_v18 = vmul.f32 %v4163_v7, %v4163_v7 }
 0x1c2   : > { %1221 = vadd.xlane.f32.xlu0 %v1220_v3 }
 0x1c3   : > { %v1300_v22 = vsel %vm712_vm2, %v1256_v18, 0.0 }
 0x1c4   : > { %1218 = vadd.xlane.f32.xlu1 %v1217_v6 }
 0x1c6   : > { %1215 = vadd.xlane.f32.xlu0 %v1214_v13 }
 0x1c8   : > { %1298 = vadd.xlane.f32.xlu1 %v1297_v14 }
 0x1ca   : > { %1295 = vadd.xlane.f32.xlu0 %v1294_v17 }
 0x1cc   : > { %1304 = vadd.xlane.f32.xlu1 %v1303_v21 }
 0x1ce   : > { %1301 = vadd.xlane.f32.xlu0 %v1300_v22 }
 0x213   : > { %v1186_v60 = vpop.xlane.xlu0 %1185 }
 0x214   : > { %v4187_v30 = vmul.f32 0.03125, %v1186_v60 }
 0x215   : > { %v1189_v42 = vpop.xlane.xlu1 %1188 }
 0x216   : > { %v4189_v53 = vmul.f32 0.03125, %v1189_v42  ;;  %v1324_v40 = vmul.f32 %v4187_v30, %v4187_v30 }
 0x217   : > { %v1180_v62 = vpop.xlane.xlu0 %1179 }
 0x218   : > { %v4191_v25 = vmul.f32 0.03125, %v1180_v62  ;;  %v1325_v15 = vmul.f32 %v4189_v53, %v4189_v53  ;;  %v1372_v62 = vsub.f32 %v3982_v23, %v4187_v30 }
 0x21a   : > { %v1322_v44 = vmul.f32 %v4191_v25, %v4191_v25 }
 0x21b   : > { %v1266_v29 = vpop.xlane.xlu0 %1265 }
 0x21c   : > { %v1308_v41 = vmul.f32 0.03125, %v1266_v29 }
 0x21d   : > { %v1183_v38 = vpop.xlane.xlu1 %1182 }
 0x21e   : > { %v1340_v9 = vsub.f32 %v1308_v41, %v1324_v40  ;;  %v4199_v1 = vmul.f32 0.03125, %v1183_v38 }
 0x21f   : > { %v1260_v45 = vpop.xlane.xlu0 %1259 }
 0x220   : > { %v1356_v47 = vmax.f32 %v1340_v9, 0.0  ;;  %v1306_v43 = vmul.f32 0.03125, %v1260_v45  ;;  %v1323_v4 = vmul.f32 %v4199_v1, %v4199_v1  ;;  %v1370_v9 = vsub.f32 %v4006_v55, %v4191_v25 }
 0x221   : > { %v1269_v31 = vpop.xlane.xlu1 %1268 }
 0x222   : > { %v1309_v32 = vmul.f32 0.03125, %v1269_v31  ;;  %v1388_v0 = vadd.f32 1e-05, %v1356_v47  ;;  %v1338_v5 = vsub.f32 %v1306_v43, %v1322_v44  ;;  %v1373_v47 = vsub.f32 %v3991_v39, %v4189_v53 }
 0x223   : > { %v1371_v53 = vsub.f32 %v4017_v10, %v4199_v1 }
 0x224   : > { %v1341_v52 = vsub.f32 %v1309_v32, %v1325_v15  ;;  %v1354_v46 = vmax.f32 %v1338_v5, 0.0  ;;  %3508 = vrsqrt.f32 %v1388_v0  ;;  %v4228_v5 = vld [vmem:[%s5256_s7] ss:$0 sm:$0xff] }
 0x225   : > { %v1263_v20 = vpop.xlane.xlu1 %1262 }
 0x226   : > { %v1357_v48 = vmax.f32 %v1341_v52, 0.0  ;;  %v1307_v56 = vmul.f32 0.03125, %v1263_v20  ;;  %v1386_v54 = vadd.f32 1e-05, %v1354_v46 }
 0x227   : > { %v1198_v37 = vpop.xlane.xlu0 %1197 }
 0x228   : > { %v1389_v26 = vadd.f32 1e-05, %v1357_v48  ;;  %v1339_v28 = vsub.f32 %v1307_v56, %v1323_v4  ;;  %3510 = vrsqrt.f32 %v1386_v54  ;;  %v4203_v2 = vmul.f32 0.03125, %v1198_v37 }
 0x229   : > { %v1201_v57 = vpop.xlane.xlu1 %1200 }
 0x22a   : > { %v1355_v58 = vmax.f32 %v1339_v28, 0.0  ;;  %3512 = vrsqrt.f32 %v1389_v26  ;;  %v4205_v3 = vmul.f32 0.03125, %v1201_v57  ;;  %v1328_v11 = vmul.f32 %v4203_v2, %v4203_v2 }
 0x22b   : > { %v1192_v63 = vpop.xlane.xlu0 %1191 }
 0x22c   : > { %v1387_v61 = vadd.f32 1e-05, %v1355_v58  ;;  %v4209_v13 = vmul.f32 0.03125, %v1192_v63  ;;  %v1329_v16 = vmul.f32 %v4205_v3, %v4205_v3 }
 0x22d   : > { %v1195_v50 = vpop.xlane.xlu1 %1194 }
 0x22e   : > { %3514 = vrsqrt.f32 %v1387_v61  ;;  %v4213_v17 = vmul.f32 0.03125, %v1195_v50  ;;  %v1326_v29 = vmul.f32 %v4209_v13, %v4209_v13 }
 0x22f   : > { %v1278_v6 = vpop.xlane.xlu0 %1277 }
 0x230   : > { %v1312_v12 = vmul.f32 0.03125, %v1278_v6  ;;  %v1327_v15 = vmul.f32 %v4213_v17, %v4213_v17  ;;  %v4240_v6 = vld [vmem:[%s5257_s8] ss:$0 sm:$0xff] }
 0x231   : > { %v1281_v14 = vpop.xlane.xlu1 %1280  ;;  %v3509_v22 = vpop.eup %3508 }
 0x232   : > { %v1313_v18 = vmul.f32 0.03125, %v1281_v14  ;;  %v1344_v21 = vsub.f32 %v1312_v12, %v1328_v11  ;;  %v1420_v43 = vmul.f32 %v3509_v22, %v1372_v62 }
 0x233   : > { %v1272_v42 = vpop.xlane.xlu0 %1271 }
 0x234   : > { %v1345_v60 = vsub.f32 %v1313_v18, %v1329_v16  ;;  %v1360_v38 = vmax.f32 %v1344_v21, 0.0  ;;  %v1310_v40 = vmul.f32 0.03125, %v1272_v42  ;;  %v1442_v28 = vmul.f32 %v4228_v5, %v1420_v43 }
 0x235   : > { %v1275_v41 = vpop.xlane.xlu1 %1274  ;;  %v3511_v31 = vpop.eup %3510  ;;  %v1376_v43 = vsub.f32 %v4051_v34, %v4203_v2 }
 0x236   : > { %v1361_v44 = vmax.f32 %v1345_v60, 0.0  ;;  %v1311_v45 = vmul.f32 0.03125, %v1275_v41  ;;  %v1392_v30 = vadd.f32 1e-05, %v1360_v38  ;;  %v1342_v32 = vsub.f32 %v1310_v40, %v1326_v29 }
 0x237   : > { %v3513_v0 = vpop.eup %3512  ;;  %v1210_v20 = vpop.xlane.xlu0 %1209  ;;  %v1418_v4 = vmul.f32 %v3511_v31, %v1370_v9  ;;  %v1464_v21 = vadd.f32 %v4240_v6, %v1442_v28 }
 0x238   : > { %v1393_v52 = vadd.f32 1e-05, %v1361_v44  ;;  %v1343_v25 = vsub.f32 %v1311_v45, %v1327_v15  ;;  %v1421_v46 = vmul.f32 %v3513_v0, %v1373_v47  ;;  %3516 = vrsqrt.f32 %v1392_v30 }
 0x239   : > { %v1358_v48 = vmax.f32 %v1342_v32, 0.0  ;;  %v1213_v56 = vpop.xlane.xlu1 %1212  ;;  %v1440_v54 = vmul.f32 %v4228_v5, %v1418_v4  ;;  %v4235_v63 = vmul.f32 0.03125, %v1210_v20  ;;  %v1480_v47 = vmax.f32 %v1464_v21, 0.0 }
 0x23a   : > { %3518 = vrsqrt.f32 %v1393_v52  ;;  %v1359_v37 = vmax.f32 %v1343_v25, 0.0  ;;  %v1443_v57 = vmul.f32 %v4228_v5, %v1421_v46  ;;  %v4242_v11 = vmul.f32 0.03125, %v1213_v56 }
 0x23b   : > { %v3515_v26 = vpop.eup %3514  ;;  %v1390_v58 = vadd.f32 1e-05, %v1358_v48  ;;  %v1204_v50 = vpop.xlane.xlu0 %1203  ;;  %v1462_v18 = vadd.f32 %v4240_v6, %v1440_v54  ;;  %v1332_v22 = vmul.f32 %v4235_v63, %v4235_v63  ;;  %v1377_v56 = vsub.f32 %v4053_v35, %v4205_v3 }
 0x23c   : > { %v1391_v61 = vadd.f32 1e-05, %v1359_v37  ;;  %v1419_v1 = vmul.f32 %v3515_v26, %v1371_v53  ;;  %v1465_v14 = vadd.f32 %v4240_v6, %v1443_v57  ;;  %v1333_v62 = vmul.f32 %v4242_v11, %v4242_v11 }
 0x23d   : > { %3520 = vrsqrt.f32 %v1390_v58  ;;  %v1207_v12 = vpop.xlane.xlu1 %1206  ;;  %v4253_v29 = vmul.f32 0.03125, %v1204_v50  ;;  %v1478_v44 = vmax.f32 %v1462_v18, 0.0 }
 0x23e   : > { %3522 = vrsqrt.f32 %v1391_v61  ;;  %v1441_v16 = vmul.f32 %v4228_v5, %v1419_v1  ;;  %v1481_v41 = vmax.f32 %v1465_v14, 0.0  ;;  %v4255_v9 = vmul.f32 0.03125, %v1207_v12 }
 0x23f   : > { %v1290_v60 = vpop.xlane.xlu0 %1289  ;;  %v1330_v52 = vmul.f32 %v4253_v29, %v4253_v29  ;;  %v1374_v1 = vsub.f32 %v4075_v33, %v4209_v13 }
 0x240   : > { %v1463_v42 = vadd.f32 %v4240_v6, %v1441_v16  ;;  %v1316_v38 = vmul.f32 0.03125, %v1290_v60  ;;  %v1495_v46 = vpack.c.bf16 %v1481_v41, %v1480_v47  ;;  %v1331_v53 = vmul.f32 %v4255_v9, %v4255_v9 }
 0x241   : > { %v1293_v40 = vpop.xlane.xlu1 %1292 }
 0x242   : > { %v1317_v15 = vmul.f32 0.03125, %v1293_v40  ;;  %v1479_v45 = vmax.f32 %v1463_v42, 0.0  ;;  %v1348_v31 = vsub.f32 %v1316_v38, %v1332_v22  ;;  %v1375_v22 = vsub.f32 %v4081_v36, %v4213_v17 }
 0x243   : > { %v1284_v32 = vpop.xlane.xlu0 %1283 }
 0x244   : > { %v1349_v30 = vsub.f32 %v1317_v15, %v1333_v62  ;;  %v1494_v0 = vpack.c.bf16 %v1479_v45, %v1478_v44  ;;  %v1364_v25 = vmax.f32 %v1348_v31, 0.0  ;;  %v1314_v20 = vmul.f32 0.03125, %v1284_v32 }
 0x245   : > { %v1287_v4 = vpop.xlane.xlu1 %1286  ;;  %v3517_v48 = vpop.eup %3516 }
 0x246   : > { %v1365_v37 = vmax.f32 %v1349_v30, 0.0  ;;  %v1315_v54 = vmul.f32 0.03125, %v1287_v4  ;;  %3381 = vmatprep.mubr.msk.bf16.mxu0 %vm712_vm2, %v1494_v0  ;;  %v1396_v26 = vadd.f32 1e-05, %v1364_v25  ;;  %v1346_v28 = vsub.f32 %v1314_v20, %v1330_v52 }
 0x247   : > { %v3519_v2 = vpop.eup %3518  ;;  %3382 = vmatmul.mubr.msk.bf16.vlgmr.msra.gmra.mxu0 %vm712_vm2, %v1495_v46  ;;  %v1424_v61 = vmul.f32 %v3517_v48, %v1376_v43 }
 0x248   : > { %v1397_v57 = vadd.f32 1e-05, %v1365_v37  ;;  %v1347_v58 = vsub.f32 %v1315_v54, %v1331_v53  ;;  %v1425_v50 = vmul.f32 %v3519_v2, %v1377_v56  ;;  %3524 = vrsqrt.f32 %v1396_v26 }
 0x249   : > { %v1362_v3 = vmax.f32 %v1346_v28, 0.0  ;;  %v1225_v12 = vpop.xlane.xlu1 %1224  ;;  %v1446_v40 = vmul.f32 %v4228_v5, %v1424_v61  ;;  %v1380_v28 = vsub.f32 %v4105_v19, %v4235_v63 }
 0x24a   : > { %v3521_v14 = vpop.eup %3520  ;;  %3526 = vrsqrt.f32 %v1397_v57  ;;  %v1363_v16 = vmax.f32 %v1347_v58, 0.0  ;;  %v1447_v18 = vmul.f32 %v4228_v5, %v1425_v50  ;;  %v4282_v32 = vmul.f32 0.03125, %v1225_v12 }
 0x24b   : > { %v3523_v21 = vpop.eup %3522  ;;  %v1394_v60 = vadd.f32 1e-05, %v1362_v3  ;;  %v1222_v42 = vpop.xlane.xlu0 %1221  ;;  %v1422_v62 = vmul.f32 %v3521_v14, %v1374_v1  ;;  %v1468_v30 = vadd.f32 %v4240_v6, %v1446_v40  ;;  %v1378_v40 = vsub.f32 %v4115_v24, %v4253_v29 }
 0x24c   : > { %v1395_v38 = vadd.f32 1e-05, %v1363_v16  ;;  %v1423_v41 = vmul.f32 %v3523_v21, %v1375_v22  ;;  %v1469_v45 = vadd.f32 %v4240_v6, %v1447_v18  ;;  %v4287_v46 = vmul.f32 0.03125, %v1222_v42 }
 0x24d   : > { %3528 = vrsqrt.f32 %v1394_v60  ;;  %v1219_v13 = vpop.xlane.xlu1 %1218  ;;  %v1444_v15 = vmul.f32 %v4228_v5, %v1422_v62  ;;  %v1484_v26 = vmax.f32 %v1468_v30, 0.0  ;;  %v1337_v57 = vmul.f32 %v4282_v32, %v4282_v32 }
 0x24e   : > { %3530 = vrsqrt.f32 %v1395_v38  ;;  %v4274_v44 = vmul.f32 0.03125, %v1219_v13  ;;  %v1445_v47 = vmul.f32 %v4228_v5, %v1423_v41  ;;  %v1485_v4 = vmax.f32 %v1469_v45, 0.0 }
 0x24f   : > { %v1216_v31 = vpop.xlane.xlu0 %1215  ;;  %v1466_v17 = vadd.f32 %v4240_v6, %v1444_v15  ;;  %v1381_v18 = vsub.f32 %v4109_v51, %v4242_v11  ;;  %v1336_v21 = vmul.f32 %v4287_v46, %v4287_v46  ;;  %v1379_v13 = vsub.f32 %v4119_v27, %v4255_v9 }
 0x250   : > { %v4279_v43 = vmul.f32 0.03125, %v1216_v31  ;;  %v1467_v52 = vadd.f32 %v4240_v6, %v1445_v47  ;;  %v1335_v25 = vmul.f32 %v4274_v44, %v4274_v44  ;;  %v1497_v14 = vpack.c.bf16 %v1485_v4, %v1484_v26 }
 0x251   : > { %v1299_v0 = vpop.xlane.xlu1 %1298  ;;  %v1482_v56 = vmax.f32 %v1466_v17, 0.0 }
 0x252   : > { %v1319_v20 = vmul.f32 0.03125, %v1299_v0  ;;  %v1483_v53 = vmax.f32 %v1467_v52, 0.0  ;;  %v1334_v37 = vmul.f32 %v4279_v43, %v4279_v43 }
 0x253   : > { %v1296_v48 = vpop.xlane.xlu0 %1295 }
 0x254   : > { %v1351_v54 = vsub.f32 %v1319_v20, %v1335_v25  ;;  %v1318_v2 = vmul.f32 0.03125, %v1296_v48  ;;  %v1496_v61 = vpack.c.bf16 %v1483_v53, %v1482_v56 }
 0x255   : > { %v1305_v58 = vpop.xlane.xlu1 %1304  ;;  %v3525_v50 = vpop.eup %3524 }
 0x256   : > { %v1367_v1 = vmax.f32 %v1351_v54, 0.0  ;;  %v1350_v3 = vsub.f32 %v1318_v2, %v1334_v37  ;;  %v1321_v12 = vmul.f32 0.03125, %v1305_v58  ;;  %3385 = vmatprep.mubr.msk.bf16.mxu0 %vm712_vm2, %v1496_v61  ;;  %v1428_v22 = vmul.f32 %v3525_v50, %v1380_v28 }
 0x257   : > { %v3527_v16 = vpop.eup %3526  ;;  %v1302_v63 = vpop.xlane.xlu0 %1301  ;;  %3386 = vmatmul.mubr.msk.bf16.gmra.mxu0 %vm712_vm2, %v1497_v14  ;;  %v1383_v61 = vsub.f32 %v4165_v8, %v4274_v44  ;;  %v1385_v14 = vsub.f32 %v4154_v59, %v4282_v32  ;;  %v1384_v44 = vsub.f32 %v4163_v7, %v4287_v46 }
 0x258   : > { %v1399_v60 = vadd.f32 1e-05, %v1367_v1  ;;  %v1366_v42 = vmax.f32 %v1350_v3, 0.0  ;;  %v1353_v62 = vsub.f32 %v1321_v12, %v1337_v57  ;;  %v1320_v38 = vmul.f32 0.03125, %v1302_v63 }
 0x259   : > { %v1429_v11 = vmul.f32 %v3527_v16, %v1381_v18  ;;  %v1450_v30 = vmul.f32 %v4228_v5, %v1428_v22  ;;  %v1382_v1 = vsub.f32 %v4169_v49, %v4279_v43 }
 0x25a   : > { %v3529_v41 = vpop.eup %3528  ;;  %3532 = vrsqrt.f32 %v1399_v60  ;;  %v1398_v15 = vadd.f32 1e-05, %v1366_v42  ;;  %v1369_v45 = vmax.f32 %v1353_v62, 0.0  ;;  %v1352_v31 = vsub.f32 %v1320_v38, %v1336_v21 }
 0x25b   : > { %v3531_v47 = vpop.eup %3530  ;;  %v1426_v17 = vmul.f32 %v3529_v41, %v1378_v40  ;;  %v1451_v0 = vmul.f32 %v4228_v5, %v1429_v11  ;;  %v1472_v53 = vadd.f32 %v4240_v6, %v1450_v30 }
 0x25c   : > { %3534 = vrsqrt.f32 %v1398_v15  ;;  %v1401_v52 = vadd.f32 1e-05, %v1369_v45  ;;  %v1368_v25 = vmax.f32 %v1352_v31, 0.0  ;;  %v1427_v20 = vmul.f32 %v3531_v47, %v1379_v13  ;;  %v4336_v47 = vld [vmem:[%s5259_s10] ss:$0 sm:$0xff] }
 0x25d   : > { %v1448_v29 = vmul.f32 %v4228_v5, %v1426_v17  ;;  %v1473_v9 = vadd.f32 %v4240_v6, %v1451_v0  ;;  %v1488_v28 = vmax.f32 %v1472_v53, 0.0 }
 0x25e   : > { %3536 = vrsqrt.f32 %v1401_v52  ;;  %v1400_v4 = vadd.f32 1e-05, %v1368_v25  ;;  %v1449_v48 = vmul.f32 %v4228_v5, %v1427_v20 }
 0x25f   : > { %v1470_v56 = vadd.f32 %v4240_v6, %v1448_v29  ;;  %v1489_v54 = vmax.f32 %v1473_v9, 0.0 }
 0x260   : > { %3538 = vrsqrt.f32 %v1400_v4  ;;  %v1471_v37 = vadd.f32 %v4240_v6, %v1449_v48 }
 0x261   : > { %v1486_v2 = vmax.f32 %v1470_v56, 0.0  ;;  %v1499_v58 = vpack.c.bf16 %v1489_v54, %v1488_v28 }
 0x262   : > { %v1487_v26 = vmax.f32 %v1471_v37, 0.0 }
 0x264   : > { %v1498_v57 = vpack.c.bf16 %v1487_v26, %v1486_v2 }
 0x266   : > { %3389 = vmatprep.mubr.msk.bf16.mxu0 %vm712_vm2, %v1498_v57 }
 0x267   : > { %v3533_v50 = vpop.eup %3532  ;;  %3390 = vmatmul.mubr.msk.bf16.gmra.mxu0 %vm712_vm2, %v1499_v58 }
 0x268   : > { %v1431_v3 = vmul.f32 %v3533_v50, %v1383_v61 }
 0x269   : > { %v3535_v12 = vpop.eup %3534 }
 0x26a   : > { %v1430_v16 = vmul.f32 %v3535_v12, %v1382_v1  ;;  %v1453_v18 = vmul.f32 %v4228_v5, %v1431_v3 }
 0x26b   : > { %v3537_v21 = vpop.eup %3536 }
 0x26c   : > { %v1452_v63 = vmul.f32 %v4228_v5, %v1430_v16  ;;  %v1475_v22 = vadd.f32 %v4240_v6, %v1453_v18  ;;  %v1433_v60 = vmul.f32 %v3537_v21, %v1385_v14 }
 0x26d   : > { %v3539_v42 = vpop.eup %3538 }
 0x26e   : > { %v1474_v43 = vadd.f32 %v4240_v6, %v1452_v63  ;;  %v1432_v62 = vmul.f32 %v3539_v42, %v1384_v44  ;;  %v1455_v38 = vmul.f32 %v4228_v5, %v1433_v60  ;;  %v1491_v32 = vmax.f32 %v1475_v22, 0.0 }
 0x270   : > { %v1490_v40 = vmax.f32 %v1474_v43, 0.0  ;;  %v1454_v13 = vmul.f32 %v4228_v5, %v1432_v62  ;;  %v1477_v11 = vadd.f32 %v4240_v6, %v1455_v38 }
 0x272   : > { %v1500_v41 = vpack.c.bf16 %v1491_v32, %v1490_v40  ;;  %v1476_v46 = vadd.f32 %v4240_v6, %v1454_v13  ;;  %v1493_v45 = vmax.f32 %v1477_v11, 0.0 }
 0x274   : > { %3393 = vmatprep.mubr.msk.bf16.mxu0 %vm712_vm2, %v1500_v41  ;;  %v1492_v15 = vmax.f32 %v1476_v46, 0.0 }
 0x276   : > { %v1501_v31 = vpack.c.bf16 %v1493_v45, %v1492_v15 }
 0x278   : > { %3394 = vmatmul.mubr.msk.bf16.gmra.mxu0 %vm712_vm2, %v1501_v31 }
 0x307   : > { %v3383_v17 = vpop.f32.mrf.mxu0 }
 0x308   : > { %v4339_v5 = vadd.f32 %v3383_v17, %v4336_v47 }
 0x309   : > { %v1583_v30 = vpop.f32.mrf.mxu0 }
 0x30a   : > { %v4342_v0 = vadd.f32 %v4336_v47, %v1583_v30  ;;  %v1654_v6 = vsel %vm712_vm2, %v4339_v5, 0.0  ;;  %v1714_v48 = vmul.f32 %v4339_v5, %v4339_v5 }
 0x30b   : > { %1655 = vadd.xlane.f32.xlu0 %v1654_v6  ;;  %v3384_v52 = vpop.f32.mrf.mxu0 }
 0x30c   : > { %v4347_v25 = vadd.f32 %v3384_v52, %v4336_v47  ;;  %v1648_v4 = vsel %vm712_vm2, %v4342_v0, 0.0  ;;  %v1734_v53 = vsel %vm712_vm2, %v1714_v48, 0.0  ;;  %v1712_v54 = vmul.f32 %v4342_v0, %v4342_v0 }
 0x30d   : > { %v1586_v20 = vpop.f32.mrf.mxu0 }
 0x30e   : > { %v4350_v29 = vadd.f32 %v4336_v47, %v1586_v20  ;;  %v1657_v9 = vsel %vm712_vm2, %v4347_v25, 0.0  ;;  %v1715_v37 = vmul.f32 %v4347_v25, %v4347_v25  ;;  %v1728_v26 = vsel %vm712_vm2, %v1712_v54, 0.0 }
 0x30f   : > { %1658 = vadd.xlane.f32.xlu1 %v1657_v9  ;;  %1649 = vadd.xlane.f32.xlu0 %v1648_v4 }
 0x310   : > { %v1651_v56 = vsel %vm712_vm2, %v4350_v29, 0.0  ;;  %v1737_v2 = vsel %vm712_vm2, %v1715_v37, 0.0  ;;  %v1713_v28 = vmul.f32 %v4350_v29, %v4350_v29 }
 0x312   : > { %v1731_v50 = vsel %vm712_vm2, %v1713_v28, 0.0  ;;  %v3470_v28 = vld [vmem:[%s5262_s13 + $0x8] sm:$0xff]  }
 0x313   : > { %1652 = vadd.xlane.f32.xlu1 %v1651_v56  ;;  %1735 = vadd.xlane.f32.xlu0 %v1734_v53 }
 0x314   : > { %3397 = vmatprep.subr.bf16.mxu1 %v3470_v28 }
 0x315   : > { %3398 = vmatpush3.bf16.msra.mxu1 %v3470_v28 }
 0x317   : > { %1738 = vadd.xlane.f32.xlu1 %v1737_v2  ;;  %1729 = vadd.xlane.f32.xlu0 %v1728_v26  ;;  %v3387_v57 = vpop.f32.mrf.mxu0 }
 0x318   : > { %v4370_v58 = vadd.f32 %v3387_v57, %v4336_v47 }
 0x319   : > { %v1599_v61 = vpop.f32.mrf.mxu0 }
 0x31a   : > { %v4374_v1 = vadd.f32 %v4336_v47, %v1599_v61  ;;  %v1666_v3 = vsel %vm712_vm2, %v4370_v58, 0.0  ;;  %v1718_v63 = vmul.f32 %v4370_v58, %v4370_v58 }
 0x31b   : > { %1732 = vadd.xlane.f32.xlu1 %v1731_v50  ;;  %1667 = vadd.xlane.f32.xlu0 %v1666_v3  ;;  %v3388_v12 = vpop.f32.mrf.mxu0 }
 0x31c   : > { %v4379_v14 = vadd.f32 %v3388_v12, %v4336_v47  ;;  %v1660_v44 = vsel %vm712_vm2, %v4374_v1, 0.0  ;;  %v1746_v60 = vsel %vm712_vm2, %v1718_v63, 0.0  ;;  %v1716_v43 = vmul.f32 %v4374_v1, %v4374_v1 }
 0x31d   : > { %v1602_v16 = vpop.f32.mrf.mxu0 }
 0x31e   : > { %v4382_v18 = vadd.f32 %v4336_v47, %v1602_v16  ;;  %v1669_v21 = vsel %vm712_vm2, %v4379_v14, 0.0  ;;  %v1719_v42 = vmul.f32 %v4379_v14, %v4379_v14  ;;  %v1740_v38 = vsel %vm712_vm2, %v1716_v43, 0.0 }
 0x31f   : > { %1670 = vadd.xlane.f32.xlu1 %v1669_v21  ;;  %1661 = vadd.xlane.f32.xlu0 %v1660_v44  ;;  %v3471_v44 = vld [vmem:[%s5262_s13] sm:$0xff]  }
 0x320   : > { %v1663_v22 = vsel %vm712_vm2, %v4382_v18, 0.0  ;;  %v1749_v62 = vsel %vm712_vm2, %v1719_v42, 0.0  ;;  %v1717_v32 = vmul.f32 %v4382_v18, %v4382_v18  ;;  %3399 = vmatprep.subr.bf16.mxu1 %v3471_v44 }
 0x321   : > { %3400 = vmatpush3.bf16.msra.mxu1 %v3471_v44 }
 0x322   : > { %v1743_v15 = vsel %vm712_vm2, %v1717_v32, 0.0 }
 0x323   : > { %1664 = vadd.xlane.f32.xlu1 %v1663_v22  ;;  %1747 = vadd.xlane.f32.xlu0 %v1746_v60 }
 0x327   : > { %v3391_v40 = vpop.f32.mrf.mxu0  ;;  %1750 = vadd.xlane.f32.xlu1 %v1749_v62  ;;  %1741 = vadd.xlane.f32.xlu0 %v1740_v38 }
 0x328   : > { %v4402_v13 = vadd.f32 %v3391_v40, %v4336_v47 }
 0x329   : > { %v1615_v11 = vpop.f32.mrf.mxu0 }
 0x32a   : > { %v1678_v41 = vsel %vm712_vm2, %v4402_v13, 0.0  ;;  %v4407_v46 = vadd.f32 %v4336_v47, %v1615_v11  ;;  %v1722_v20 = vmul.f32 %v4402_v13, %v4402_v13 }
 0x32b   : > { %v3392_v45 = vpop.f32.mrf.mxu0  ;;  %1744 = vadd.xlane.f32.xlu1 %v1743_v15  ;;  %1679 = vadd.xlane.f32.xlu0 %v1678_v41 }
 0x32c   : > { %v4411_v31 = vadd.f32 %v3392_v45, %v4336_v47  ;;  %v1672_v52 = vsel %vm712_vm2, %v4407_v46, 0.0  ;;  %v1758_v4 = vsel %vm712_vm2, %v1722_v20, 0.0  ;;  %v1720_v56 = vmul.f32 %v4407_v46, %v4407_v46 }
 0x32d   : > { %v1618_v17 = vpop.f32.mrf.mxu0 }
 0x32e   : > { %v1681_v30 = vsel %vm712_vm2, %v4411_v31, 0.0  ;;  %v4416_v6 = vadd.f32 %v4336_v47, %v1618_v17  ;;  %v1723_v48 = vmul.f32 %v4411_v31, %v4411_v31  ;;  %v1752_v37 = vsel %vm712_vm2, %v1720_v56, 0.0 }
 0x32f   : > { %1682 = vadd.xlane.f32.xlu1 %v1681_v30  ;;  %1673 = vadd.xlane.f32.xlu0 %v1672_v52 }
 0x330   : > { %v1675_v9 = vsel %vm712_vm2, %v4416_v6, 0.0  ;;  %v1761_v53 = vsel %vm712_vm2, %v1723_v48, 0.0  ;;  %v1721_v54 = vmul.f32 %v4416_v6, %v4416_v6 }
 0x332   : > { %v1755_v50 = vsel %vm712_vm2, %v1721_v54, 0.0 }
 0x333   : > { %1676 = vadd.xlane.f32.xlu1 %v1675_v9  ;;  %1759 = vadd.xlane.f32.xlu0 %v1758_v4 }
 0x337   : > { %1762 = vadd.xlane.f32.xlu1 %v1761_v53  ;;  %1753 = vadd.xlane.f32.xlu0 %v1752_v37 }
 0x338   : > { %v3395_v2 = vpop.f32.mrf.mxu0 }
 0x339   : > { %v4434_v26 = vadd.f32 %v3395_v2, %v4336_v47 }
 0x33a   : > { %v1631_v57 = vpop.f32.mrf.mxu0 }
 0x33b   : > { %v4440_v61 = vadd.f32 %v4336_v47, %v1631_v57  ;;  %v1690_v3 = vsel %vm712_vm2, %v4434_v26, 0.0  ;;  %1756 = vadd.xlane.f32.xlu1 %v1755_v50  ;;  %v1726_v38 = vmul.f32 %v4434_v26, %v4434_v26 }
 0x33c   : > { %1691 = vadd.xlane.f32.xlu0 %v1690_v3  ;;  %v3396_v12 = vpop.f32.mrf.mxu0 }
 0x33d   : > { %v4446_v16 = vadd.f32 %v3396_v12, %v4336_v47  ;;  %v1684_v60 = vsel %vm712_vm2, %v4440_v61, 0.0  ;;  %v1724_v42 = vmul.f32 %v4440_v61, %v4440_v61  ;;  %v1770_v32 = vsel %vm712_vm2, %v1726_v38, 0.0 }
 0x33e   : > { %v1634_v21 = vpop.f32.mrf.mxu0 }
 0x33f   : > { %v4452_v63 = vadd.f32 %v4336_v47, %v1634_v21  ;;  %v1693_v22 = vsel %vm712_vm2, %v4446_v16, 0.0  ;;  %v1764_v62 = vsel %vm712_vm2, %v1724_v42, 0.0  ;;  %v1727_v11 = vmul.f32 %v4446_v16, %v4446_v16 }
 0x340   : > { %1694 = vadd.xlane.f32.xlu1 %v1693_v22  ;;  %1685 = vadd.xlane.f32.xlu0 %v1684_v60 }
 0x341   : > { %v1687_v43 = vsel %vm712_vm2, %v4452_v63, 0.0  ;;  %v1725_v47 = vmul.f32 %v4452_v63, %v4452_v63  ;;  %v1773_v41 = vsel %vm712_vm2, %v1727_v11, 0.0 }
 0x343   : > { %v1767_v40 = vsel %vm712_vm2, %v1725_v47, 0.0 }
 0x344   : > { %1688 = vadd.xlane.f32.xlu1 %v1687_v43  ;;  %1765 = vadd.xlane.f32.xlu0 %v1764_v62 }
 0x348   : > { %1768 = vadd.xlane.f32.xlu1 %v1767_v40  ;;  %1771 = vadd.xlane.f32.xlu0 %v1770_v32 }
 0x34c   : > { %1774 = vadd.xlane.f32.xlu1 %v1773_v41 }
 0x394   : > { %v1656_v15 = vpop.xlane.xlu0 %1655 }
 0x395   : > { %v1698_v30 = vmul.f32 0.03125, %v1656_v15 }
 0x397   : > { %v1794_v4 = vmul.f32 %v1698_v30, %v1698_v30 }
 0x398   : > { %v1659_v45 = vpop.xlane.xlu1 %1658  ;;  %v1650_v17 = vpop.xlane.xlu0 %1649 }
 0x399   : > { %v4472_v52 = vmul.f32 0.03125, %v1659_v45  ;;  %v4474_v48 = vmul.f32 0.03125, %v1650_v17 }
 0x39b   : > { %v1795_v37 = vmul.f32 %v4472_v52, %v4472_v52  ;;  %v1792_v57 = vmul.f32 %v4474_v48, %v4474_v48 }
 0x39c   : > { %v1653_v20 = vpop.xlane.xlu1 %1652  ;;  %v1736_v9 = vpop.xlane.xlu0 %1735 }
 0x39d   : > { %v1778_v56 = vmul.f32 0.03125, %v1736_v9  ;;  %v4478_v54 = vmul.f32 0.03125, %v1653_v20 }
 0x39f   : > { %v1810_v53 = vsub.f32 %v1778_v56, %v1794_v4  ;;  %v1793_v60 = vmul.f32 %v4478_v54, %v4478_v54 }
 0x3a0   : > { %v1739_v2 = vpop.xlane.xlu1 %1738  ;;  %v1730_v28 = vpop.xlane.xlu0 %1729 }
 0x3a1   : > { %v1826_v50 = vmax.f32 %v1810_v53, 0.0  ;;  %v1779_v3 = vmul.f32 0.03125, %v1739_v2  ;;  %v1776_v12 = vmul.f32 0.03125, %v1730_v28 }
 0x3a3   : > { %v1858_v21 = vadd.f32 1e-05, %v1826_v50  ;;  %v1811_v44 = vsub.f32 %v1779_v3, %v1795_v37  ;;  %v1808_v22 = vsub.f32 %v1776_v12, %v1792_v57  ;;  %v1842_v57 = vsub.f32 %v4339_v5, %v1698_v30 }
 0x3a4   : > { %v1733_v42 = vpop.xlane.xlu1 %1732  ;;  %v1668_v38 = vpop.xlane.xlu0 %1667 }
 0x3a5   : > { %3540 = vrsqrt.f32 %v1858_v21  ;;  %v1827_v43 = vmax.f32 %v1811_v44, 0.0  ;;  %v1824_v62 = vmax.f32 %v1808_v22, 0.0  ;;  %v1777_v47 = vmul.f32 0.03125, %v1733_v42 }
 0x3a6   : > { %v4484_v17 = vmul.f32 0.03125, %v1668_v38 }
 0x3a7   : > { %v1859_v40 = vadd.f32 1e-05, %v1827_v43  ;;  %v1856_v32 = vadd.f32 1e-05, %v1824_v62  ;;  %v1809_v11 = vsub.f32 %v1777_v47, %v1793_v60  ;;  %v4502_v47 = vld [vmem:[%s5260_s11] ss:$0 sm:$0xff] }
 0x3a8   : > { %v1671_v15 = vpop.xlane.xlu1 %1670  ;;  %v1662_v45 = vpop.xlane.xlu0 %1661  ;;  %v1798_v37 = vmul.f32 %v4484_v17, %v4484_v17 }
 0x3a9   : > { %3542 = vrsqrt.f32 %v1859_v40  ;;  %v1825_v41 = vmax.f32 %v1809_v11, 0.0  ;;  %v4486_v9 = vmul.f32 0.03125, %v1671_v15  ;;  %v4488_v4 = vmul.f32 0.03125, %v1662_v45 }
 0x3aa   : > { %3544 = vrsqrt.f32 %v1856_v32  ;;  %v1843_v40 = vsub.f32 %v4347_v25, %v4472_v52  ;;  %v1840_v32 = vsub.f32 %v4342_v0, %v4474_v48  ;;  %v1841_v0 = vsub.f32 %v4350_v29, %v4478_v54 }
 0x3ab   : > { %v1857_v20 = vadd.f32 1e-05, %v1825_v41  ;;  %v1799_v50 = vmul.f32 %v4486_v9, %v4486_v9  ;;  %v1796_v3 = vmul.f32 %v4488_v4, %v4488_v4 }
 0x3ac   : > { %v1665_v56 = vpop.xlane.xlu1 %1664  ;;  %v1748_v53 = vpop.xlane.xlu0 %1747 }
 0x3ad   : > { %3546 = vrsqrt.f32 %v1857_v20  ;;  %v1782_v2 = vmul.f32 0.03125, %v1748_v53  ;;  %v4497_v22 = vmul.f32 0.03125, %v1665_v56 }
 0x3af   : > { %v1814_v28 = vsub.f32 %v1782_v2, %v1798_v37  ;;  %v1797_v45 = vmul.f32 %v4497_v22, %v4497_v22 }
 0x3b0   : > { %v1751_v12 = vpop.xlane.xlu1 %1750  ;;  %v1742_v21 = vpop.xlane.xlu0 %1741 }
 0x3b1   : > { %v1830_v60 = vmax.f32 %v1814_v28, 0.0  ;;  %v1783_v42 = vmul.f32 0.03125, %v1751_v12  ;;  %v1780_v43 = vmul.f32 0.03125, %v1742_v21  ;;  %v4517_v21 = vld [vmem:[%s5261_s12] ss:$0 sm:$0xff] }
 0x3b2   : > { %v3541_v44 = vpop.eup %3540 }
 0x3b3   : > { %v1890_v62 = vmul.f32 %v3541_v44, %v1842_v57  ;;  %v1862_v5 = vadd.f32 1e-05, %v1830_v60  ;;  %v1815_v30 = vsub.f32 %v1783_v42, %v1799_v50  ;;  %v1812_v38 = vsub.f32 %v1780_v43, %v1796_v3 }
 0x3b4   : > { %v1745_v11 = vpop.xlane.xlu1 %1744  ;;  %v1680_v41 = vpop.xlane.xlu0 %1679 }
 0x3b5   : > { %v1831_v20 = vmax.f32 %v1815_v30, 0.0  ;;  %v1828_v56 = vmax.f32 %v1812_v38, 0.0  ;;  %v1781_v53 = vmul.f32 0.03125, %v1745_v11  ;;  %v1912_v2 = vmul.f32 %v4502_v47, %v1890_v62 }
 0x3b6   : > { %v3543_v15 = vpop.eup %3542  ;;  %3548 = vrsqrt.f32 %v1862_v5  ;;  %v4519_v42 = vmul.f32 0.03125, %v1680_v41 }
 0x3b7   : > { %v3545_v37 = vpop.eup %3544  ;;  %v1891_v28 = vmul.f32 %v3543_v15, %v1843_v40  ;;  %v1863_v57 = vadd.f32 1e-05, %v1831_v20  ;;  %v1860_v50 = vadd.f32 1e-05, %v1828_v56  ;;  %v1813_v25 = vsub.f32 %v1781_v53, %v1797_v45 }
 0x3b8   : > { %v1888_v52 = vmul.f32 %v3545_v37, %v1840_v32  ;;  %v1683_v3 = vpop.xlane.xlu1 %1682  ;;  %v1674_v12 = vpop.xlane.xlu0 %1673  ;;  %v1934_v29 = vadd.f32 %v4517_v21, %v1912_v2  ;;  %v1802_v15 = vmul.f32 %v4519_v42, %v4519_v42 }
 0x3b9   : > { %v1913_v48 = vmul.f32 %v4502_v47, %v1891_v28  ;;  %3550 = vrsqrt.f32 %v1863_v57  ;;  %v1829_v60 = vmax.f32 %v1813_v25, 0.0  ;;  %v4524_v30 = vmul.f32 0.03125, %v1683_v3 }
 0x3ba   : > { %v3547_v44 = vpop.eup %3546  ;;  %3552 = vrsqrt.f32 %v1860_v50  ;;  %v1910_v62 = vmul.f32 %v4502_v47, %v1888_v52  ;;  %v4526_v38 = vmul.f32 0.03125, %v1674_v12  ;;  %v1950_v53 = vmax.f32 %v1934_v29, 0.0 }
 0x3bb   : > { %v1889_v43 = vmul.f32 %v3547_v44, %v1841_v0  ;;  %v1861_v5 = vadd.f32 1e-05, %v1829_v60  ;;  %v1935_v54 = vadd.f32 %v4517_v21, %v1913_v48  ;;  %v1803_v2 = vmul.f32 %v4524_v30, %v4524_v30 }
 0x3bc   : > { %v1677_v40 = vpop.xlane.xlu1 %1676  ;;  %v1760_v32 = vpop.xlane.xlu0 %1759  ;;  %v1932_v41 = vadd.f32 %v4517_v21, %v1910_v62  ;;  %v1800_v28 = vmul.f32 %v4526_v38, %v4526_v38 }
 0x3bd   : > { %v1911_v11 = vmul.f32 %v4502_v47, %v1889_v43  ;;  %3554 = vrsqrt.f32 %v1861_v5  ;;  %v1786_v45 = vmul.f32 0.03125, %v1760_v32  ;;  %v1951_v37 = vmax.f32 %v1935_v54, 0.0 }
 0x3be   : > { %v1948_v25 = vmax.f32 %v1932_v41, 0.0  ;;  %v4537_v0 = vmul.f32 0.03125, %v1677_v40  ;;  %v1846_v54 = vsub.f32 %v4370_v58, %v4484_v17  ;;  %v1847_v32 = vsub.f32 %v4379_v14, %v4486_v9 }
 0x3bf   : > { %v1933_v20 = vadd.f32 %v4517_v21, %v1911_v11  ;;  %v1818_v56 = vsub.f32 %v1786_v45, %v1802_v15  ;;  %v1965_v29 = vpack.c.bf16 %v1951_v37, %v1950_v53  ;;  %v1844_v53 = vsub.f32 %v4374_v1, %v4488_v4 }
 0x3c0   : > { %v1763_v57 = vpop.xlane.xlu1 %1762  ;;  %v1754_v50 = vpop.xlane.xlu0 %1753  ;;  %v1801_v41 = vmul.f32 %v4537_v0, %v4537_v0 }
 0x3c1   : > { %v1949_v52 = vmax.f32 %v1933_v20, 0.0  ;;  %v1834_v48 = vmax.f32 %v1818_v56, 0.0  ;;  %v1787_v3 = vmul.f32 0.03125, %v1763_v57  ;;  %v1784_v12 = vmul.f32 0.03125, %v1754_v50 }
 0x3c3   : > { %v1964_v44 = vpack.c.bf16 %v1949_v52, %v1948_v25  ;;  %v3549_v60 = vpop.eup %3548  ;;  %v1866_v43 = vadd.f32 1e-05, %v1834_v48  ;;  %v1819_v62 = vsub.f32 %v1787_v3, %v1803_v2  ;;  %v1816_v5 = vsub.f32 %v1784_v12, %v1800_v28 }
 0x3c4   : > { %v1757_v11 = vpop.xlane.xlu1 %1756  ;;  %v1894_v58 = vmul.f32 %v3549_v60, %v1846_v54  ;;  %v1845_v25 = vsub.f32 %v4382_v18, %v4497_v22 }
 0x3c5   : > { %3401 = vmatprep.mubr.msk.bf16.mxu1 %vm712_vm2, %v1964_v44  ;;  %v1692_v40 = vpop.xlane.xlu0 %1691  ;;  %v1835_v15 = vmax.f32 %v1819_v62, 0.0  ;;  %v1832_v45 = vmax.f32 %v1816_v5, 0.0  ;;  %v1785_v20 = vmul.f32 0.03125, %v1757_v11  ;;  %3556 = vrsqrt.f32 %v1866_v43 }
 0x3c6   : > { %3402 = vmatmul.mubr.msk.bf16.vlgmr.msra.gmra.mxu1 %vm712_vm2, %v1965_v29  ;;  %v3551_v56 = vpop.eup %3550  ;;  %v1916_v4 = vmul.f32 %v4502_v47, %v1894_v58  ;;  %v4556_v60 = vmul.f32 0.03125, %v1692_v40 }
 0x3c7   : > { %v3553_v17 = vpop.eup %3552  ;;  %v1867_v14 = vadd.f32 1e-05, %v1835_v15  ;;  %v1864_v9 = vadd.f32 1e-05, %v1832_v45  ;;  %v1817_v37 = vsub.f32 %v1785_v20, %v1801_v41  ;;  %v1895_v2 = vmul.f32 %v3551_v56, %v1847_v32 }
 0x3c8   : > { %v1892_v50 = vmul.f32 %v3553_v17, %v1844_v53  ;;  %v1938_v41 = vadd.f32 %v4517_v21, %v1916_v4  ;;  %v1806_v15 = vmul.f32 %v4556_v60, %v4556_v60  ;;  %v1851_v4 = vsub.f32 %v4411_v31, %v4524_v30 }
 0x3c9   : > { %v1695_v28 = vpop.xlane.xlu1 %1694  ;;  %v1686_v57 = vpop.xlane.xlu0 %1685  ;;  %3558 = vrsqrt.f32 %v1867_v14  ;;  %v1833_v52 = vmax.f32 %v1817_v37, 0.0  ;;  %v1917_v12 = vmul.f32 %v4502_v47, %v1895_v2 }
 0x3ca   : > { %v4551_v48 = vmul.f32 0.03125, %v1686_v57  ;;  %v3555_v3 = vpop.eup %3554  ;;  %3560 = vrsqrt.f32 %v1864_v9  ;;  %v1914_v1 = vmul.f32 %v4502_v47, %v1892_v50  ;;  %v4568_v45 = vmul.f32 0.03125, %v1695_v28 }
 0x3cb   : > { %v1865_v44 = vadd.f32 1e-05, %v1833_v52  ;;  %v1893_v5 = vmul.f32 %v3555_v3, %v1845_v25  ;;  %v1939_v18 = vadd.f32 %v4517_v21, %v1917_v12  ;;  %v1954_v50 = vmax.f32 %v1938_v41, 0.0 }
 0x3cc   : > { %v1804_v22 = vmul.f32 %v4551_v48, %v4551_v48  ;;  %v1936_v11 = vadd.f32 %v4517_v21, %v1914_v1  ;;  %v1850_v52 = vsub.f32 %v4402_v13, %v4519_v42  ;;  %v1807_v12 = vmul.f32 %v4568_v45, %v4568_v45 }
 0x3cd   : > { %v1689_v43 = vpop.xlane.xlu1 %1688  ;;  %v1766_v62 = vpop.xlane.xlu0 %1765  ;;  %3562 = vrsqrt.f32 %v1865_v44  ;;  %v1915_v32 = vmul.f32 %v4502_v47, %v1893_v5  ;;  %v1955_v58 = vmax.f32 %v1939_v18, 0.0  ;;  %v1848_v13 = vsub.f32 %v4407_v46, %v4526_v38 }
 0x3ce   : > { %v4561_v29 = vmul.f32 0.03125, %v1689_v43  ;;  %v1788_v54 = vmul.f32 0.03125, %v1766_v62  ;;  %v1952_v2 = vmax.f32 %v1936_v11, 0.0 }
 0x3cf   : > { %v1937_v53 = vadd.f32 %v4517_v21, %v1915_v32  ;;  %v1967_v62 = vpack.c.bf16 %v1955_v58, %v1954_v50 }
 0x3d0   : > { %v1820_v40 = vsub.f32 %v1788_v54, %v1804_v22  ;;  %v1805_v17 = vmul.f32 %v4561_v29, %v4561_v29 }
 0x3d1   : > { %v1769_v20 = vpop.xlane.xlu1 %1768  ;;  %v1772_v56 = vpop.xlane.xlu0 %1771  ;;  %v1953_v57 = vmax.f32 %v1937_v53, 0.0 }
 0x3d2   : > { %v1836_v14 = vmax.f32 %v1820_v40, 0.0  ;;  %v1789_v9 = vmul.f32 0.03125, %v1769_v20  ;;  %v1790_v37 = vmul.f32 0.03125, %v1772_v56  ;;  %v3557_v25 = vpop.eup %3556 }
 0x3d3   : > { %v1966_v43 = vpack.c.bf16 %v1953_v57, %v1952_v2  ;;  %v1898_v42 = vmul.f32 %v3557_v25, %v1850_v52  ;;  %v1852_v57 = vsub.f32 %v4440_v61, %v4551_v48 }
 0x3d4   : > { %v1868_v28 = vadd.f32 1e-05, %v1836_v14  ;;  %v1821_v3 = vsub.f32 %v1789_v9, %v1805_v17  ;;  %v1822_v1 = vsub.f32 %v1790_v37, %v1806_v15  ;;  %v1849_v15 = vsub.f32 %v4416_v6, %v4537_v0 }
 0x3d5   : > { %v1775_v44 = vpop.xlane.xlu1 %1774  ;;  %3405 = vmatprep.mubr.msk.bf16.mxu1 %vm712_vm2, %v1966_v43  ;;  %v1920_v38 = vmul.f32 %v4502_v47, %v1898_v42 }
 0x3d6   : > { %3564 = vrsqrt.f32 %v1868_v28  ;;  %v1837_v5 = vmax.f32 %v1821_v3, 0.0  ;;  %v1838_v18 = vmax.f32 %v1822_v1, 0.0  ;;  %v1791_v22 = vmul.f32 0.03125, %v1775_v44  ;;  %v3559_v54 = vpop.eup %3558  ;;  %3406 = vmatmul.mubr.msk.bf16.gmra.mxu1 %vm712_vm2, %v1967_v62 }
 0x3d7   : > { %v3561_v32 = vpop.eup %3560  ;;  %v1899_v41 = vmul.f32 %v3559_v54, %v1851_v4  ;;  %v1942_v6 = vadd.f32 %v4517_v21, %v1920_v38  ;;  %v1854_v62 = vsub.f32 %v4434_v26, %v4556_v60 }
 0x3d8   : > { %v1869_v11 = vadd.f32 1e-05, %v1837_v5  ;;  %v1870_v31 = vadd.f32 1e-05, %v1838_v18  ;;  %v1823_v30 = vsub.f32 %v1791_v22, %v1807_v12  ;;  %v1896_v40 = vmul.f32 %v3561_v32, %v1848_v13 }
 0x3d9   : > { %v1921_v56 = vmul.f32 %v4502_v47, %v1899_v41  ;;  %v1958_v28 = vmax.f32 %v1942_v6, 0.0  ;;  %v1853_v12 = vsub.f32 %v4452_v63, %v4561_v29  ;;  %v1855_v18 = vsub.f32 %v4446_v16, %v4568_v45 }
 0x3da   : > { %3566 = vrsqrt.f32 %v1869_v11  ;;  %v1839_v20 = vmax.f32 %v1823_v30, 0.0  ;;  %v3563_v53 = vpop.eup %3562  ;;  %v1918_v46 = vmul.f32 %v4502_v47, %v1896_v40  ;;  %v4616_v40 = vld [vmem:[%s5263_s14] ss:$0 sm:$0xff] }
 0x3db   : > { %3568 = vrsqrt.f32 %v1870_v31  ;;  %v1897_v17 = vmul.f32 %v3563_v53, %v1849_v15  ;;  %v1943_v14 = vadd.f32 %v4517_v21, %v1921_v56 }
 0x3dc   : > { %v1871_v58 = vadd.f32 1e-05, %v1839_v20  ;;  %v1940_v37 = vadd.f32 %v4517_v21, %v1918_v46 }
 0x3dd   : > { %v1919_v9 = vmul.f32 %v4502_v47, %v1897_v17  ;;  %v1959_v2 = vmax.f32 %v1943_v14, 0.0 }
 0x3de   : > { %3570 = vrsqrt.f32 %v1871_v58  ;;  %v1956_v50 = vmax.f32 %v1940_v37, 0.0 }
 0x3df   : > { %v1941_v0 = vadd.f32 %v4517_v21, %v1919_v9  ;;  %v1969_v4 = vpack.c.bf16 %v1959_v2, %v1958_v28 }
 0x3e1   : > { %v1957_v25 = vmax.f32 %v1941_v0, 0.0 }
 0x3e3   : > { %v3565_v52 = vpop.eup %3564  ;;  %v1968_v3 = vpack.c.bf16 %v1957_v25, %v1956_v50 }
 0x3e4   : > { %v1900_v1 = vmul.f32 %v3565_v52, %v1852_v57 }
 0x3e5   : > { %3409 = vmatprep.mubr.msk.bf16.mxu1 %vm712_vm2, %v1968_v3 }
 0x3e6   : > { %v1922_v44 = vmul.f32 %v4502_v47, %v1900_v1  ;;  %3410 = vmatmul.mubr.msk.bf16.gmra.mxu1 %vm712_vm2, %v1969_v4 }
 0x3e7   : > { %v3567_v43 = vpop.eup %3566 }
 0x3e8   : > { %v3569_v61 = vpop.eup %3568  ;;  %v1901_v48 = vmul.f32 %v3567_v43, %v1853_v12  ;;  %v1944_v63 = vadd.f32 %v4517_v21, %v1922_v44 }
 0x3e9   : > { %v1902_v5 = vmul.f32 %v3569_v61, %v1854_v62 }
 0x3ea   : > { %v1923_v22 = vmul.f32 %v4502_v47, %v1901_v48  ;;  %v1960_v32 = vmax.f32 %v1944_v63, 0.0 }
 0x3eb   : > { %v3571_v29 = vpop.eup %3570  ;;  %v1924_v54 = vmul.f32 %v4502_v47, %v1902_v5 }
 0x3ec   : > { %v1945_v13 = vadd.f32 %v4517_v21, %v1923_v22  ;;  %v1903_v42 = vmul.f32 %v3571_v29, %v1855_v18 }
 0x3ed   : > { %v1946_v11 = vadd.f32 %v4517_v21, %v1924_v54 }
 0x3ee   : > { %v1961_v26 = vmax.f32 %v1945_v13, 0.0  ;;  %v1925_v60 = vmul.f32 %v4502_v47, %v1903_v42 }
 0x3ef   : > { %v1962_v16 = vmax.f32 %v1946_v11, 0.0 }
 0x3f0   : > { %v1970_v31 = vpack.c.bf16 %v1961_v26, %v1960_v32  ;;  %v1947_v30 = vadd.f32 %v4517_v21, %v1925_v60 }
 0x3f2   : > { %3413 = vmatprep.mubr.msk.bf16.mxu1 %vm712_vm2, %v1970_v31  ;;  %v1963_v45 = vmax.f32 %v1947_v30, 0.0 }
 0x3f4   : > { %v1971_v41 = vpack.c.bf16 %v1963_v45, %v1962_v16 }
 0x3f6   : > { %3414 = vmatmul.mubr.msk.bf16.gmra.mxu1 %vm712_vm2, %v1971_v41 }
 0x486   : > { %v3403_v15 = vpop.f32.mrf.mxu1 }
 0x487   : > { %v2062_v47 = vadd.f32 %v3403_v15, %v4616_v40 }
 0x488   : > { %v2053_v20 = vpop.f32.mrf.mxu1 }
 0x489   : > { %v4620_v56 = vadd.f32 %v2062_v47, %v3982_v23  ;;  %v2054_v21 = vadd.f32 %v4616_v40, %v2053_v20 }
 0x48a   : > { %v3404_v53 = vpop.f32.mrf.mxu1 }
 0x48b   : > { %v4624_v46 = vadd.f32 %v2054_v21, %v4006_v55  ;;  %v2065_v38 = vadd.f32 %v3404_v53, %v4616_v40  ;;  %v2142_v58 = vsel %vm712_vm2, %v4620_v56, 0.0  ;;  %v2202_v6 = vmul.f32 %v4620_v56, %v4620_v56 }
 0x48c   : > { %2143 = vadd.xlane.f32.xlu0 %v2142_v58  ;;  %v2056_v17 = vpop.f32.mrf.mxu1 }
 0x48d   : > { %v4630_v14 = vadd.f32 %v2065_v38, %v3991_v39  ;;  %v2057_v9 = vadd.f32 %v4616_v40, %v2056_v17  ;;  %v2136_v55 = vsel %vm712_vm2, %v4624_v46, 0.0  ;;  %v2222_v0 = vsel %vm712_vm2, %v2202_v6, 0.0 }
 0x48e   : > { %v2200_v2 = vmul.f32 %v4624_v46, %v4624_v46 }
 0x48f   : > { %v4634_v23 = vadd.f32 %v2057_v9, %v4017_v10  ;;  %v2145_v37 = vsel %vm712_vm2, %v4630_v14, 0.0  ;;  %v2203_v10 = vmul.f32 %v4630_v14, %v4630_v14 }
 0x490   : > { %2146 = vadd.xlane.f32.xlu1 %v2145_v37  ;;  %2137 = vadd.xlane.f32.xlu0 %v2136_v55  ;;  %v2216_v50 = vsel %vm712_vm2, %v2200_v2, 0.0 }
 0x491   : > { %v2139_v39 = vsel %vm712_vm2, %v4634_v23, 0.0  ;;  %v2225_v57 = vsel %vm712_vm2, %v2203_v10, 0.0  ;;  %v2201_v25 = vmul.f32 %v4634_v23, %v4634_v23 }
 0x493   : > { %v2219_v12 = vsel %vm712_vm2, %v2201_v25, 0.0  ;;  %v3472_v25 = vld [vmem:[%s5258_s9 + $0x18] sm:$0xff]  }
 0x494   : > { %2140 = vadd.xlane.f32.xlu1 %v2139_v39  ;;  %2223 = vadd.xlane.f32.xlu0 %v2222_v0 }
 0x495   : > { %3417 = vmatprep.subr.bf16.mxu0 %v3472_v25 }
 0x496   : > { %v3407_v52 = vpop.f32.mrf.mxu1  ;;  %3418 = vmatpush3.bf16.msra.mxu0 %v3472_v25 }
 0x497   : > { %v2078_v28 = vadd.f32 %v3407_v52, %v4616_v40 }
 0x498   : > { %2226 = vadd.xlane.f32.xlu1 %v2225_v57  ;;  %2217 = vadd.xlane.f32.xlu0 %v2216_v50  ;;  %v2069_v3 = vpop.f32.mrf.mxu1 }
 0x499   : > { %v4655_v1 = vadd.f32 %v2078_v28, %v4051_v34  ;;  %v2070_v4 = vadd.f32 %v4616_v40, %v2069_v3 }
 0x49a   : > { %v3408_v44 = vpop.f32.mrf.mxu1 }
 0x49b   : > { %v4660_v43 = vadd.f32 %v2070_v4, %v4075_v33  ;;  %v2081_v62 = vadd.f32 %v3408_v44, %v4616_v40  ;;  %v2154_v61 = vsel %vm712_vm2, %v4655_v1, 0.0  ;;  %v2206_v63 = vmul.f32 %v4655_v1, %v4655_v1 }
 0x49c   : > { %2220 = vadd.xlane.f32.xlu1 %v2219_v12  ;;  %2155 = vadd.xlane.f32.xlu0 %v2154_v61  ;;  %v2072_v48 = vpop.f32.mrf.mxu1 }
 0x49d   : > { %v4666_v5 = vadd.f32 %v2081_v62, %v4053_v35  ;;  %v2073_v34 = vadd.f32 %v4616_v40, %v2072_v48  ;;  %v2148_v33 = vsel %vm712_vm2, %v4660_v43, 0.0  ;;  %v2234_v29 = vsel %vm712_vm2, %v2206_v63, 0.0  ;;  %v3473_v48 = vld [vmem:[%s5258_s9 + $0x10] sm:$0xff]  }
 0x49e   : > { %v2204_v54 = vmul.f32 %v4660_v43, %v4660_v43  ;;  %3419 = vmatprep.subr.bf16.mxu0 %v3473_v48 }
 0x49f   : > { %v4670_v18 = vadd.f32 %v2073_v34, %v4081_v36  ;;  %v2157_v22 = vsel %vm712_vm2, %v4666_v5, 0.0  ;;  %v2207_v36 = vmul.f32 %v4666_v5, %v4666_v5  ;;  %3420 = vmatpush3.bf16.msra.mxu0 %v3473_v48 }
 0x4a0   : > { %2158 = vadd.xlane.f32.xlu1 %v2157_v22  ;;  %2149 = vadd.xlane.f32.xlu0 %v2148_v33  ;;  %v2228_v26 = vsel %vm712_vm2, %v2204_v54, 0.0 }
 0x4a1   : > { %v2151_v35 = vsel %vm712_vm2, %v4670_v18, 0.0  ;;  %v2237_v32 = vsel %vm712_vm2, %v2207_v36, 0.0  ;;  %v2205_v11 = vmul.f32 %v4670_v18, %v4670_v18 }
 0x4a3   : > { %v2231_v47 = vsel %vm712_vm2, %v2205_v11, 0.0 }
 0x4a4   : > { %2152 = vadd.xlane.f32.xlu1 %v2151_v35  ;;  %2235 = vadd.xlane.f32.xlu0 %v2234_v29 }
 0x4a6   : > { %v3411_v13 = vpop.f32.mrf.mxu1 }
 0x4a7   : > { %v2094_v42 = vadd.f32 %v3411_v13, %v4616_v40 }
 0x4a8   : > { %v2085_v60 = vpop.f32.mrf.mxu1  ;;  %2238 = vadd.xlane.f32.xlu1 %v2237_v32  ;;  %2229 = vadd.xlane.f32.xlu0 %v2228_v26 }
 0x4a9   : > { %v4691_v31 = vadd.f32 %v2094_v42, %v4105_v19  ;;  %v2086_v30 = vadd.f32 %v4616_v40, %v2085_v60 }
 0x4aa   : > { %v3412_v16 = vpop.f32.mrf.mxu1 }
 0x4ab   : > { %v2097_v45 = vadd.f32 %v3412_v16, %v4616_v40  ;;  %v2166_v41 = vsel %vm712_vm2, %v4691_v31, 0.0  ;;  %v4698_v15 = vadd.f32 %v2086_v30, %v4115_v24  ;;  %v2210_v58 = vmul.f32 %v4691_v31, %v4691_v31 }
 0x4ac   : > { %v2088_v20 = vpop.f32.mrf.mxu1  ;;  %2232 = vadd.xlane.f32.xlu1 %v2231_v47  ;;  %2167 = vadd.xlane.f32.xlu0 %v2166_v41 }
 0x4ad   : > { %v4702_v21 = vadd.f32 %v2097_v45, %v4109_v51  ;;  %v2089_v19 = vadd.f32 %v4616_v40, %v2088_v20  ;;  %v2160_v24 = vsel %vm712_vm2, %v4698_v15, 0.0  ;;  %v2208_v51 = vmul.f32 %v4698_v15, %v4698_v15 }
 0x4ae   : > { %v2246_v9 = vsel %vm712_vm2, %v2210_v58, 0.0 }
 0x4af   : > { %v2169_v53 = vsel %vm712_vm2, %v4702_v21, 0.0  ;;  %v4708_v38 = vadd.f32 %v2089_v19, %v4119_v27  ;;  %v2211_v27 = vmul.f32 %v4702_v21, %v4702_v21  ;;  %v2240_v6 = vsel %vm712_vm2, %v2208_v51, 0.0 }
 0x4b0   : > { %2170 = vadd.xlane.f32.xlu1 %v2169_v53  ;;  %2161 = vadd.xlane.f32.xlu0 %v2160_v24 }
 0x4b1   : > { %v2163_v17 = vsel %vm712_vm2, %v4708_v38, 0.0  ;;  %v2249_v10 = vsel %vm712_vm2, %v2211_v27, 0.0  ;;  %v2209_v57 = vmul.f32 %v4708_v38, %v4708_v38 }
 0x4b3   : > { %v2243_v12 = vsel %vm712_vm2, %v2209_v57, 0.0 }
 0x4b4   : > { %2164 = vadd.xlane.f32.xlu1 %v2163_v17  ;;  %2247 = vadd.xlane.f32.xlu0 %v2246_v9 }
 0x4b6   : > { %v3415_v37 = vpop.f32.mrf.mxu1 }
 0x4b7   : > { %v2110_v55 = vadd.f32 %v3415_v37, %v4616_v40 }
 0x4b8   : > { %v2101_v39 = vpop.f32.mrf.mxu1  ;;  %2250 = vadd.xlane.f32.xlu1 %v2249_v10  ;;  %2241 = vadd.xlane.f32.xlu0 %v2240_v6 }
 0x4b9   : > { %v4724_v0 = vadd.f32 %v2110_v55, %v4163_v7  ;;  %v2102_v2 = vadd.f32 %v4616_v40, %v2101_v39 }
 0x4ba   : > { %v3416_v50 = vpop.f32.mrf.mxu1 }
 0x4bb   : > { %v2113_v52 = vadd.f32 %v3416_v50, %v4616_v40  ;;  %v2178_v7 = vsel %vm712_vm2, %v4724_v0, 0.0  ;;  %v4737_v3 = vadd.f32 %v2102_v2, %v4169_v49  ;;  %v2214_v22 = vmul.f32 %v4724_v0, %v4724_v0 }
 0x4bc   : > { %v2104_v28 = vpop.f32.mrf.mxu1  ;;  %2244 = vadd.xlane.f32.xlu1 %v2243_v12  ;;  %2179 = vadd.xlane.f32.xlu0 %v2178_v7 }
 0x4bd   : > { %v4740_v4 = vadd.f32 %v2113_v52, %v4154_v59  ;;  %v2105_v44 = vadd.f32 %v4616_v40, %v2104_v28  ;;  %v2172_v49 = vsel %vm712_vm2, %v4737_v3, 0.0  ;;  %v2212_v59 = vmul.f32 %v4737_v3, %v4737_v3 }
 0x4be   : > { %v2258_v63 = vsel %vm712_vm2, %v2214_v22, 0.0 }
 0x4bf   : > { %v2181_v62 = vsel %vm712_vm2, %v4740_v4, 0.0  ;;  %v4747_v61 = vadd.f32 %v2105_v44, %v4165_v8  ;;  %v2252_v8 = vsel %vm712_vm2, %v2212_v59, 0.0  ;;  %v2215_v35 = vmul.f32 %v4740_v4, %v4740_v4 }
 0x4c0   : > { %2182 = vadd.xlane.f32.xlu1 %v2181_v62  ;;  %2173 = vadd.xlane.f32.xlu0 %v2172_v49 }
 0x4c1   : > { %v2175_v40 = vsel %vm712_vm2, %v4747_v61, 0.0  ;;  %v2213_v34 = vmul.f32 %v4747_v61, %v4747_v61  ;;  %v2261_v29 = vsel %vm712_vm2, %v2215_v35, 0.0 }
 0x4c3   : > { %v2255_v33 = vsel %vm712_vm2, %v2213_v34, 0.0 }
 0x4c4   : > { %2176 = vadd.xlane.f32.xlu1 %v2175_v40  ;;  %2253 = vadd.xlane.f32.xlu0 %v2252_v8 }
 0x4c8   : > { %2256 = vadd.xlane.f32.xlu1 %v2255_v33  ;;  %2259 = vadd.xlane.f32.xlu0 %v2258_v63 }
 0x4cc   : > { %2262 = vadd.xlane.f32.xlu1 %v2261_v29 }
 0x515   : > { %v2144_v36 = vpop.xlane.xlu0 %2143 }
 0x516   : > { %v2186_v42 = vmul.f32 0.03125, %v2144_v36 }
 0x518   : > { %v2282_v11 = vmul.f32 %v2186_v42, %v2186_v42  ;;  %v2330_v33 = vsub.f32 %v4620_v56, %v2186_v42 }
 0x519   : > { %v2147_v54 = vpop.xlane.xlu1 %2146  ;;  %v2138_v13 = vpop.xlane.xlu0 %2137 }
 0x51a   : > { %v4768_v32 = vmul.f32 0.03125, %v2147_v54  ;;  %v4770_v30 = vmul.f32 0.03125, %v2138_v13 }
 0x51c   : > { %v2283_v41 = vmul.f32 %v4768_v32, %v4768_v32  ;;  %v2280_v53 = vmul.f32 %v4770_v30, %v4770_v30 }
 0x51d   : > { %v2141_v26 = vpop.xlane.xlu1 %2140  ;;  %v2224_v60 = vpop.xlane.xlu0 %2223 }
 0x51e   : > { %v2266_v16 = vmul.f32 0.03125, %v2224_v60  ;;  %v4774_v47 = vmul.f32 0.03125, %v2141_v26  ;;  %v2331_v60 = vsub.f32 %v4630_v14, %v4768_v32 }
 0x520   : > { %v2298_v45 = vsub.f32 %v2266_v16, %v2282_v11  ;;  %v2281_v37 = vmul.f32 %v4774_v47, %v4774_v47  ;;  %v2329_v32 = vsub.f32 %v4634_v23, %v4774_v47  ;;  %v4813_v47 = vld [vmem:[%s5257_s8 + $0x1] ss:$0 sm:$0xff] }
 0x521   : > { %v2227_v20 = vpop.xlane.xlu1 %2226  ;;  %v2218_v19 = vpop.xlane.xlu0 %2217 }
 0x522   : > { %v2314_v24 = vmax.f32 %v2298_v45, 0.0  ;;  %v2267_v58 = vmul.f32 0.03125, %v2227_v20  ;;  %v2264_v51 = vmul.f32 0.03125, %v2218_v19  ;;  %v2328_v19 = vsub.f32 %v4624_v46, %v4770_v30 }
 0x524   : > { %v2346_v17 = vadd.f32 1e-05, %v2314_v24  ;;  %v2299_v9 = vsub.f32 %v2267_v58, %v2283_v41  ;;  %v2296_v27 = vsub.f32 %v2264_v51, %v2280_v53  ;;  %v4802_v53 = vld [vmem:[%s5256_s7 + $0x1] ss:$0 sm:$0xff] }
 0x525   : > { %v2221_v55 = vpop.xlane.xlu1 %2220  ;;  %v2156_v2 = vpop.xlane.xlu0 %2155 }
 0x526   : > { %3572 = vrsqrt.f32 %v2346_v17  ;;  %v2315_v6 = vmax.f32 %v2299_v9, 0.0  ;;  %v2312_v39 = vmax.f32 %v2296_v27, 0.0  ;;  %v2265_v10 = vmul.f32 0.03125, %v2221_v55 }
 0x527   : > { %v4780_v44 = vmul.f32 0.03125, %v2156_v2 }
 0x528   : > { %v2347_v57 = vadd.f32 1e-05, %v2315_v6  ;;  %v2344_v50 = vadd.f32 1e-05, %v2312_v39  ;;  %v2297_v25 = vsub.f32 %v2265_v10, %v2281_v37 }
 0x529   : > { %v2159_v7 = vpop.xlane.xlu1 %2158  ;;  %v2150_v28 = vpop.xlane.xlu0 %2149  ;;  %v2286_v48 = vmul.f32 %v4780_v44, %v4780_v44 }
 0x52a   : > { %3574 = vrsqrt.f32 %v2347_v57  ;;  %v2313_v52 = vmax.f32 %v2297_v25, 0.0  ;;  %v4782_v62 = vmul.f32 0.03125, %v2159_v7  ;;  %v4786_v40 = vmul.f32 0.03125, %v2150_v28 }
 0x52b   : > { %3576 = vrsqrt.f32 %v2344_v50 }
 0x52c   : > { %v2345_v12 = vadd.f32 1e-05, %v2313_v52  ;;  %v2287_v63 = vmul.f32 %v4782_v62, %v4782_v62  ;;  %v2284_v36 = vmul.f32 %v4786_v40, %v4786_v40 }
 0x52d   : > { %v2153_v49 = vpop.xlane.xlu1 %2152  ;;  %v2236_v59 = vpop.xlane.xlu0 %2235 }
 0x52e   : > { %3578 = vrsqrt.f32 %v2345_v12  ;;  %v2270_v8 = vmul.f32 0.03125, %v2236_v59  ;;  %v4795_v11 = vmul.f32 0.03125, %v2153_v49 }
 0x530   : > { %v2302_v34 = vsub.f32 %v2270_v8, %v2286_v48  ;;  %v2285_v37 = vmul.f32 %v4795_v11, %v4795_v11 }
 0x531   : > { %v2239_v35 = vpop.xlane.xlu1 %2238  ;;  %v2230_v29 = vpop.xlane.xlu0 %2229 }
 0x532   : > { %v2318_v54 = vmax.f32 %v2302_v34, 0.0  ;;  %v2271_v13 = vmul.f32 0.03125, %v2239_v35  ;;  %v2268_v26 = vmul.f32 0.03125, %v2230_v29 }
 0x533   : > { %v3573_v22 = vpop.eup %3572 }
 0x534   : > { %v2378_v16 = vmul.f32 %v3573_v22, %v2330_v33  ;;  %v2350_v45 = vadd.f32 1e-05, %v2318_v54  ;;  %v2303_v41 = vsub.f32 %v2271_v13, %v2287_v63  ;;  %v2300_v42 = vsub.f32 %v2268_v26, %v2284_v36 }
 0x535   : > { %v2233_v24 = vpop.xlane.xlu1 %2232  ;;  %v2168_v58 = vpop.xlane.xlu0 %2167 }
 0x536   : > { %v2319_v9 = vmax.f32 %v2303_v41, 0.0  ;;  %v2316_v27 = vmax.f32 %v2300_v42, 0.0  ;;  %3580 = vrsqrt.f32 %v2350_v45  ;;  %v2269_v55 = vmul.f32 0.03125, %v2233_v24 }
 0x537   : > { %v3575_v20 = vpop.eup %3574  ;;  %v2400_v6 = vmul.f32 %v4802_v53, %v2378_v16  ;;  %v4816_v28 = vmul.f32 0.03125, %v2168_v58 }
 0x538   : > { %v3577_v51 = vpop.eup %3576  ;;  %v2379_v17 = vmul.f32 %v3575_v20, %v2331_v60  ;;  %v2351_v10 = vadd.f32 1e-05, %v2319_v9  ;;  %v2348_v2 = vadd.f32 1e-05, %v2316_v27  ;;  %v2301_v50 = vsub.f32 %v2269_v55, %v2285_v37 }
 0x539   : > { %v2376_v30 = vmul.f32 %v3577_v51, %v2328_v19  ;;  %v2171_v25 = vpop.xlane.xlu1 %2170  ;;  %v2162_v52 = vpop.xlane.xlu0 %2161  ;;  %v2422_v48 = vadd.f32 %v4813_v47, %v2400_v6  ;;  %v2290_v36 = vmul.f32 %v4816_v28, %v4816_v28 }
 0x53a   : > { %v2401_v39 = vmul.f32 %v4802_v53, %v2379_v17  ;;  %3582 = vrsqrt.f32 %v2351_v10  ;;  %v2317_v49 = vmax.f32 %v2301_v50, 0.0  ;;  %v4818_v59 = vmul.f32 0.03125, %v2171_v25 }
 0x53b   : > { %v3579_v57 = vpop.eup %3578  ;;  %v2398_v7 = vmul.f32 %v4802_v53, %v2376_v30  ;;  %3584 = vrsqrt.f32 %v2348_v2  ;;  %v4822_v22 = vmul.f32 0.03125, %v2162_v52  ;;  %v2438_v24 = vmax.f32 %v2422_v48, 0.0 }
 0x53c   : > { %v2377_v12 = vmul.f32 %v3579_v57, %v2329_v32  ;;  %v2423_v8 = vadd.f32 %v4813_v47, %v2401_v39  ;;  %v2349_v34 = vadd.f32 1e-05, %v2317_v49  ;;  %v2291_v26 = vmul.f32 %v4818_v59, %v4818_v59 }
 0x53d   : > { %v2165_v33 = vpop.xlane.xlu1 %2164  ;;  %v2248_v63 = vpop.xlane.xlu0 %2247  ;;  %v2420_v29 = vadd.f32 %v4813_v47, %v2398_v7  ;;  %v2288_v45 = vmul.f32 %v4822_v22, %v4822_v22  ;;  %v2334_v39 = vsub.f32 %v4655_v1, %v4780_v44  ;;  %v2335_v10 = vsub.f32 %v4666_v5, %v4782_v62 }
 0x53e   : > { %v2399_v35 = vmul.f32 %v4802_v53, %v2377_v12  ;;  %v2274_v54 = vmul.f32 0.03125, %v2248_v63  ;;  %3586 = vrsqrt.f32 %v2349_v34  ;;  %v2439_v16 = vmax.f32 %v2423_v8, 0.0 }
 0x53f   : > { %v2436_v20 = vmax.f32 %v2420_v29, 0.0  ;;  %v4833_v58 = vmul.f32 0.03125, %v2165_v33  ;;  %v2332_v49 = vsub.f32 %v4660_v43, %v4786_v40 }
 0x540   : > { %v2421_v13 = vadd.f32 %v4813_v47, %v2399_v35  ;;  %v2306_v60 = vsub.f32 %v2274_v54, %v2290_v36  ;;  %v2453_v6 = vpack.c.bf16 %v2439_v16, %v2438_v24  ;;  %v2333_v36 = vsub.f32 %v4670_v18, %v4795_v11 }
 0x541   : > { %v2251_v41 = vpop.xlane.xlu1 %2250  ;;  %v2242_v42 = vpop.xlane.xlu0 %2241  ;;  %v2289_v50 = vmul.f32 %v4833_v58, %v4833_v58 }
 0x542   : > { %v2437_v19 = vmax.f32 %v2421_v13, 0.0  ;;  %v2322_v51 = vmax.f32 %v2306_v60, 0.0  ;;  %v2275_v32 = vmul.f32 0.03125, %v2251_v41  ;;  %v2272_v17 = vmul.f32 0.03125, %v2242_v42 }
 0x543   : > { %v3581_v27 = vpop.eup %3580 }
 0x544   : > { %v2452_v9 = vpack.c.bf16 %v2437_v19, %v2436_v20  ;;  %v2354_v37 = vadd.f32 1e-05, %v2322_v51  ;;  %v2307_v55 = vsub.f32 %v2275_v32, %v2291_v26  ;;  %v2304_v30 = vsub.f32 %v2272_v17, %v2288_v45 }
 0x545   : > { %v2245_v2 = vpop.xlane.xlu1 %2244  ;;  %v2180_v57 = vpop.xlane.xlu0 %2179  ;;  %v2382_v44 = vmul.f32 %v3581_v27, %v2334_v39 }
 0x546   : > { %3421 = vmatprep.mubr.msk.bf16.mxu0 %vm712_vm2, %v2452_v9  ;;  %v2323_v25 = vmax.f32 %v2307_v55, 0.0  ;;  %v2320_v52 = vmax.f32 %v2304_v30, 0.0  ;;  %v2273_v7 = vmul.f32 0.03125, %v2245_v2  ;;  %3588 = vrsqrt.f32 %v2354_v37 }
 0x547   : > { %3422 = vmatmul.mubr.msk.bf16.vlgmr.msra.gmra.mxu0 %vm712_vm2, %v2453_v6  ;;  %v3583_v12 = vpop.eup %3582  ;;  %v2404_v26 = vmul.f32 %v4802_v53, %v2382_v44  ;;  %v4852_v41 = vmul.f32 0.03125, %v2180_v57 }
 0x548   : > { %v3585_v48 = vpop.eup %3584  ;;  %v2355_v62 = vadd.f32 1e-05, %v2323_v25  ;;  %v2352_v8 = vadd.f32 1e-05, %v2320_v52  ;;  %v2305_v34 = vsub.f32 %v2273_v7, %v2289_v50  ;;  %v2383_v33 = vmul.f32 %v3583_v12, %v2335_v10 }
 0x549   : > { %v2183_v63 = vpop.xlane.xlu1 %2182  ;;  %v2174_v35 = vpop.xlane.xlu0 %2173  ;;  %v2380_v29 = vmul.f32 %v3585_v48, %v2332_v49  ;;  %v2426_v27 = vadd.f32 %v4813_v47, %v2404_v26  ;;  %v2294_v55 = vmul.f32 %v4852_v41, %v4852_v41  ;;  %v2338_v48 = vsub.f32 %v4691_v31, %v4816_v28 }
 0x54a   : > { %3590 = vrsqrt.f32 %v2355_v62  ;;  %v2321_v54 = vmax.f32 %v2305_v34, 0.0  ;;  %v4847_v13 = vmul.f32 0.03125, %v2174_v35  ;;  %v2405_v60 = vmul.f32 %v4802_v53, %v2383_v33 }
 0x54b   : > { %3592 = vrsqrt.f32 %v2352_v8  ;;  %v2402_v40 = vmul.f32 %v4802_v53, %v2380_v29  ;;  %v3587_v16 = vpop.eup %3586  ;;  %v4864_v30 = vmul.f32 0.03125, %v2183_v63  ;;  %v2442_v49 = vmax.f32 %v2426_v27, 0.0 }
 0x54c   : > { %v2353_v45 = vadd.f32 1e-05, %v2321_v54  ;;  %v2381_v19 = vmul.f32 %v3587_v16, %v2333_v36  ;;  %v2427_v11 = vadd.f32 %v4813_v47, %v2405_v60  ;;  %v2292_v24 = vmul.f32 %v4847_v13, %v4847_v13 }
 0x54d   : > { %v2177_v42 = vpop.xlane.xlu1 %2176  ;;  %v2254_v20 = vpop.xlane.xlu0 %2253  ;;  %v2424_v9 = vadd.f32 %v4813_v47, %v2402_v40  ;;  %v2339_v33 = vsub.f32 %v4702_v21, %v4818_v59  ;;  %v2295_v63 = vmul.f32 %v4864_v30, %v4864_v30  ;;  %v2336_v28 = vsub.f32 %v4698_v15, %v4822_v22 }
 0x54e   : > { %3594 = vrsqrt.f32 %v2353_v45  ;;  %v4857_v51 = vmul.f32 0.03125, %v2177_v42  ;;  %v2276_v32 = vmul.f32 0.03125, %v2254_v20  ;;  %v2403_v17 = vmul.f32 %v4802_v53, %v2381_v19 }
 0x54f   : > { %v2443_v2 = vmax.f32 %v2427_v11, 0.0  ;;  %v2440_v7 = vmax.f32 %v2424_v9, 0.0 }
 0x550   : > { %v2308_v37 = vsub.f32 %v2276_v32, %v2292_v24  ;;  %v2425_v10 = vadd.f32 %v4813_v47, %v2403_v17  ;;  %v2293_v57 = vmul.f32 %v4857_v51, %v4857_v51  ;;  %v2337_v24 = vsub.f32 %v4708_v38, %v4833_v58 }
 0x551   : > { %v2257_v6 = vpop.xlane.xlu1 %2256  ;;  %v2260_v39 = vpop.xlane.xlu0 %2259  ;;  %v2455_v36 = vpack.c.bf16 %v2443_v2, %v2442_v49 }
 0x552   : > { %v2324_v50 = vmax.f32 %v2308_v37, 0.0  ;;  %v2277_v25 = vmul.f32 0.03125, %v2257_v6  ;;  %v2278_v52 = vmul.f32 0.03125, %v2260_v39  ;;  %v2441_v12 = vmax.f32 %v2425_v10, 0.0 }
 0x553   : > { %v3589_v44 = vpop.eup %3588 }
 0x554   : > { %v2356_v62 = vadd.f32 1e-05, %v2324_v50  ;;  %v2309_v8 = vsub.f32 %v2277_v25, %v2293_v57  ;;  %v2310_v34 = vsub.f32 %v2278_v52, %v2294_v55  ;;  %v2454_v29 = vpack.c.bf16 %v2441_v12, %v2440_v7 }
 0x555   : > { %v2263_v35 = vpop.xlane.xlu1 %2262  ;;  %v2386_v16 = vmul.f32 %v3589_v44, %v2338_v48  ;;  %v2340_v50 = vsub.f32 %v4737_v3, %v4847_v13 }
 0x556   : > { %3596 = vrsqrt.f32 %v2356_v62  ;;  %v2325_v54 = vmax.f32 %v2309_v8, 0.0  ;;  %v2326_v40 = vmax.f32 %v2310_v34, 0.0  ;;  %v2279_v26 = vmul.f32 0.03125, %v2263_v35  ;;  %3425 = vmatprep.mubr.msk.bf16.mxu0 %vm712_vm2, %v2454_v29 }
 0x557   : > { %v3591_v60 = vpop.eup %3590  ;;  %3426 = vmatmul.mubr.msk.bf16.gmra.mxu0 %vm712_vm2, %v2455_v36  ;;  %v2408_v27 = vmul.f32 %v4802_v53, %v2386_v16  ;;  %v2341_v62 = vsub.f32 %v4747_v61, %v4857_v51  ;;  %v2343_v29 = vsub.f32 %v4740_v4, %v4864_v30 }
 0x558   : > { %v3593_v45 = vpop.eup %3592  ;;  %v2357_v42 = vadd.f32 1e-05, %v2325_v54  ;;  %v2358_v59 = vadd.f32 1e-05, %v2326_v40  ;;  %v2311_v20 = vsub.f32 %v2279_v26, %v2295_v63  ;;  %v2387_v19 = vmul.f32 %v3591_v60, %v2339_v33 }
 0x559   : > { %v2384_v11 = vmul.f32 %v3593_v45, %v2336_v28  ;;  %v2430_v58 = vadd.f32 %v4813_v47, %v2408_v27  ;;  %v2342_v33 = vsub.f32 %v4724_v0, %v4852_v41 }
 0x55a   : > { %3598 = vrsqrt.f32 %v2357_v42  ;;  %v2327_v32 = vmax.f32 %v2311_v20, 0.0  ;;  %v2409_v17 = vmul.f32 %v4802_v53, %v2387_v19 }
 0x55b   : > { %v3595_v9 = vpop.eup %3594  ;;  %3600 = vrsqrt.f32 %v2358_v59  ;;  %v2406_v22 = vmul.f32 %v4802_v53, %v2384_v11  ;;  %v2446_v12 = vmax.f32 %v2430_v58, 0.0  ;;  %v4912_v11 = vld [vmem:[%s5259_s10 + $0x1] ss:$0 sm:$0xff] }
 0x55c   : > { %v2359_v37 = vadd.f32 1e-05, %v2327_v32  ;;  %v2385_v55 = vmul.f32 %v3595_v9, %v2337_v24  ;;  %v2431_v6 = vadd.f32 %v4813_v47, %v2409_v17 }
 0x55d   : > { %v2428_v10 = vadd.f32 %v4813_v47, %v2406_v22 }
 0x55e   : > { %3602 = vrsqrt.f32 %v2359_v37  ;;  %v2407_v39 = vmul.f32 %v4802_v53, %v2385_v55  ;;  %v2447_v57 = vmax.f32 %v2431_v6, 0.0 }
 0x55f   : > { %v2444_v25 = vmax.f32 %v2428_v10, 0.0 }
 0x560   : > { %v2429_v2 = vadd.f32 %v4813_v47, %v2407_v39  ;;  %v2457_v48 = vpack.c.bf16 %v2447_v57, %v2446_v12 }
 0x562   : > { %v2445_v52 = vmax.f32 %v2429_v2, 0.0 }
 0x563   : > { %v3597_v7 = vpop.eup %3596 }
 0x564   : > { %v2456_v49 = vpack.c.bf16 %v2445_v52, %v2444_v25  ;;  %v2388_v44 = vmul.f32 %v3597_v7, %v2340_v50 }
 0x566   : > { %3429 = vmatprep.mubr.msk.bf16.mxu0 %vm712_vm2, %v2456_v49  ;;  %v2410_v8 = vmul.f32 %v4802_v53, %v2388_v44 }
 0x567   : > { %v3599_v34 = vpop.eup %3598  ;;  %3430 = vmatmul.mubr.msk.bf16.gmra.mxu0 %vm712_vm2, %v2457_v48 }
 0x568   : > { %v3601_v13 = vpop.eup %3600  ;;  %v2389_v63 = vmul.f32 %v3599_v34, %v2341_v62  ;;  %v2432_v51 = vadd.f32 %v4813_v47, %v2410_v8 }
 0x569   : > { %v2390_v35 = vmul.f32 %v3601_v13, %v2342_v33 }
 0x56a   : > { %v2411_v36 = vmul.f32 %v4802_v53, %v2389_v63  ;;  %v2448_v28 = vmax.f32 %v2432_v51, 0.0 }
 0x56b   : > { %v3603_v54 = vpop.eup %3602  ;;  %v2412_v40 = vmul.f32 %v4802_v53, %v2390_v35 }
 0x56c   : > { %v2433_v26 = vadd.f32 %v4813_v47, %v2411_v36  ;;  %v2391_v60 = vmul.f32 %v3603_v54, %v2343_v29 }
 0x56d   : > { %v2434_v45 = vadd.f32 %v4813_v47, %v2412_v40 }
 0x56e   : > { %v2449_v41 = vmax.f32 %v2433_v26, 0.0  ;;  %v2413_v16 = vmul.f32 %v4802_v53, %v2391_v60 }
 0x56f   : > { %v2450_v30 = vmax.f32 %v2434_v45, 0.0 }
 0x570   : > { %v2458_v42 = vpack.c.bf16 %v2449_v41, %v2448_v28  ;;  %v2435_v59 = vadd.f32 %v4813_v47, %v2413_v16 }
 0x572   : > { %3433 = vmatprep.mubr.msk.bf16.mxu0 %vm712_vm2, %v2458_v42  ;;  %v2451_v20 = vmax.f32 %v2435_v59, 0.0 }
 0x574   : > { %v2459_v19 = vpack.c.bf16 %v2451_v20, %v2450_v30 }
 0x576   : > { %3434 = vmatmul.mubr.msk.bf16.gmra.mxu0 %vm712_vm2, %v2459_v19 }
 0x607   : > { %v3423_v24 = vpop.f32.mrf.mxu0 }
 0x608   : > { %v4915_v53 = vadd.f32 %v3423_v24, %v4912_v11 }
 0x609   : > { %v2543_v32 = vpop.f32.mrf.mxu0 }
 0x60a   : > { %v4918_v17 = vadd.f32 %v4912_v11, %v2543_v32  ;;  %v2616_v47 = vsel %vm712_vm2, %v4915_v53, 0.0  ;;  %v2676_v39 = vmul.f32 %v4915_v53, %v4915_v53 }
 0x60b   : > { %2617 = vadd.xlane.f32.xlu0 %v2616_v47  ;;  %v3424_v9 = vpop.f32.mrf.mxu0 }
 0x60c   : > { %v4923_v22 = vadd.f32 %v3424_v9, %v4912_v11  ;;  %v2610_v6 = vsel %vm712_vm2, %v4918_v17, 0.0  ;;  %v2696_v58 = vsel %vm712_vm2, %v2676_v39, 0.0  ;;  %v2674_v57 = vmul.f32 %v4918_v17, %v4918_v17 }
 0x60d   : > { %v2546_v27 = vpop.f32.mrf.mxu0 }
 0x60e   : > { %v4926_v37 = vadd.f32 %v4912_v11, %v2546_v27  ;;  %v2619_v55 = vsel %vm712_vm2, %v4923_v22, 0.0  ;;  %v2677_v2 = vmul.f32 %v4923_v22, %v4923_v22  ;;  %v2690_v25 = vsel %vm712_vm2, %v2674_v57, 0.0 }
 0x60f   : > { %2620 = vadd.xlane.f32.xlu1 %v2619_v55  ;;  %2611 = vadd.xlane.f32.xlu0 %v2610_v6 }
 0x610   : > { %v2613_v10 = vsel %vm712_vm2, %v4926_v37, 0.0  ;;  %v2699_v50 = vsel %vm712_vm2, %v2677_v2, 0.0  ;;  %v2675_v52 = vmul.f32 %v4926_v37, %v4926_v37 }
 0x612   : > { %v2693_v49 = vsel %vm712_vm2, %v2675_v52, 0.0 }
 0x613   : > { %2614 = vadd.xlane.f32.xlu1 %v2613_v10  ;;  %2697 = vadd.xlane.f32.xlu0 %v2696_v58 }
 0x617   : > { %2700 = vadd.xlane.f32.xlu1 %v2699_v50  ;;  %2691 = vadd.xlane.f32.xlu0 %v2690_v25  ;;  %v3427_v7 = vpop.f32.mrf.mxu0 }
 0x618   : > { %v4946_v12 = vadd.f32 %v3427_v7, %v4912_v11 }
 0x619   : > { %v2559_v44 = vpop.f32.mrf.mxu0 }
 0x61a   : > { %v4950_v48 = vadd.f32 %v4912_v11, %v2559_v44  ;;  %v2628_v62 = vsel %vm712_vm2, %v4946_v12, 0.0  ;;  %v2680_v29 = vmul.f32 %v4946_v12, %v4946_v12 }
 0x61b   : > { %2694 = vadd.xlane.f32.xlu1 %v2693_v49  ;;  %2629 = vadd.xlane.f32.xlu0 %v2628_v62  ;;  %v3428_v8 = vpop.f32.mrf.mxu0 }
 0x61c   : > { %v4955_v34 = vadd.f32 %v3428_v8, %v4912_v11  ;;  %v2622_v35 = vsel %vm712_vm2, %v4950_v48, 0.0  ;;  %v2708_v51 = vsel %vm712_vm2, %v2680_v29, 0.0  ;;  %v2678_v40 = vmul.f32 %v4950_v48, %v4950_v48 }
 0x61d   : > { %v2562_v33 = vpop.f32.mrf.mxu0 }
 0x61e   : > { %v4958_v13 = vadd.f32 %v4912_v11, %v2562_v33  ;;  %v2631_v63 = vsel %vm712_vm2, %v4955_v34, 0.0  ;;  %v2681_v54 = vmul.f32 %v4955_v34, %v4955_v34  ;;  %v2702_v60 = vsel %vm712_vm2, %v2678_v40, 0.0 }
 0x61f   : > { %2632 = vadd.xlane.f32.xlu1 %v2631_v63  ;;  %2623 = vadd.xlane.f32.xlu0 %v2622_v35 }
 0x620   : > { %v2625_v36 = vsel %vm712_vm2, %v4958_v13, 0.0  ;;  %v2711_v26 = vsel %vm712_vm2, %v2681_v54, 0.0  ;;  %v2679_v41 = vmul.f32 %v4958_v13, %v4958_v13 }
 0x622   : > { %v2705_v30 = vsel %vm712_vm2, %v2679_v41, 0.0 }
 0x623   : > { %2626 = vadd.xlane.f32.xlu1 %v2625_v36  ;;  %2709 = vadd.xlane.f32.xlu0 %v2708_v51  ;;  %v3474_v51 = vld [vmem:[%s5262_s13 + $0x18] sm:$0xff]  }
 0x624   : > { %3437 = vmatprep.subr.bf16.mxu1 %v3474_v51 }
 0x625   : > { %3438 = vmatpush3.bf16.msra.mxu1 %v3474_v51 }
 0x627   : > { %v3431_v28 = vpop.f32.mrf.mxu0  ;;  %2712 = vadd.xlane.f32.xlu1 %v2711_v26  ;;  %2703 = vadd.xlane.f32.xlu0 %v2702_v60  ;;  %v3475_v60 = vld [vmem:[%s5262_s13 + $0x10] sm:$0xff]  }
 0x628   : > { %v4978_v16 = vadd.f32 %v3431_v28, %v4912_v11  ;;  %3439 = vmatprep.subr.bf16.mxu1 %v3475_v60 }
 0x629   : > { %v2575_v45 = vpop.f32.mrf.mxu0  ;;  %3440 = vmatpush3.bf16.msra.mxu1 %v3475_v60 }
 0x62a   : > { %v2640_v42 = vsel %vm712_vm2, %v4978_v16, 0.0  ;;  %v4983_v59 = vadd.f32 %v4912_v11, %v2575_v45  ;;  %v2684_v27 = vmul.f32 %v4978_v16, %v4978_v16 }
 0x62b   : > { %v3432_v20 = vpop.f32.mrf.mxu0  ;;  %2706 = vadd.xlane.f32.xlu1 %v2705_v30  ;;  %2641 = vadd.xlane.f32.xlu0 %v2640_v42 }
 0x62c   : > { %v4987_v19 = vadd.f32 %v3432_v20, %v4912_v11  ;;  %v2634_v9 = vsel %vm712_vm2, %v4983_v59, 0.0  ;;  %v2720_v6 = vsel %vm712_vm2, %v2684_v27, 0.0  ;;  %v2682_v10 = vmul.f32 %v4983_v59, %v4983_v59 }
 0x62d   : > { %v2578_v24 = vpop.f32.mrf.mxu0 }
 0x62e   : > { %v2643_v32 = vsel %vm712_vm2, %v4987_v19, 0.0  ;;  %v4992_v47 = vadd.f32 %v4912_v11, %v2578_v24  ;;  %v2685_v39 = vmul.f32 %v4987_v19, %v4987_v19  ;;  %v2714_v50 = vsel %vm712_vm2, %v2682_v10, 0.0 }
 0x62f   : > { %2644 = vadd.xlane.f32.xlu1 %v2643_v32  ;;  %2635 = vadd.xlane.f32.xlu0 %v2634_v9 }
 0x630   : > { %v2637_v55 = vsel %vm712_vm2, %v4992_v47, 0.0  ;;  %v2723_v57 = vsel %vm712_vm2, %v2685_v39, 0.0  ;;  %v2683_v25 = vmul.f32 %v4992_v47, %v4992_v47 }
 0x632   : > { %v2717_v8 = vsel %vm712_vm2, %v2683_v25, 0.0 }
 0x633   : > { %2638 = vadd.xlane.f32.xlu1 %v2637_v55  ;;  %2721 = vadd.xlane.f32.xlu0 %v2720_v6 }
 0x636   : > { %v3435_v58 = vpop.f32.mrf.mxu0 }
 0x637   : > { %v5006_v2 = vadd.f32 %v3435_v58, %v4912_v11  ;;  %2724 = vadd.xlane.f32.xlu1 %v2723_v57  ;;  %2715 = vadd.xlane.f32.xlu0 %v2714_v50 }
 0x638   : > { %v2591_v52 = vpop.f32.mrf.mxu0 }
 0x639   : > { %v2652_v7 = vsel %vm712_vm2, %v5006_v2, 0.0  ;;  %v5015_v44 = vadd.f32 %v4912_v11, %v2591_v52  ;;  %v2688_v26 = vmul.f32 %v5006_v2, %v5006_v2 }
 0x63a   : > { %v3436_v49 = vpop.f32.mrf.mxu0 }
 0x63b   : > { %v5018_v62 = vadd.f32 %v3436_v49, %v4912_v11  ;;  %2718 = vadd.xlane.f32.xlu1 %v2717_v8  ;;  %2653 = vadd.xlane.f32.xlu0 %v2652_v7  ;;  %v2646_v29 = vsel %vm712_vm2, %v5015_v44, 0.0  ;;  %v2686_v36 = vmul.f32 %v5015_v44, %v5015_v44  ;;  %v2732_v41 = vsel %vm712_vm2, %v2688_v26, 0.0 }
 0x63c   : > { %v2594_v33 = vpop.f32.mrf.mxu0 }
 0x63d   : > { %v2655_v63 = vsel %vm712_vm2, %v5018_v62, 0.0  ;;  %v5024_v35 = vadd.f32 %v4912_v11, %v2594_v33  ;;  %v2726_v11 = vsel %vm712_vm2, %v2686_v36, 0.0  ;;  %v2689_v45 = vmul.f32 %v5018_v62, %v5018_v62 }
 0x63f   : > { %2656 = vadd.xlane.f32.xlu1 %v2655_v63  ;;  %2647 = vadd.xlane.f32.xlu0 %v2646_v29  ;;  %v2649_v54 = vsel %vm712_vm2, %v5024_v35, 0.0  ;;  %v2687_v40 = vmul.f32 %v5024_v35, %v5024_v35  ;;  %v2735_v42 = vsel %vm712_vm2, %v2689_v45, 0.0 }
 0x641   : > { %v2729_v28 = vsel %vm712_vm2, %v2687_v40, 0.0 }
 0x643   : > { %2650 = vadd.xlane.f32.xlu1 %v2649_v54  ;;  %2727 = vadd.xlane.f32.xlu0 %v2726_v11 }
 0x647   : > { %2730 = vadd.xlane.f32.xlu1 %v2729_v28  ;;  %2733 = vadd.xlane.f32.xlu0 %v2732_v41 }
 0x64b   : > { %2736 = vadd.xlane.f32.xlu1 %v2735_v42 }
 0x694   : > { %v2618_v30 = vpop.xlane.xlu0 %2617 }
 0x695   : > { %v2660_v32 = vmul.f32 0.03125, %v2618_v30 }
 0x697   : > { %v2756_v6 = vmul.f32 %v2660_v32, %v2660_v32 }
 0x698   : > { %v2621_v20 = vpop.xlane.xlu1 %2620  ;;  %v2612_v24 = vpop.xlane.xlu0 %2611 }
 0x699   : > { %v5048_v9 = vmul.f32 0.03125, %v2621_v20  ;;  %v5050_v39 = vmul.f32 0.03125, %v2612_v24 }
 0x69b   : > { %v2757_v57 = vmul.f32 %v5048_v9, %v5048_v9  ;;  %v2754_v7 = vmul.f32 %v5050_v39, %v5050_v39 }
 0x69c   : > { %v2615_v27 = vpop.xlane.xlu1 %2614  ;;  %v2698_v55 = vpop.xlane.xlu0 %2697 }
 0x69d   : > { %v2740_v10 = vmul.f32 0.03125, %v2698_v55  ;;  %v5054_v50 = vmul.f32 0.03125, %v2615_v27 }
 0x69f   : > { %v2772_v58 = vsub.f32 %v2740_v10, %v2756_v6  ;;  %v2755_v51 = vmul.f32 %v5054_v50, %v5054_v50 }
 0x6a0   : > { %v2701_v25 = vpop.xlane.xlu1 %2700  ;;  %v2692_v52 = vpop.xlane.xlu0 %2691 }
 0x6a1   : > { %v2788_v49 = vmax.f32 %v2772_v58, 0.0  ;;  %v2741_v8 = vmul.f32 0.03125, %v2701_v25  ;;  %v2738_v33 = vmul.f32 0.03125, %v2692_v52 }
 0x6a3   : > { %v2820_v63 = vadd.f32 1e-05, %v2788_v49  ;;  %v2773_v29 = vsub.f32 %v2741_v8, %v2757_v57  ;;  %v2770_v36 = vsub.f32 %v2738_v33, %v2754_v7  ;;  %v2804_v49 = vsub.f32 %v4915_v53, %v2660_v32 }
 0x6a4   : > { %v2695_v54 = vpop.xlane.xlu1 %2694  ;;  %v2630_v60 = vpop.xlane.xlu0 %2629 }
 0x6a5   : > { %3604 = vrsqrt.f32 %v2820_v63  ;;  %v2789_v11 = vmax.f32 %v2773_v29, 0.0  ;;  %v2786_v40 = vmax.f32 %v2770_v36, 0.0  ;;  %v2739_v26 = vmul.f32 0.03125, %v2695_v54 }
 0x6a6   : > { %v5060_v27 = vmul.f32 0.03125, %v2630_v60 }
 0x6a7   : > { %v2821_v28 = vadd.f32 1e-05, %v2789_v11  ;;  %v2818_v41 = vadd.f32 1e-05, %v2786_v40  ;;  %v2771_v45 = vsub.f32 %v2739_v26, %v2755_v51  ;;  %v2805_v11 = vsub.f32 %v4923_v22, %v5048_v9 }
 0x6a8   : > { %v2633_v30 = vpop.xlane.xlu1 %2632  ;;  %v2624_v20 = vpop.xlane.xlu0 %2623  ;;  %v2760_v58 = vmul.f32 %v5060_v27, %v5060_v27  ;;  %v2803_v22 = vsub.f32 %v4926_v37, %v5054_v50  ;;  %v5093_v37 = vld [vmem:[%s5261_s12 + $0x1] ss:$0 sm:$0xff] }
 0x6a9   : > { %3606 = vrsqrt.f32 %v2821_v28  ;;  %v2787_v42 = vmax.f32 %v2771_v45, 0.0  ;;  %v5062_v55 = vmul.f32 0.03125, %v2633_v30  ;;  %v5066_v57 = vmul.f32 0.03125, %v2624_v20  ;;  %v5082_v45 = vld [vmem:[%s5260_s11 + $0x1] ss:$0 sm:$0xff] }
 0x6aa   : > { %3608 = vrsqrt.f32 %v2818_v41  ;;  %v2802_v41 = vsub.f32 %v4918_v17, %v5050_v39 }
 0x6ab   : > { %v2819_v24 = vadd.f32 1e-05, %v2787_v42  ;;  %v2761_v8 = vmul.f32 %v5062_v55, %v5062_v55  ;;  %v2758_v29 = vmul.f32 %v5066_v57, %v5066_v57 }
 0x6ac   : > { %v2627_v6 = vpop.xlane.xlu1 %2626  ;;  %v2710_v10 = vpop.xlane.xlu0 %2709 }
 0x6ad   : > { %3610 = vrsqrt.f32 %v2819_v24  ;;  %v2744_v25 = vmul.f32 0.03125, %v2710_v10  ;;  %v5075_v40 = vmul.f32 0.03125, %v2627_v6 }
 0x6af   : > { %v2776_v52 = vsub.f32 %v2744_v25, %v2760_v58  ;;  %v2759_v10 = vmul.f32 %v5075_v40, %v5075_v40 }
 0x6b0   : > { %v2713_v33 = vpop.xlane.xlu1 %2712  ;;  %v2704_v63 = vpop.xlane.xlu0 %2703 }
 0x6b1   : > { %v2792_v36 = vmax.f32 %v2776_v52, 0.0  ;;  %v2745_v51 = vmul.f32 0.03125, %v2713_v33  ;;  %v2742_v54 = vmul.f32 0.03125, %v2704_v63 }
 0x6b2   : > { %v3605_v7 = vpop.eup %3604 }
 0x6b3   : > { %v2852_v26 = vmul.f32 %v3605_v7, %v2804_v49  ;;  %v2824_v60 = vadd.f32 1e-05, %v2792_v36  ;;  %v2777_v28 = vsub.f32 %v2745_v51, %v2761_v8  ;;  %v2774_v53 = vsub.f32 %v2742_v54, %v2758_v29 }
 0x6b4   : > { %v2707_v42 = vpop.xlane.xlu1 %2706  ;;  %v2642_v30 = vpop.xlane.xlu0 %2641 }
 0x6b5   : > { %v2793_v24 = vmax.f32 %v2777_v28, 0.0  ;;  %v2790_v6 = vmax.f32 %v2774_v53, 0.0  ;;  %3612 = vrsqrt.f32 %v2824_v60  ;;  %v2743_v58 = vmul.f32 0.03125, %v2707_v42 }
 0x6b6   : > { %v3607_v32 = vpop.eup %3606  ;;  %v2874_v39 = vmul.f32 %v5082_v45, %v2852_v26  ;;  %v5096_v29 = vmul.f32 0.03125, %v2642_v30 }
 0x6b7   : > { %v3609_v20 = vpop.eup %3608  ;;  %v2853_v9 = vmul.f32 %v3607_v32, %v2805_v11  ;;  %v2825_v52 = vadd.f32 1e-05, %v2793_v24  ;;  %v2822_v7 = vadd.f32 1e-05, %v2790_v6  ;;  %v2775_v8 = vsub.f32 %v2743_v58, %v2759_v10 }
 0x6b8   : > { %v2850_v17 = vmul.f32 %v3609_v20, %v2802_v41  ;;  %v2645_v33 = vpop.xlane.xlu1 %2644  ;;  %v2636_v63 = vpop.xlane.xlu0 %2635  ;;  %v2896_v11 = vadd.f32 %v5093_v37, %v2874_v39  ;;  %v2764_v30 = vmul.f32 %v5096_v29, %v5096_v29 }
 0x6b9   : > { %v2875_v25 = vmul.f32 %v5082_v45, %v2853_v9  ;;  %3614 = vrsqrt.f32 %v2825_v52  ;;  %v2791_v51 = vmax.f32 %v2775_v8, 0.0  ;;  %v5098_v54 = vmul.f32 0.03125, %v2645_v33 }
 0x6ba   : > { %v3611_v49 = vpop.eup %3610  ;;  %v2872_v50 = vmul.f32 %v5082_v45, %v2850_v17  ;;  %3616 = vrsqrt.f32 %v2822_v7  ;;  %v5102_v28 = vmul.f32 0.03125, %v2636_v63  ;;  %v2912_v52 = vmax.f32 %v2896_v11, 0.0 }
 0x6bb   : > { %v2851_v36 = vmul.f32 %v3611_v49, %v2803_v22  ;;  %v2897_v26 = vadd.f32 %v5093_v37, %v2875_v25  ;;  %v2823_v60 = vadd.f32 1e-05, %v2791_v51  ;;  %v2765_v9 = vmul.f32 %v5098_v54, %v5098_v54 }
 0x6bc   : > { %v2639_v53 = vpop.xlane.xlu1 %2638  ;;  %v2722_v32 = vpop.xlane.xlu0 %2721  ;;  %v2894_v42 = vadd.f32 %v5093_v37, %v2872_v50  ;;  %v2762_v10 = vmul.f32 %v5102_v28, %v5102_v28 }
 0x6bd   : > { %v2873_v41 = vmul.f32 %v5082_v45, %v2851_v36  ;;  %v2748_v20 = vmul.f32 0.03125, %v2722_v32  ;;  %3618 = vrsqrt.f32 %v2823_v60  ;;  %v2913_v6 = vmax.f32 %v2897_v26, 0.0 }
 0x6be   : > { %v2910_v39 = vmax.f32 %v2894_v42, 0.0  ;;  %v5113_v7 = vmul.f32 0.03125, %v2639_v53  ;;  %v2808_v26 = vsub.f32 %v4946_v12, %v5060_v27 }
 0x6bf   : > { %v2895_v22 = vadd.f32 %v5093_v37, %v2873_v41  ;;  %v2780_v24 = vsub.f32 %v2748_v20, %v2764_v30  ;;  %v2927_v32 = vpack.c.bf16 %v2913_v6, %v2912_v52  ;;  %v2809_v41 = vsub.f32 %v4955_v34, %v5062_v55 }
 0x6c0   : > { %v2725_v58 = vpop.xlane.xlu1 %2724  ;;  %v2716_v17 = vpop.xlane.xlu0 %2715  ;;  %v2763_v11 = vmul.f32 %v5113_v7, %v5113_v7 }
 0x6c1   : > { %v2911_v25 = vmax.f32 %v2895_v22, 0.0  ;;  %v2796_v49 = vmax.f32 %v2780_v24, 0.0  ;;  %v2749_v8 = vmul.f32 0.03125, %v2725_v58  ;;  %v2746_v33 = vmul.f32 0.03125, %v2716_v17 }
 0x6c2   : > { %v3613_v50 = vpop.eup %3612  ;;  %v2806_v24 = vsub.f32 %v4950_v48, %v5066_v57 }
 0x6c3   : > { %v2926_v63 = vpack.c.bf16 %v2911_v25, %v2910_v39  ;;  %v2828_v36 = vadd.f32 1e-05, %v2796_v49  ;;  %v2781_v51 = vsub.f32 %v2749_v8, %v2765_v9  ;;  %v2778_v60 = vsub.f32 %v2746_v33, %v2762_v10 }
 0x6c4   : > { %v2719_v42 = vpop.xlane.xlu1 %2718  ;;  %v2654_v30 = vpop.xlane.xlu0 %2653  ;;  %v2856_v12 = vmul.f32 %v3613_v50, %v2808_v26  ;;  %v2807_v25 = vsub.f32 %v4958_v13, %v5075_v40 }
 0x6c5   : > { %3441 = vmatprep.mubr.msk.bf16.mxu1 %vm712_vm2, %v2926_v63  ;;  %v2797_v53 = vmax.f32 %v2781_v51, 0.0  ;;  %v2794_v20 = vmax.f32 %v2778_v60, 0.0  ;;  %v2747_v22 = vmul.f32 0.03125, %v2719_v42  ;;  %3620 = vrsqrt.f32 %v2828_v36 }
 0x6c6   : > { %3442 = vmatmul.mubr.msk.bf16.vlgmr.msra.gmra.mxu1 %vm712_vm2, %v2927_v32  ;;  %v3615_v9 = vpop.eup %3614  ;;  %v2878_v57 = vmul.f32 %v5082_v45, %v2856_v12  ;;  %v5132_v50 = vmul.f32 0.03125, %v2654_v30 }
 0x6c7   : > { %v3617_v27 = vpop.eup %3616  ;;  %v2829_v34 = vadd.f32 1e-05, %v2797_v53  ;;  %v2826_v55 = vadd.f32 1e-05, %v2794_v20  ;;  %v2779_v6 = vsub.f32 %v2747_v22, %v2763_v11  ;;  %v2857_v10 = vmul.f32 %v3615_v9, %v2809_v41 }
 0x6c8   : > { %v2657_v58 = vpop.xlane.xlu1 %2656  ;;  %v2648_v17 = vpop.xlane.xlu0 %2647  ;;  %v2854_v39 = vmul.f32 %v3617_v27, %v2806_v24  ;;  %v2900_v11 = vadd.f32 %v5093_v37, %v2878_v57  ;;  %v2768_v53 = vmul.f32 %v5132_v50, %v5132_v50 }
 0x6c9   : > { %3622 = vrsqrt.f32 %v2829_v34  ;;  %v2795_v52 = vmax.f32 %v2779_v6, 0.0  ;;  %v5127_v49 = vmul.f32 0.03125, %v2648_v17  ;;  %v2879_v8 = vmul.f32 %v5082_v45, %v2857_v10 }
 0x6ca   : > { %3624 = vrsqrt.f32 %v2826_v55  ;;  %v2876_v48 = vmul.f32 %v5082_v45, %v2854_v39  ;;  %v3619_v33 = vpop.eup %3618  ;;  %v5144_v20 = vmul.f32 0.03125, %v2657_v58  ;;  %v2916_v39 = vmax.f32 %v2900_v11, 0.0 }
 0x6cb   : > { %v2827_v63 = vadd.f32 1e-05, %v2795_v52  ;;  %v2855_v60 = vmul.f32 %v3619_v33, %v2807_v25  ;;  %v2901_v13 = vadd.f32 %v5093_v37, %v2879_v8  ;;  %v2766_v40 = vmul.f32 %v5127_v49, %v5127_v49 }
 0x6cc   : > { %v2651_v36 = vpop.xlane.xlu1 %2650  ;;  %v2728_v51 = vpop.xlane.xlu0 %2727  ;;  %v2898_v42 = vadd.f32 %v5093_v37, %v2876_v48  ;;  %v2812_v52 = vsub.f32 %v4978_v16, %v5096_v29  ;;  %v2813_v8 = vsub.f32 %v4987_v19, %v5098_v54  ;;  %v2769_v33 = vmul.f32 %v5144_v20, %v5144_v20 }
 0x6cd   : > { %3626 = vrsqrt.f32 %v2827_v63  ;;  %v5137_v32 = vmul.f32 0.03125, %v2651_v36  ;;  %v2750_v26 = vmul.f32 0.03125, %v2728_v51  ;;  %v2877_v41 = vmul.f32 %v5082_v45, %v2855_v60 }
 0x6ce   : > { %v2917_v12 = vmax.f32 %v2901_v13, 0.0  ;;  %v2914_v10 = vmax.f32 %v2898_v42, 0.0  ;;  %v2810_v16 = vsub.f32 %v4983_v59, %v5102_v28 }
 0x6cf   : > { %v2782_v30 = vsub.f32 %v2750_v26, %v2766_v40  ;;  %v2899_v24 = vadd.f32 %v5093_v37, %v2877_v41  ;;  %v2767_v27 = vmul.f32 %v5137_v32, %v5137_v32 }
 0x6d0   : > { %v2731_v22 = vpop.xlane.xlu1 %2730  ;;  %v2734_v9 = vpop.xlane.xlu0 %2733  ;;  %v2929_v51 = vpack.c.bf16 %v2917_v12, %v2916_v39 }
 0x6d1   : > { %v2798_v34 = vmax.f32 %v2782_v30, 0.0  ;;  %v2751_v55 = vmul.f32 0.03125, %v2731_v22  ;;  %v2752_v6 = vmul.f32 0.03125, %v2734_v9  ;;  %v2915_v17 = vmax.f32 %v2899_v24, 0.0 }
 0x6d2   : > { %v3621_v25 = vpop.eup %3620 }
 0x6d3   : > { %v2830_v58 = vadd.f32 1e-05, %v2798_v34  ;;  %v2783_v48 = vsub.f32 %v2751_v55, %v2767_v27  ;;  %v2784_v57 = vsub.f32 %v2752_v6, %v2768_v53  ;;  %v2928_v36 = vpack.c.bf16 %v2915_v17, %v2914_v10 }
 0x6d4   : > { %v2737_v63 = vpop.xlane.xlu1 %2736  ;;  %v2860_v29 = vmul.f32 %v3621_v25, %v2812_v52  ;;  %v2811_v53 = vsub.f32 %v4992_v47, %v5113_v7  ;;  %v2814_v17 = vsub.f32 %v5015_v44, %v5127_v49 }
 0x6d5   : > { %3628 = vrsqrt.f32 %v2830_v58  ;;  %v2799_v60 = vmax.f32 %v2783_v48, 0.0  ;;  %v2800_v13 = vmax.f32 %v2784_v57, 0.0  ;;  %v2753_v40 = vmul.f32 0.03125, %v2737_v63  ;;  %3445 = vmatprep.mubr.msk.bf16.mxu1 %vm712_vm2, %v2928_v36 }
 0x6d6   : > { %v3623_v26 = vpop.eup %3622  ;;  %3446 = vmatmul.mubr.msk.bf16.gmra.mxu1 %vm712_vm2, %v2929_v51  ;;  %v2882_v28 = vmul.f32 %v5082_v45, %v2860_v29  ;;  %v2816_v51 = vsub.f32 %v5006_v2, %v5132_v50 }
 0x6d7   : > { %v3625_v41 = vpop.eup %3624  ;;  %v2831_v42 = vadd.f32 1e-05, %v2799_v60  ;;  %v2832_v19 = vadd.f32 1e-05, %v2800_v13  ;;  %v2785_v54 = vsub.f32 %v2753_v40, %v2769_v33  ;;  %v2861_v11 = vmul.f32 %v3623_v26, %v2813_v8 }
 0x6d8   : > { %v2858_v30 = vmul.f32 %v3625_v41, %v2810_v16  ;;  %v2904_v47 = vadd.f32 %v5093_v37, %v2882_v28  ;;  %v2815_v33 = vsub.f32 %v5024_v35, %v5137_v32  ;;  %v2817_v13 = vsub.f32 %v5018_v62, %v5144_v20 }
 0x6d9   : > { %3630 = vrsqrt.f32 %v2831_v42  ;;  %v2801_v22 = vmax.f32 %v2785_v54, 0.0  ;;  %v2883_v9 = vmul.f32 %v5082_v45, %v2861_v11 }
 0x6da   : > { %v3627_v24 = vpop.eup %3626  ;;  %3632 = vrsqrt.f32 %v2832_v19  ;;  %v2880_v59 = vmul.f32 %v5082_v45, %v2858_v30  ;;  %v2920_v58 = vmax.f32 %v2904_v47, 0.0  ;;  %v3267_v30 = vld [vmem:[%s5263_s14 + $0x1] ss:$0 sm:$0xff] }
 0x6db   : > { %v2833_v12 = vadd.f32 1e-05, %v2801_v22  ;;  %v2859_v27 = vmul.f32 %v3627_v24, %v2811_v53  ;;  %v2905_v34 = vadd.f32 %v5093_v37, %v2883_v9 }
 0x6dc   : > { %v2902_v6 = vadd.f32 %v5093_v37, %v2880_v59 }
 0x6dd   : > { %3634 = vrsqrt.f32 %v2833_v12  ;;  %v2881_v55 = vmul.f32 %v5082_v45, %v2859_v27  ;;  %v2921_v10 = vmax.f32 %v2905_v34, 0.0 }
 0x6de   : > { %v2918_v39 = vmax.f32 %v2902_v6, 0.0 }
 0x6df   : > { %v2903_v7 = vadd.f32 %v5093_v37, %v2881_v55  ;;  %v2931_v8 = vpack.c.bf16 %v2921_v10, %v2920_v58 }
 0x6e1   : > { %v2919_v25 = vmax.f32 %v2903_v7, 0.0 }
 0x6e2   : > { %v3629_v52 = vpop.eup %3628 }
 0x6e3   : > { %v2930_v48 = vpack.c.bf16 %v2919_v25, %v2918_v39  ;;  %v2862_v57 = vmul.f32 %v3629_v52, %v2814_v17 }
 0x6e5   : > { %3449 = vmatprep.mubr.msk.bf16.mxu1 %vm712_vm2, %v2930_v48  ;;  %v2884_v63 = vmul.f32 %v5082_v45, %v2862_v57 }
 0x6e6   : > { %v3631_v36 = vpop.eup %3630  ;;  %3450 = vmatmul.mubr.msk.bf16.gmra.mxu1 %vm712_vm2, %v2931_v8 }
 0x6e7   : > { %v3633_v44 = vpop.eup %3632  ;;  %v2863_v49 = vmul.f32 %v3631_v36, %v2815_v33  ;;  %v2906_v35 = vadd.f32 %v5093_v37, %v2884_v63 }
 0x6e8   : > { %v2864_v60 = vmul.f32 %v3633_v44, %v2816_v51 }
 0x6e9   : > { %v2885_v40 = vmul.f32 %v5082_v45, %v2863_v49  ;;  %v2922_v2 = vmax.f32 %v2906_v35, 0.0 }
 0x6ea   : > { %v3635_v32 = vpop.eup %3634  ;;  %v2886_v26 = vmul.f32 %v5082_v45, %v2864_v60 }
 0x6eb   : > { %v2907_v16 = vadd.f32 %v5093_v37, %v2885_v40  ;;  %v2865_v29 = vmul.f32 %v3635_v32, %v2817_v13 }
 0x6ec   : > { %v2908_v42 = vadd.f32 %v5093_v37, %v2886_v26 }
 0x6ed   : > { %v2923_v50 = vmax.f32 %v2907_v16, 0.0  ;;  %v2887_v41 = vmul.f32 %v5082_v45, %v2865_v29 }
 0x6ee   : > { %v2924_v20 = vmax.f32 %v2908_v42, 0.0 }
 0x6ef   : > { %v2932_v19 = vpack.c.bf16 %v2923_v50, %v2922_v2  ;;  %v2909_v62 = vadd.f32 %v5093_v37, %v2887_v41 }
 0x6f1   : > { %3453 = vmatprep.mubr.msk.bf16.mxu1 %vm712_vm2, %v2932_v19  ;;  %v2925_v54 = vmax.f32 %v2909_v62, 0.0 }
 0x6f3   : > { %v2933_v11 = vpack.c.bf16 %v2925_v54, %v2924_v20 }
 0x6f5   : > { %3454 = vmatmul.mubr.msk.bf16.gmra.mxu1 %vm712_vm2, %v2933_v11 }
 0x786   : > { %v3443_v53 = vpop.f32.mrf.mxu1 }
 0x787   : > { %v3026_v22 = vadd.f32 %v3443_v53, %v3267_v30 }
 0x788   : > { %v3017_v45 = vpop.f32.mrf.mxu1 }
 0x789   : > { %v3082_v37 = vadd.f32 %v3026_v22, %v4620_v56  ;;  %v3018_v9 = vadd.f32 %v3267_v30, %v3017_v45 }
 0x78a   : > { %v3444_v24 = vpop.f32.mrf.mxu1 }
 0x78b   : > { %3098 = vst.msk [vmem:[%s5196_s30 + $0x10] sm:$0xff] %vm712_vm2, %v3082_v37  ;;  %v3080_v59 = vadd.f32 %v3018_v9, %v4624_v46  ;;  %v3029_v28 = vadd.f32 %v3444_v24, %v3267_v30 }
 0x78c   : > { %v3020_v12 = vpop.f32.mrf.mxu1 }
 0x78d   : > { %3096 = vst.msk [vmem:[%s5196_s30] sm:$0xff] %vm712_vm2, %v3080_v59  ;;  %v3083_v27 = vadd.f32 %v3029_v28, %v4630_v14  ;;  %v3021_v34 = vadd.f32 %v3267_v30, %v3020_v12 }
 0x78f   : > { %3099 = vst.msk [vmem:[%s5196_s30 + $0x18] sm:$0xff] %vm712_vm2, %v3083_v27  ;;  %v3081_v56 = vadd.f32 %v3021_v34, %v4634_v23 }
 0x791   : > { %3097 = vst.msk [vmem:[%s5196_s30 + $0x8] sm:$0xff] %vm712_vm2, %v3081_v56 }
 0x796   : > { %v3447_v55 = vpop.f32.mrf.mxu1 }
 0x797   : > { %v3042_v6 = vadd.f32 %v3447_v55, %v3267_v30 }
 0x798   : > { %v3033_v47 = vpop.f32.mrf.mxu1 }
 0x799   : > { %v3086_v46 = vadd.f32 %v3042_v6, %v4655_v1  ;;  %v3034_v7 = vadd.f32 %v3267_v30, %v3033_v47 }
 0x79a   : > { %v3448_v10 = vpop.f32.mrf.mxu1 }
 0x79b   : > { %3102 = vst.msk [vmem:[%s5196_s30 + $0x30] sm:$0xff] %vm712_vm2, %v3086_v46  ;;  %v3084_v14 = vadd.f32 %v3034_v7, %v4660_v43  ;;  %v3045_v17 = vadd.f32 %v3448_v10, %v3267_v30 }
 0x79c   : > { %v3036_v39 = vpop.f32.mrf.mxu1 }
 0x79d   : > { %3100 = vst.msk [vmem:[%s5196_s30 + $0x20] sm:$0xff] %vm712_vm2, %v3084_v14  ;;  %v3087_v23 = vadd.f32 %v3045_v17, %v4666_v5  ;;  %v3037_v25 = vadd.f32 %v3267_v30, %v3036_v39 }
 0x79f   : > { %3103 = vst.msk [vmem:[%s5196_s30 + $0x38] sm:$0xff] %vm712_vm2, %v3087_v23  ;;  %v3085_v1 = vadd.f32 %v3037_v25, %v4670_v18 }
 0x7a1   : > { %3101 = vst.msk [vmem:[%s5196_s30 + $0x28] sm:$0xff] %vm712_vm2, %v3085_v1 }
 0x7a6   : > { %v3451_v52 = vpop.f32.mrf.mxu1 }
 0x7a7   : > { %v3058_v58 = vadd.f32 %v3451_v52, %v3267_v30 }
 0x7a8   : > { %v3049_v48 = vpop.f32.mrf.mxu1 }
 0x7a9   : > { %v3090_v43 = vadd.f32 %v3058_v58, %v4691_v31  ;;  %v3050_v57 = vadd.f32 %v3267_v30, %v3049_v48 }
 0x7aa   : > { %v3452_v8 = vpop.f32.mrf.mxu1 }
 0x7ab   : > { %3106 = vst.msk [vmem:[%s5196_s30 + $0x50] sm:$0xff] %vm712_vm2, %v3090_v43  ;;  %v3088_v5 = vadd.f32 %v3050_v57, %v4698_v15  ;;  %v3061_v33 = vadd.f32 %v3452_v8, %v3267_v30 }
 0x7ac   : > { %v3052_v63 = vpop.f32.mrf.mxu1 }
 0x7ad   : > { %3104 = vst.msk [vmem:[%s5196_s30 + $0x40] sm:$0xff] %vm712_vm2, %v3088_v5  ;;  %v3091_v18 = vadd.f32 %v3061_v33, %v4702_v21  ;;  %v3053_v36 = vadd.f32 %v3267_v30, %v3052_v63 }
 0x7af   : > { %3107 = vst.msk [vmem:[%s5196_s30 + $0x58] sm:$0xff] %vm712_vm2, %v3091_v18  ;;  %v3089_v31 = vadd.f32 %v3053_v36, %v4708_v38 }
 0x7b1   : > { %3105 = vst.msk [vmem:[%s5196_s30 + $0x48] sm:$0xff] %vm712_vm2, %v3089_v31 }
 0x7b5   : > { %v3455_v51 = vpop.f32.mrf.mxu1 }
 0x7b6   : > { %v3074_v44 = vadd.f32 %v3455_v51, %v3267_v30 }
 0x7b7   : > { %v3065_v49 = vpop.f32.mrf.mxu1 }
 0x7b8   : > { %v3094_v15 = vadd.f32 %v3074_v44, %v4724_v0  ;;  %v3066_v60 = vadd.f32 %v3267_v30, %v3065_v49 }
 0x7b9   : > { %v3456_v13 = vpop.f32.mrf.mxu1 }
 0x7ba   : > { %3110 = vst.msk [vmem:[%s5196_s30 + $0x70] sm:$0xff] %vm712_vm2, %v3094_v15  ;;  %v3092_v21 = vadd.f32 %v3066_v60, %v4737_v3  ;;  %v3077_v40 = vadd.f32 %v3456_v13, %v3267_v30 }
 0x7bb   : > { %v3068_v35 = vpop.f32.mrf.mxu1 }
 0x7bc   : > { %3108 = vst.msk [vmem:[%s5196_s30 + $0x60] sm:$0xff] %vm712_vm2, %v3092_v21  ;;  %v3095_v38 = vadd.f32 %v3077_v40, %v4740_v4  ;;  %v3069_v32 = vadd.f32 %v3267_v30, %v3068_v35 }
 0x7be   : > { %3111 = vst.msk [vmem:[%s5196_s30 + $0x78] sm:$0xff] %vm712_vm2, %v3095_v38  ;;  %v3093_v26 = vadd.f32 %v3069_v32, %v4747_v61 }
 0x7c0   : > { %3109 = vst.msk [vmem:[%s5196_s30 + $0x68] sm:$0xff] %vm712_vm2, %v3093_v26 }
 0x7c1 PF: > { %s25_s18 = sadd.s32 1, %s3642_s18  }
 0x7c2   : > { %p22_p4 = scmp.ge.s32.totalorder %s25_s18, 4  }
 0x7c4   :  { %24 = sbr.rel (!%p22_p4) target bundleno = 1 (0x1), region = 121 }

</bundles_post_ra>
